<compile_context>
chip_gen: v7x
topology: tpu7x:2x2x1
jax: 0.10.0
libtpu: 0.0.40
codegen_flags: <defaults>
</compile_context>

<pallas_src>
import math

import jax
import jax.numpy as jnp
from jax.experimental import pallas as pl
from jax.experimental.pallas import tpu as pltpu


# ---------------------------------------------------------------- helpers ----
def _selu(x):
    alpha = 1.6732632423543772
    scale = 1.0507009873554805
    return scale * jnp.where(x > 0, x, alpha * (jnp.exp(x) - 1.0))


def _layernorm(x, g, b, eps=1e-5):
    mu = jnp.mean(x, axis=-1, keepdims=True)
    var = jnp.mean(jnp.square(x - mu), axis=-1, keepdims=True)
    return (x - mu) * jax.lax.rsqrt(var + eps) * g + b


def _const_map(ndim):
    return lambda i: (0,) * ndim


# ----------------------------------------------------------------- kernel ----
def _pogfuse_kernel(
    x_ref, tc_ref, c_ref,                                   # data
    wq_ref, wk_ref, wv_ref, bq_ref, bk_ref, bv_ref,         # attention in-proj (per head)
    wo_ref, bo_ref,                                         # attention out-proj
    fw1_ref, fb1_ref, fw2_ref, fb2_ref,                     # feed-forward
    n1g_ref, n1b_ref, n2g_ref, n2b_ref,                     # norm1 / norm2
    out_ref,
):
    bt, s, d = x_ref.shape
    s2 = c_ref.shape[1]
    n_heads, _, dh = wq_ref.shape
    n = bt * s
    scale = 1.0 / math.sqrt(dh)
    bf16 = jnp.bfloat16

    dot = lambda a, b: jnp.dot(a, b, preferred_element_type=jnp.float32)
    # a (m, k) @ b (l, k)^T -> (m, l) without materializing a transpose
    dot_nt = lambda a, b: jax.lax.dot_general(
        a, b, (((1,), (1,)), ((), ())), preferred_element_type=jnp.float32)

    # x += t_layers(t_emb) + cond_pooled_layers(pooled_conv_emb)   (precomputed "tc")
    x = x_ref[...] + tc_ref[...][:, None, :]                       # (bt, s, d)  f32
    xf = x.reshape(n, d)                                           # (bt*s, d)
    cf = c_ref[...].reshape(bt * s2, d)                            # (bt*s2, d)
    xb = xf.astype(bf16)
    cb = cf.astype(bf16)

    # --- multi-head attention: q = x, kv = [x ; c] (block-diagonal over the batch) ---
    attn = [jnp.zeros((s, d), jnp.float32) for _ in range(bt)]
    for h in range(n_heads):
        wq_h, wk_h, wv_h, wo_h = wq_ref[h], wk_ref[h], wv_ref[h], wo_ref[h]
        q_h = ((dot(xb, wq_h) + bq_ref[h]) * scale).astype(bf16)   # (n, dh)
        kx_h = (dot(xb, wk_h) + bk_ref[h]).astype(bf16)            # (n, dh)
        kc_h = (dot(cb, wk_h) + bk_ref[h]).astype(bf16)            # (bt*s2, dh)
        vx_h = (dot(xb, wv_h) + bv_ref[h]).astype(bf16)            # (n, dh)
        vc_h = (dot(cb, wv_h) + bv_ref[h]).astype(bf16)            # (bt*s2, dh)
        for b in range(bt):                                        # static unroll, bt small
            rx = slice(b * s, (b + 1) * s)
            rc = slice(b * s2, (b + 1) * s2)
            s_x = dot_nt(q_h[rx], kx_h[rx])                        # (s, s)
            s_c = dot_nt(q_h[rx], kc_h[rc])                        # (s, s2)
            m = jnp.maximum(jnp.max(s_x, axis=-1, keepdims=True),
                            jnp.max(s_c, axis=-1, keepdims=True))
            p_x = jnp.exp(s_x - m)
            p_c = jnp.exp(s_c - m)
            denom = (jnp.sum(p_x, axis=-1, keepdims=True)
                     + jnp.sum(p_c, axis=-1, keepdims=True))
            o_b = dot(p_x.astype(bf16), vx_h[rx]) + dot(p_c.astype(bf16), vc_h[rc])
            o_b = o_b * pl.reciprocal(denom, approx=True)          # (s, dh)
            # per-head output projection, accumulated in f32 (no head concat)
            attn[b] = attn[b] + dot(o_b.astype(bf16), wo_h)        # (s, d)
    x1 = jnp.concatenate(attn, axis=0) + bo_ref[...]               # (n, d)

    # residual + norm1
    y = _layernorm(xf + x1, n1g_ref[...], n1b_ref[...])
    # feed-forward: linear1 -> SELU -> linear2 ; residual + norm2
    hdn = _selu(dot(y.astype(bf16), fw1_ref[...]) + fb1_ref[...])  # (n, 4d) f32
    ff = dot(hdn.astype(bf16), fw2_ref[...]) + fb2_ref[...]        # (n, d)
    y = _layernorm(y + ff, n2g_ref[...], n2b_ref[...])

    out_ref[...] = y.reshape(bt, s, d)


# ---------------------------------------------------------------- wrapper ----
def pogfuse_forward(x, t_emb, pooled, cond, params, nheads, *, bt=None,
                    vmem_limit_bytes=64 * 1024 * 1024):
    (tw1, tb1, tw2, tb2, cpg, cpb, cpw1, cpb1, cpw2, cpb2,
     clg, clb, clw1, clb1, clw2, clb2,
     wq, wk, wv, bq, bk, bv, wo, bo,
     fw1, fb1, fw2, fb2, n1g, n1b, n2g, n2b) = params

    B, S, D = x.shape
    S2 = cond.shape[1]
    H = nheads
    assert D % H == 0
    dh = D // H
    if bt is None:
        bt = B
    assert B % bt == 0 and (bt == B or bt % 8 == 0)

    f32, bf16 = jnp.float32, jnp.bfloat16

    # ---- hoisted 1-row conditioning MLPs: batched XLA matmuls, f32 ----
    t = jax.nn.silu(t_emb @ tw1 + tb1) @ tw2 + tb2                     # (B, D)
    cp = _layernorm(pooled, cpg, cpb)
    cp = jax.nn.silu(cp @ cpw1 + cpb1) @ cpw2 + cpb2                   # (B, D)
    tc = (t + cp).astype(f32)
    c = _layernorm(cond, clg, clb)
    c = (jax.nn.silu(c @ clw1 + clb1) @ clw2 + clb2).astype(f32)       # (B, S2, D)

    # ---- per-head attention weights: bf16 MXU operands, f32 biases ----
    wq_h = wq.reshape(D, H, dh).transpose(1, 0, 2).astype(bf16)        # (H, D, dh)
    wk_h = wk.reshape(D, H, dh).transpose(1, 0, 2).astype(bf16)
    wv_h = wv.reshape(D, H, dh).transpose(1, 0, 2).astype(bf16)
    bq_h = bq.reshape(H, 1, dh).astype(f32)
    bk_h = bk.reshape(H, 1, dh).astype(f32)
    bv_h = bv.reshape(H, 1, dh).astype(f32)
    wo_h = wo.reshape(H, dh, D).astype(bf16)                           # (H, dh, D)

    kernel_params = [
        wq_h, wk_h, wv_h, bq_h, bk_h, bv_h, wo_h, bo.astype(f32),
        fw1.astype(bf16), fb1.astype(f32), fw2.astype(bf16), fb2.astype(f32),
        n1g.astype(f32), n1b.astype(f32), n2g.astype(f32), n2b.astype(f32),
    ]

    data_specs = [
        pl.BlockSpec((bt, S, D), lambda i: (i, 0, 0)),
        pl.BlockSpec((bt, D), lambda i: (i, 0)),
        pl.BlockSpec((bt, S2, D), lambda i: (i, 0, 0)),
    ]
    # TODO(synk): single-buffer these constant-index weight blocks (pipeline_mode
    # single-buffering) to halve resident weight VMEM on v7x once available/verified.
    param_specs = [pl.BlockSpec(p.shape, _const_map(p.ndim)) for p in kernel_params]

    return pl.pallas_call(
        _pogfuse_kernel,
        out_shape=jax.ShapeDtypeStruct((B, S, D), f32),
        grid_spec=pltpu.PrefetchScalarGridSpec(
            num_scalar_prefetch=0,
            grid=(B // bt,),
            in_specs=data_specs + param_specs,
            out_specs=pl.BlockSpec((bt, S, D), lambda i: (i, 0, 0)),
        ),
        compiler_params=pltpu.CompilerParams(
            dimension_semantics=("parallel",),
            vmem_limit_bytes=vmem_limit_bytes,
        ),
    )(x.astype(f32), tc, c, *kernel_params)


# ----------------------------------------------------------- pure-JAX ref ----
def pogfuse_ref(x, t_emb, pooled, cond, params, nheads, mxu_dtype=jnp.float32):
    """Faithful reference. mxu_dtype=bfloat16 mirrors the kernel's MXU-operand casts
    (f32 accumulation / elementwise everywhere); float32 is the exact module math."""
    (tw1, tb1, tw2, tb2, cpg, cpb, cpw1, cpb1, cpw2, cpb2,
     clg, clb, clw1, clb1, clw2, clb2,
     wq, wk, wv, bq, bk, bv, wo, bo,
     fw1, fb1, fw2, fb2, n1g, n1b, n2g, n2b) = params

    cast = lambda a: a.astype(mxu_dtype)
    mm = lambda a, b: jnp.matmul(cast(a), cast(b), preferred_element_type=jnp.float32)

    t = jax.nn.silu(t_emb @ tw1 + tb1) @ tw2 + tb2
    cp = _layernorm(pooled, cpg, cpb)
    cp = jax.nn.silu(cp @ cpw1 + cpb1) @ cpw2 + cpb2
    x = x + t[:, None] + cp[:, None]
    c = _layernorm(cond, clg, clb)
    c = jax.nn.silu(c @ clw1 + clb1) @ clw2 + clb2

    kv = jnp.concatenate([x, c], axis=1)
    B, S, D = x.shape
    L = kv.shape[1]
    H, dh = nheads, D // nheads
    q = (mm(x, wq) + bq) / math.sqrt(dh)
    k = mm(kv, wk) + bk
    v = mm(kv, wv) + bv
    qh = q.reshape(B, S, H, dh).transpose(0, 2, 1, 3)
    kh = k.reshape(B, L, H, dh).transpose(0, 2, 1, 3)
    vh = v.reshape(B, L, H, dh).transpose(0, 2, 1, 3)
    s = jnp.einsum("bhqd,bhkd->bhqk", cast(qh), cast(kh),
                   preferred_element_type=jnp.float32)
    p = jnp.exp(s - jnp.max(s, axis=-1, keepdims=True))
    denom = jnp.sum(p, axis=-1, keepdims=True)
    o = jnp.einsum("bhqk,bhkd->bhqd", cast(p), cast(vh),
                   preferred_element_type=jnp.float32) / denom
    o = o.transpose(0, 2, 1, 3).reshape(B, S, D)
    x1 = mm(o, wo) + bo
    x = _layernorm(x + x1, n1g, n1b)
    ff = mm(_selu(mm(x, fw1) + fb1), fw2) + fb2
    return _layernorm(x + ff, n2g, n2b)


# ------------------------------------------------------------------- init ----
def init_params(key, dim, t_emb_dim, cond_emb_dim, d_ff_mult=4):
    ks = iter(jax.random.split(key, 64))

    def lin(fin, fout):
        w = jax.random.normal(next(ks), (fin, fout), jnp.float32) / math.sqrt(fin)
        b = jax.random.normal(next(ks), (1, fout), jnp.float32) * 0.02
        return w, b

    def ln(n):
        g = jnp.ones((1, n), jnp.float32) + 0.05 * jax.random.normal(next(ks), (1, n), jnp.float32)
        b = 0.02 * jax.random.normal(next(ks), (1, n), jnp.float32)
        return g, b

    tw1, tb1 = lin(t_emb_dim, dim)
    tw2, tb2 = lin(dim, dim)
    cpg, cpb = ln(cond_emb_dim)
    cpw1, cpb1 = lin(cond_emb_dim, dim)
    cpw2, cpb2 = lin(dim, dim)
    clg, clb = ln(cond_emb_dim)
    clw1, clb1 = lin(cond_emb_dim, dim)
    clw2, clb2 = lin(dim, dim)
    wq, bq = lin(dim, dim)
    wk, bk = lin(dim, dim)
    wv, bv = lin(dim, dim)
    wo, bo = lin(dim, dim)
    fw1, fb1 = lin(dim, dim * d_ff_mult)
    fw2, fb2 = lin(dim * d_ff_mult, dim)
    n1g, n1b = ln(dim)
    n2g, n2b = ln(dim)
    return [tw1, tb1, tw2, tb2,
            cpg, cpb, cpw1, cpb1, cpw2, cpb2,
            clg, clb, clw1, clb1, clw2, clb2,
            wq, wk, wv, bq, bk, bv, wo, bo,
            fw1, fb1, fw2, fb2,
            n1g, n1b, n2g, n2b]


# ------------------------------------------------------------------- main ----
if __name__ == "__main__":
    B, S, S2 = 2, 8, 8
    DIM, T_DIM, C_DIM, NHEADS = 128, 64, 96, 4   # D = 128 keeps stores lane-dense

    key = jax.random.PRNGKey(0)
    k_x, k_t, k_p, k_c, k_w = jax.random.split(key, 5)
    x = jax.random.normal(k_x, (B, S, DIM), jnp.float32)
    t_emb = jax.random.normal(k_t, (B, T_DIM), jnp.float32)
    pooled = jax.random.normal(k_p, (B, C_DIM), jnp.float32)
    cond = jax.random.normal(k_c, (B, S2, C_DIM), jnp.float32)
    params = init_params(k_w, DIM, T_DIM, C_DIM)

    out = jax.block_until_ready(pogfuse_forward(x, t_emb, pooled, cond, params, NHEADS))
    assert out.shape == (B, S, DIM)

    # precision-matched reference (bf16 MXU operands, f32 accumulate), tight check
    ref_bf16 = jax.block_until_ready(
        pogfuse_ref(x, t_emb, pooled, cond, params, NHEADS, mxu_dtype=jnp.bfloat16))
    err_bf16 = float(jnp.max(jnp.abs(out - ref_bf16)))
    assert jnp.allclose(out, ref_bf16, atol=2e-2, rtol=2e-2), err_bf16

    # loose sanity bound against the exact f32 module math (bf16-MXU drift only)
    ref_f32 = jax.block_until_ready(
        pogfuse_ref(x, t_emb, pooled, cond, params, NHEADS, mxu_dtype=jnp.float32))
    assert float(jnp.max(jnp.abs(out - ref_f32))) < 0.25

    # pos_bias (second return of Pogfuse.forward) is None in the non-wavlm branch.
    print("KERNEL_OK")
</pallas_src>

<mosaic_0001>
module attributes {stable_mosaic.version = 11 : i64} {
  func.func @_pogfuse_kernel(%arg0: i32, %arg1: memref<2x8x128xf32, #tpu.memory_space<vmem>>, %arg2: memref<2x128xf32, #tpu.memory_space<vmem>>, %arg3: memref<2x8x128xf32, #tpu.memory_space<vmem>>, %arg4: memref<4x128x32xbf16, #tpu.memory_space<vmem>>, %arg5: memref<4x128x32xbf16, #tpu.memory_space<vmem>>, %arg6: memref<4x128x32xbf16, #tpu.memory_space<vmem>>, %arg7: memref<4x1x32xf32, #tpu.memory_space<vmem>>, %arg8: memref<4x1x32xf32, #tpu.memory_space<vmem>>, %arg9: memref<4x1x32xf32, #tpu.memory_space<vmem>>, %arg10: memref<4x32x128xbf16, #tpu.memory_space<vmem>>, %arg11: memref<1x128xf32, #tpu.memory_space<vmem>>, %arg12: memref<128x512xbf16, #tpu.memory_space<vmem>>, %arg13: memref<1x512xf32, #tpu.memory_space<vmem>>, %arg14: memref<512x128xbf16, #tpu.memory_space<vmem>>, %arg15: memref<1x128xf32, #tpu.memory_space<vmem>>, %arg16: memref<1x128xf32, #tpu.memory_space<vmem>>, %arg17: memref<1x128xf32, #tpu.memory_space<vmem>>, %arg18: memref<1x128xf32, #tpu.memory_space<vmem>>, %arg19: memref<1x128xf32, #tpu.memory_space<vmem>>, %arg20: memref<2x8x128xf32, #tpu.memory_space<vmem>>) attributes {dimension_semantics = [#tpu.dimension_semantics<parallel>], iteration_bounds = array<i64: 1>, scalar_prefetch = 0 : i64, scratch_operands = 0 : i64, tpu.core_type = #tpu.core_type<tc>, window_params = [{transform_indices = @transform_0, window_bounds = array<i64: 2, 8, 128>}, {transform_indices = @transform_1, window_bounds = array<i64: 2, 128>}, {transform_indices = @transform_2, window_bounds = array<i64: 2, 8, 128>}, {pipeline_mode = #tpu.pipeline_mode<synchronous>, transform_indices = @transform_3, window_bounds = array<i64: 4, 128, 32>}, {pipeline_mode = #tpu.pipeline_mode<synchronous>, transform_indices = @transform_4, window_bounds = array<i64: 4, 128, 32>}, {pipeline_mode = #tpu.pipeline_mode<synchronous>, transform_indices = @transform_5, window_bounds = array<i64: 4, 128, 32>}, {pipeline_mode = #tpu.pipeline_mode<synchronous>, transform_indices = @transform_6, window_bounds = array<i64: 4, 1, 32>}, {pipeline_mode = #tpu.pipeline_mode<synchronous>, transform_indices = @transform_7, window_bounds = array<i64: 4, 1, 32>}, {pipeline_mode = #tpu.pipeline_mode<synchronous>, transform_indices = @transform_8, window_bounds = array<i64: 4, 1, 32>}, {pipeline_mode = #tpu.pipeline_mode<synchronous>, transform_indices = @transform_9, window_bounds = array<i64: 4, 32, 128>}, {pipeline_mode = #tpu.pipeline_mode<synchronous>, transform_indices = @transform_10, window_bounds = array<i64: 1, 128>}, {pipeline_mode = #tpu.pipeline_mode<synchronous>, transform_indices = @transform_11, window_bounds = array<i64: 128, 512>}, {pipeline_mode = #tpu.pipeline_mode<synchronous>, transform_indices = @transform_12, window_bounds = array<i64: 1, 512>}, {pipeline_mode = #tpu.pipeline_mode<synchronous>, transform_indices = @transform_13, window_bounds = array<i64: 512, 128>}, {pipeline_mode = #tpu.pipeline_mode<synchronous>, transform_indices = @transform_14, window_bounds = array<i64: 1, 128>}, {pipeline_mode = #tpu.pipeline_mode<synchronous>, transform_indices = @transform_15, window_bounds = array<i64: 1, 128>}, {pipeline_mode = #tpu.pipeline_mode<synchronous>, transform_indices = @transform_16, window_bounds = array<i64: 1, 128>}, {pipeline_mode = #tpu.pipeline_mode<synchronous>, transform_indices = @transform_17, window_bounds = array<i64: 1, 128>}, {pipeline_mode = #tpu.pipeline_mode<synchronous>, transform_indices = @transform_18, window_bounds = array<i64: 1, 128>}, {transform_indices = @transform_19, window_bounds = array<i64: 2, 8, 128>}]} {
    %c0 = arith.constant 0 : index
    %c0_0 = arith.constant 0 : index
    %c0_1 = arith.constant 0 : index
    %0 = vector.load %arg1[%c0, %c0_0, %c0_1] : memref<2x8x128xf32, #tpu.memory_space<vmem>>, vector<2x8x128xf32>
    %c0_2 = arith.constant 0 : index
    %c0_3 = arith.constant 0 : index
    %1 = vector.load %arg2[%c0_2, %c0_3] : memref<2x128xf32, #tpu.memory_space<vmem>>, vector<2x128xf32>
    %2 = vector.shape_cast %1 : vector<2x128xf32> to vector<2x1x128xf32>
    %3 = vector.broadcast %2 : vector<2x1x128xf32> to vector<2x8x128xf32>
    %4 = arith.addf %0, %3 : vector<2x8x128xf32>
    %5 = vector.shape_cast %4 : vector<2x8x128xf32> to vector<16x128xf32>
    %c0_4 = arith.constant 0 : index
    %c0_5 = arith.constant 0 : index
    %c0_6 = arith.constant 0 : index
    %6 = vector.load %arg3[%c0_4, %c0_5, %c0_6] : memref<2x8x128xf32, #tpu.memory_space<vmem>>, vector<2x8x128xf32>
    %7 = vector.shape_cast %6 : vector<2x8x128xf32> to vector<16x128xf32>
    %8 = arith.truncf %5 : vector<16x128xf32> to vector<16x128xbf16>
    %9 = arith.truncf %7 : vector<16x128xf32> to vector<16x128xbf16>
    %cst = arith.constant 0.000000e+00 : f32
    %10 = vector.broadcast %cst : f32 to vector<8x128xf32>
    %cst_7 = arith.constant 0.000000e+00 : f32
    %11 = vector.broadcast %cst_7 : f32 to vector<8x128xf32>
    %c0_8 = arith.constant 0 : index
    %c0_9 = arith.constant 0 : index
    %c0_10 = arith.constant 0 : index
    %12 = vector.load %arg4[%c0_8, %c0_9, %c0_10] : memref<4x128x32xbf16, #tpu.memory_space<vmem>>, vector<1x128x32xbf16>
    %13 = vector.shape_cast %12 : vector<1x128x32xbf16> to vector<128x32xbf16>
    %c0_11 = arith.constant 0 : index
    %c0_12 = arith.constant 0 : index
    %c0_13 = arith.constant 0 : index
    %14 = vector.load %arg5[%c0_11, %c0_12, %c0_13] : memref<4x128x32xbf16, #tpu.memory_space<vmem>>, vector<1x128x32xbf16>
    %15 = vector.shape_cast %14 : vector<1x128x32xbf16> to vector<128x32xbf16>
    %c0_14 = arith.constant 0 : index
    %c0_15 = arith.constant 0 : index
    %c0_16 = arith.constant 0 : index
    %16 = vector.load %arg6[%c0_14, %c0_15, %c0_16] : memref<4x128x32xbf16, #tpu.memory_space<vmem>>, vector<1x128x32xbf16>
    %17 = vector.shape_cast %16 : vector<1x128x32xbf16> to vector<128x32xbf16>
    %c0_17 = arith.constant 0 : index
    %c0_18 = arith.constant 0 : index
    %c0_19 = arith.constant 0 : index
    %18 = vector.load %arg10[%c0_17, %c0_18, %c0_19] : memref<4x32x128xbf16, #tpu.memory_space<vmem>>, vector<1x32x128xbf16>
    %19 = vector.shape_cast %18 : vector<1x32x128xbf16> to vector<32x128xbf16>
    %cst_20 = arith.constant dense<0.000000e+00> : vector<16x32xf32>
    %20 = tpu.matmul %8, %13, %cst_20 {dimension_numbers = #tpu.dot_dimension_numbers<[1], [0], [0], [1], [0, 0, 1, 1], [], []>} : vector<16x128xbf16>, vector<128x32xbf16>, vector<16x32xf32> -> vector<16x32xf32>
    %c0_21 = arith.constant 0 : index
    %c0_22 = arith.constant 0 : index
    %c0_23 = arith.constant 0 : index
    %21 = vector.load %arg7[%c0_21, %c0_22, %c0_23] : memref<4x1x32xf32, #tpu.memory_space<vmem>>, vector<1x1x32xf32>
    %22 = vector.shape_cast %21 : vector<1x1x32xf32> to vector<1x32xf32>
    %23 = vector.broadcast %22 : vector<1x32xf32> to vector<16x32xf32>
    %24 = arith.addf %20, %23 : vector<16x32xf32>
    %cst_24 = arith.constant 0.176776692 : f32
    %25 = vector.broadcast %cst_24 : f32 to vector<16x32xf32>
    %26 = arith.mulf %24, %25 : vector<16x32xf32>
    %27 = arith.truncf %26 : vector<16x32xf32> to vector<16x32xbf16>
    %cst_25 = arith.constant dense<0.000000e+00> : vector<16x32xf32>
    %28 = tpu.matmul %8, %15, %cst_25 {dimension_numbers = #tpu.dot_dimension_numbers<[1], [0], [0], [1], [0, 0, 1, 1], [], []>} : vector<16x128xbf16>, vector<128x32xbf16>, vector<16x32xf32> -> vector<16x32xf32>
    %c0_26 = arith.constant 0 : index
    %c0_27 = arith.constant 0 : index
    %c0_28 = arith.constant 0 : index
    %29 = vector.load %arg8[%c0_26, %c0_27, %c0_28] : memref<4x1x32xf32, #tpu.memory_space<vmem>>, vector<1x1x32xf32>
    %30 = vector.shape_cast %29 : vector<1x1x32xf32> to vector<1x32xf32>
    %31 = vector.broadcast %30 : vector<1x32xf32> to vector<16x32xf32>
    %32 = arith.addf %28, %31 : vector<16x32xf32>
    %33 = arith.truncf %32 : vector<16x32xf32> to vector<16x32xbf16>
    %cst_29 = arith.constant dense<0.000000e+00> : vector<16x32xf32>
    %34 = tpu.matmul %9, %15, %cst_29 {dimension_numbers = #tpu.dot_dimension_numbers<[1], [0], [0], [1], [0, 0, 1, 1], [], []>} : vector<16x128xbf16>, vector<128x32xbf16>, vector<16x32xf32> -> vector<16x32xf32>
    %c0_30 = arith.constant 0 : index
    %c0_31 = arith.constant 0 : index
    %c0_32 = arith.constant 0 : index
    %35 = vector.load %arg8[%c0_30, %c0_31, %c0_32] : memref<4x1x32xf32, #tpu.memory_space<vmem>>, vector<1x1x32xf32>
    %36 = vector.shape_cast %35 : vector<1x1x32xf32> to vector<1x32xf32>
    %37 = vector.broadcast %36 : vector<1x32xf32> to vector<16x32xf32>
    %38 = arith.addf %34, %37 : vector<16x32xf32>
    %39 = arith.truncf %38 : vector<16x32xf32> to vector<16x32xbf16>
    %cst_33 = arith.constant dense<0.000000e+00> : vector<16x32xf32>
    %40 = tpu.matmul %8, %17, %cst_33 {dimension_numbers = #tpu.dot_dimension_numbers<[1], [0], [0], [1], [0, 0, 1, 1], [], []>} : vector<16x128xbf16>, vector<128x32xbf16>, vector<16x32xf32> -> vector<16x32xf32>
    %c0_34 = arith.constant 0 : index
    %c0_35 = arith.constant 0 : index
    %c0_36 = arith.constant 0 : index
    %41 = vector.load %arg9[%c0_34, %c0_35, %c0_36] : memref<4x1x32xf32, #tpu.memory_space<vmem>>, vector<1x1x32xf32>
    %42 = vector.shape_cast %41 : vector<1x1x32xf32> to vector<1x32xf32>
    %43 = vector.broadcast %42 : vector<1x32xf32> to vector<16x32xf32>
    %44 = arith.addf %40, %43 : vector<16x32xf32>
    %45 = arith.truncf %44 : vector<16x32xf32> to vector<16x32xbf16>
    %cst_37 = arith.constant dense<0.000000e+00> : vector<16x32xf32>
    %46 = tpu.matmul %9, %17, %cst_37 {dimension_numbers = #tpu.dot_dimension_numbers<[1], [0], [0], [1], [0, 0, 1, 1], [], []>} : vector<16x128xbf16>, vector<128x32xbf16>, vector<16x32xf32> -> vector<16x32xf32>
    %c0_38 = arith.constant 0 : index
    %c0_39 = arith.constant 0 : index
    %c0_40 = arith.constant 0 : index
    %47 = vector.load %arg9[%c0_38, %c0_39, %c0_40] : memref<4x1x32xf32, #tpu.memory_space<vmem>>, vector<1x1x32xf32>
    %48 = vector.shape_cast %47 : vector<1x1x32xf32> to vector<1x32xf32>
    %49 = vector.broadcast %48 : vector<1x32xf32> to vector<16x32xf32>
    %50 = arith.addf %46, %49 : vector<16x32xf32>
    %51 = arith.truncf %50 : vector<16x32xf32> to vector<16x32xbf16>
    %52 = vector.extract_strided_slice %27 {offsets = [0, 0], sizes = [8, 32], strides = [1, 1]} : vector<16x32xbf16> to vector<8x32xbf16>
    %53 = vector.extract_strided_slice %33 {offsets = [0, 0], sizes = [8, 32], strides = [1, 1]} : vector<16x32xbf16> to vector<8x32xbf16>
    %cst_41 = arith.constant dense<0.000000e+00> : vector<8x8xf32>
    %54 = tpu.matmul %52, %53, %cst_41 {dimension_numbers = #tpu.dot_dimension_numbers<[1], [1], [0], [0], [0, 0, 1, 0], [], []>} : vector<8x32xbf16>, vector<8x32xbf16>, vector<8x8xf32> -> vector<8x8xf32>
    %55 = vector.extract_strided_slice %27 {offsets = [0, 0], sizes = [8, 32], strides = [1, 1]} : vector<16x32xbf16> to vector<8x32xbf16>
    %56 = vector.extract_strided_slice %39 {offsets = [0, 0], sizes = [8, 32], strides = [1, 1]} : vector<16x32xbf16> to vector<8x32xbf16>
    %cst_42 = arith.constant dense<0.000000e+00> : vector<8x8xf32>
    %57 = tpu.matmul %55, %56, %cst_42 {dimension_numbers = #tpu.dot_dimension_numbers<[1], [1], [0], [0], [0, 0, 1, 0], [], []>} : vector<8x32xbf16>, vector<8x32xbf16>, vector<8x8xf32> -> vector<8x8xf32>
    %cst_43 = arith.constant dense<0xFF800000> : vector<8xf32>
    %58 = vector.multi_reduction <maximumf>, %54, %cst_43 [1] : vector<8x8xf32> to vector<8xf32>
    %59 = vector.shape_cast %58 : vector<8xf32> to vector<8x1xf32>
    %cst_44 = arith.constant dense<0xFF800000> : vector<8xf32>
    %60 = vector.multi_reduction <maximumf>, %57, %cst_44 [1] : vector<8x8xf32> to vector<8xf32>
    %61 = vector.shape_cast %60 : vector<8xf32> to vector<8x1xf32>
    %62 = arith.maximumf %59, %61 : vector<8x1xf32>
    %63 = vector.broadcast %62 : vector<8x1xf32> to vector<8x8xf32>
    %64 = arith.subf %54, %63 : vector<8x8xf32>
    %65 = math.exp %64 : vector<8x8xf32>
    %66 = vector.broadcast %62 : vector<8x1xf32> to vector<8x8xf32>
    %67 = arith.subf %57, %66 : vector<8x8xf32>
    %68 = math.exp %67 : vector<8x8xf32>
    %cst_45 = arith.constant dense<0.000000e+00> : vector<8xf32>
    %69 = vector.multi_reduction <add>, %65, %cst_45 [1] : vector<8x8xf32> to vector<8xf32>
    %70 = vector.shape_cast %69 : vector<8xf32> to vector<8x1xf32>
    %cst_46 = arith.constant dense<0.000000e+00> : vector<8xf32>
    %71 = vector.multi_reduction <add>, %68, %cst_46 [1] : vector<8x8xf32> to vector<8xf32>
    %72 = vector.shape_cast %71 : vector<8xf32> to vector<8x1xf32>
    %73 = arith.addf %70, %72 : vector<8x1xf32>
    %74 = arith.truncf %65 : vector<8x8xf32> to vector<8x8xbf16>
    %75 = vector.extract_strided_slice %45 {offsets = [0, 0], sizes = [8, 32], strides = [1, 1]} : vector<16x32xbf16> to vector<8x32xbf16>
    %cst_47 = arith.constant dense<0.000000e+00> : vector<8x32xf32>
    %76 = tpu.matmul %74, %75, %cst_47 {dimension_numbers = #tpu.dot_dimension_numbers<[1], [0], [0], [1], [0, 0, 1, 1], [], []>} : vector<8x8xbf16>, vector<8x32xbf16>, vector<8x32xf32> -> vector<8x32xf32>
    %77 = arith.truncf %68 : vector<8x8xf32> to vector<8x8xbf16>
    %78 = vector.extract_strided_slice %51 {offsets = [0, 0], sizes = [8, 32], strides = [1, 1]} : vector<16x32xbf16> to vector<8x32xbf16>
    %cst_48 = arith.constant dense<0.000000e+00> : vector<8x32xf32>
    %79 = tpu.matmul %77, %78, %cst_48 {dimension_numbers = #tpu.dot_dimension_numbers<[1], [0], [0], [1], [0, 0, 1, 1], [], []>} : vector<8x8xbf16>, vector<8x32xbf16>, vector<8x32xf32> -> vector<8x32xf32>
    %80 = arith.addf %76, %79 : vector<8x32xf32>
    %81 = tpu.reciprocal %73 {approx = true} : vector<8x1xf32> -> vector<8x1xf32>
    %82 = vector.broadcast %81 : vector<8x1xf32> to vector<8x32xf32>
    %83 = arith.mulf %80, %82 : vector<8x32xf32>
    %84 = arith.truncf %83 : vector<8x32xf32> to vector<8x32xbf16>
    %cst_49 = arith.constant dense<0.000000e+00> : vector<8x128xf32>
    %85 = tpu.matmul %84, %19, %cst_49 {dimension_numbers = #tpu.dot_dimension_numbers<[1], [0], [0], [1], [0, 0, 1, 1], [], []>} : vector<8x32xbf16>, vector<32x128xbf16>, vector<8x128xf32> -> vector<8x128xf32>
    %86 = arith.addf %10, %85 : vector<8x128xf32>
    %87 = vector.extract_strided_slice %27 {offsets = [8, 0], sizes = [8, 32], strides = [1, 1]} : vector<16x32xbf16> to vector<8x32xbf16>
    %88 = vector.extract_strided_slice %33 {offsets = [8, 0], sizes = [8, 32], strides = [1, 1]} : vector<16x32xbf16> to vector<8x32xbf16>
    %cst_50 = arith.constant dense<0.000000e+00> : vector<8x8xf32>
    %89 = tpu.matmul %87, %88, %cst_50 {dimension_numbers = #tpu.dot_dimension_numbers<[1], [1], [0], [0], [0, 0, 1, 0], [], []>} : vector<8x32xbf16>, vector<8x32xbf16>, vector<8x8xf32> -> vector<8x8xf32>
    %90 = vector.extract_strided_slice %27 {offsets = [8, 0], sizes = [8, 32], strides = [1, 1]} : vector<16x32xbf16> to vector<8x32xbf16>
    %91 = vector.extract_strided_slice %39 {offsets = [8, 0], sizes = [8, 32], strides = [1, 1]} : vector<16x32xbf16> to vector<8x32xbf16>
    %cst_51 = arith.constant dense<0.000000e+00> : vector<8x8xf32>
    %92 = tpu.matmul %90, %91, %cst_51 {dimension_numbers = #tpu.dot_dimension_numbers<[1], [1], [0], [0], [0, 0, 1, 0], [], []>} : vector<8x32xbf16>, vector<8x32xbf16>, vector<8x8xf32> -> vector<8x8xf32>
    %cst_52 = arith.constant dense<0xFF800000> : vector<8xf32>
    %93 = vector.multi_reduction <maximumf>, %89, %cst_52 [1] : vector<8x8xf32> to vector<8xf32>
    %94 = vector.shape_cast %93 : vector<8xf32> to vector<8x1xf32>
    %cst_53 = arith.constant dense<0xFF800000> : vector<8xf32>
    %95 = vector.multi_reduction <maximumf>, %92, %cst_53 [1] : vector<8x8xf32> to vector<8xf32>
    %96 = vector.shape_cast %95 : vector<8xf32> to vector<8x1xf32>
    %97 = arith.maximumf %94, %96 : vector<8x1xf32>
    %98 = vector.broadcast %97 : vector<8x1xf32> to vector<8x8xf32>
    %99 = arith.subf %89, %98 : vector<8x8xf32>
    %100 = math.exp %99 : vector<8x8xf32>
    %101 = vector.broadcast %97 : vector<8x1xf32> to vector<8x8xf32>
    %102 = arith.subf %92, %101 : vector<8x8xf32>
    %103 = math.exp %102 : vector<8x8xf32>
    %cst_54 = arith.constant dense<0.000000e+00> : vector<8xf32>
    %104 = vector.multi_reduction <add>, %100, %cst_54 [1] : vector<8x8xf32> to vector<8xf32>
    %105 = vector.shape_cast %104 : vector<8xf32> to vector<8x1xf32>
    %cst_55 = arith.constant dense<0.000000e+00> : vector<8xf32>
    %106 = vector.multi_reduction <add>, %103, %cst_55 [1] : vector<8x8xf32> to vector<8xf32>
    %107 = vector.shape_cast %106 : vector<8xf32> to vector<8x1xf32>
    %108 = arith.addf %105, %107 : vector<8x1xf32>
    %109 = arith.truncf %100 : vector<8x8xf32> to vector<8x8xbf16>
    %110 = vector.extract_strided_slice %45 {offsets = [8, 0], sizes = [8, 32], strides = [1, 1]} : vector<16x32xbf16> to vector<8x32xbf16>
    %cst_56 = arith.constant dense<0.000000e+00> : vector<8x32xf32>
    %111 = tpu.matmul %109, %110, %cst_56 {dimension_numbers = #tpu.dot_dimension_numbers<[1], [0], [0], [1], [0, 0, 1, 1], [], []>} : vector<8x8xbf16>, vector<8x32xbf16>, vector<8x32xf32> -> vector<8x32xf32>
    %112 = arith.truncf %103 : vector<8x8xf32> to vector<8x8xbf16>
    %113 = vector.extract_strided_slice %51 {offsets = [8, 0], sizes = [8, 32], strides = [1, 1]} : vector<16x32xbf16> to vector<8x32xbf16>
    %cst_57 = arith.constant dense<0.000000e+00> : vector<8x32xf32>
    %114 = tpu.matmul %112, %113, %cst_57 {dimension_numbers = #tpu.dot_dimension_numbers<[1], [0], [0], [1], [0, 0, 1, 1], [], []>} : vector<8x8xbf16>, vector<8x32xbf16>, vector<8x32xf32> -> vector<8x32xf32>
    %115 = arith.addf %111, %114 : vector<8x32xf32>
    %116 = tpu.reciprocal %108 {approx = true} : vector<8x1xf32> -> vector<8x1xf32>
    %117 = vector.broadcast %116 : vector<8x1xf32> to vector<8x32xf32>
    %118 = arith.mulf %115, %117 : vector<8x32xf32>
    %119 = arith.truncf %118 : vector<8x32xf32> to vector<8x32xbf16>
    %cst_58 = arith.constant dense<0.000000e+00> : vector<8x128xf32>
    %120 = tpu.matmul %119, %19, %cst_58 {dimension_numbers = #tpu.dot_dimension_numbers<[1], [0], [0], [1], [0, 0, 1, 1], [], []>} : vector<8x32xbf16>, vector<32x128xbf16>, vector<8x128xf32> -> vector<8x128xf32>
    %121 = arith.addf %11, %120 : vector<8x128xf32>
    %c1 = arith.constant 1 : index
    %c0_59 = arith.constant 0 : index
    %c0_60 = arith.constant 0 : index
    %122 = vector.load %arg4[%c1, %c0_59, %c0_60] : memref<4x128x32xbf16, #tpu.memory_space<vmem>>, vector<1x128x32xbf16>
    %123 = vector.shape_cast %122 : vector<1x128x32xbf16> to vector<128x32xbf16>
    %c1_61 = arith.constant 1 : index
    %c0_62 = arith.constant 0 : index
    %c0_63 = arith.constant 0 : index
    %124 = vector.load %arg5[%c1_61, %c0_62, %c0_63] : memref<4x128x32xbf16, #tpu.memory_space<vmem>>, vector<1x128x32xbf16>
    %125 = vector.shape_cast %124 : vector<1x128x32xbf16> to vector<128x32xbf16>
    %c1_64 = arith.constant 1 : index
    %c0_65 = arith.constant 0 : index
    %c0_66 = arith.constant 0 : index
    %126 = vector.load %arg6[%c1_64, %c0_65, %c0_66] : memref<4x128x32xbf16, #tpu.memory_space<vmem>>, vector<1x128x32xbf16>
    %127 = vector.shape_cast %126 : vector<1x128x32xbf16> to vector<128x32xbf16>
    %c1_67 = arith.constant 1 : index
    %c0_68 = arith.constant 0 : index
    %c0_69 = arith.constant 0 : index
    %128 = vector.load %arg10[%c1_67, %c0_68, %c0_69] : memref<4x32x128xbf16, #tpu.memory_space<vmem>>, vector<1x32x128xbf16>
    %129 = vector.shape_cast %128 : vector<1x32x128xbf16> to vector<32x128xbf16>
    %cst_70 = arith.constant dense<0.000000e+00> : vector<16x32xf32>
    %130 = tpu.matmul %8, %123, %cst_70 {dimension_numbers = #tpu.dot_dimension_numbers<[1], [0], [0], [1], [0, 0, 1, 1], [], []>} : vector<16x128xbf16>, vector<128x32xbf16>, vector<16x32xf32> -> vector<16x32xf32>
    %c1_71 = arith.constant 1 : index
    %c0_72 = arith.constant 0 : index
    %c0_73 = arith.constant 0 : index
    %131 = vector.load %arg7[%c1_71, %c0_72, %c0_73] : memref<4x1x32xf32, #tpu.memory_space<vmem>>, vector<1x1x32xf32>
    %132 = vector.shape_cast %131 : vector<1x1x32xf32> to vector<1x32xf32>
    %133 = vector.broadcast %132 : vector<1x32xf32> to vector<16x32xf32>
    %134 = arith.addf %130, %133 : vector<16x32xf32>
    %cst_74 = arith.constant 0.176776692 : f32
    %135 = vector.broadcast %cst_74 : f32 to vector<16x32xf32>
    %136 = arith.mulf %134, %135 : vector<16x32xf32>
    %137 = arith.truncf %136 : vector<16x32xf32> to vector<16x32xbf16>
    %cst_75 = arith.constant dense<0.000000e+00> : vector<16x32xf32>
    %138 = tpu.matmul %8, %125, %cst_75 {dimension_numbers = #tpu.dot_dimension_numbers<[1], [0], [0], [1], [0, 0, 1, 1], [], []>} : vector<16x128xbf16>, vector<128x32xbf16>, vector<16x32xf32> -> vector<16x32xf32>
    %c1_76 = arith.constant 1 : index
    %c0_77 = arith.constant 0 : index
    %c0_78 = arith.constant 0 : index
    %139 = vector.load %arg8[%c1_76, %c0_77, %c0_78] : memref<4x1x32xf32, #tpu.memory_space<vmem>>, vector<1x1x32xf32>
    %140 = vector.shape_cast %139 : vector<1x1x32xf32> to vector<1x32xf32>
    %141 = vector.broadcast %140 : vector<1x32xf32> to vector<16x32xf32>
    %142 = arith.addf %138, %141 : vector<16x32xf32>
    %143 = arith.truncf %142 : vector<16x32xf32> to vector<16x32xbf16>
    %cst_79 = arith.constant dense<0.000000e+00> : vector<16x32xf32>
    %144 = tpu.matmul %9, %125, %cst_79 {dimension_numbers = #tpu.dot_dimension_numbers<[1], [0], [0], [1], [0, 0, 1, 1], [], []>} : vector<16x128xbf16>, vector<128x32xbf16>, vector<16x32xf32> -> vector<16x32xf32>
    %c1_80 = arith.constant 1 : index
    %c0_81 = arith.constant 0 : index
    %c0_82 = arith.constant 0 : index
    %145 = vector.load %arg8[%c1_80, %c0_81, %c0_82] : memref<4x1x32xf32, #tpu.memory_space<vmem>>, vector<1x1x32xf32>
    %146 = vector.shape_cast %145 : vector<1x1x32xf32> to vector<1x32xf32>
    %147 = vector.broadcast %146 : vector<1x32xf32> to vector<16x32xf32>
    %148 = arith.addf %144, %147 : vector<16x32xf32>
    %149 = arith.truncf %148 : vector<16x32xf32> to vector<16x32xbf16>
    %cst_83 = arith.constant dense<0.000000e+00> : vector<16x32xf32>
    %150 = tpu.matmul %8, %127, %cst_83 {dimension_numbers = #tpu.dot_dimension_numbers<[1], [0], [0], [1], [0, 0, 1, 1], [], []>} : vector<16x128xbf16>, vector<128x32xbf16>, vector<16x32xf32> -> vector<16x32xf32>
    %c1_84 = arith.constant 1 : index
    %c0_85 = arith.constant 0 : index
    %c0_86 = arith.constant 0 : index
    %151 = vector.load %arg9[%c1_84, %c0_85, %c0_86] : memref<4x1x32xf32, #tpu.memory_space<vmem>>, vector<1x1x32xf32>
    %152 = vector.shape_cast %151 : vector<1x1x32xf32> to vector<1x32xf32>
    %153 = vector.broadcast %152 : vector<1x32xf32> to vector<16x32xf32>
    %154 = arith.addf %150, %153 : vector<16x32xf32>
    %155 = arith.truncf %154 : vector<16x32xf32> to vector<16x32xbf16>
    %cst_87 = arith.constant dense<0.000000e+00> : vector<16x32xf32>
    %156 = tpu.matmul %9, %127, %cst_87 {dimension_numbers = #tpu.dot_dimension_numbers<[1], [0], [0], [1], [0, 0, 1, 1], [], []>} : vector<16x128xbf16>, vector<128x32xbf16>, vector<16x32xf32> -> vector<16x32xf32>
    %c1_88 = arith.constant 1 : index
    %c0_89 = arith.constant 0 : index
    %c0_90 = arith.constant 0 : index
    %157 = vector.load %arg9[%c1_88, %c0_89, %c0_90] : memref<4x1x32xf32, #tpu.memory_space<vmem>>, vector<1x1x32xf32>
    %158 = vector.shape_cast %157 : vector<1x1x32xf32> to vector<1x32xf32>
    %159 = vector.broadcast %158 : vector<1x32xf32> to vector<16x32xf32>
    %160 = arith.addf %156, %159 : vector<16x32xf32>
    %161 = arith.truncf %160 : vector<16x32xf32> to vector<16x32xbf16>
    %162 = vector.extract_strided_slice %137 {offsets = [0, 0], sizes = [8, 32], strides = [1, 1]} : vector<16x32xbf16> to vector<8x32xbf16>
    %163 = vector.extract_strided_slice %143 {offsets = [0, 0], sizes = [8, 32], strides = [1, 1]} : vector<16x32xbf16> to vector<8x32xbf16>
    %cst_91 = arith.constant dense<0.000000e+00> : vector<8x8xf32>
    %164 = tpu.matmul %162, %163, %cst_91 {dimension_numbers = #tpu.dot_dimension_numbers<[1], [1], [0], [0], [0, 0, 1, 0], [], []>} : vector<8x32xbf16>, vector<8x32xbf16>, vector<8x8xf32> -> vector<8x8xf32>
    %165 = vector.extract_strided_slice %137 {offsets = [0, 0], sizes = [8, 32], strides = [1, 1]} : vector<16x32xbf16> to vector<8x32xbf16>
    %166 = vector.extract_strided_slice %149 {offsets = [0, 0], sizes = [8, 32], strides = [1, 1]} : vector<16x32xbf16> to vector<8x32xbf16>
    %cst_92 = arith.constant dense<0.000000e+00> : vector<8x8xf32>
    %167 = tpu.matmul %165, %166, %cst_92 {dimension_numbers = #tpu.dot_dimension_numbers<[1], [1], [0], [0], [0, 0, 1, 0], [], []>} : vector<8x32xbf16>, vector<8x32xbf16>, vector<8x8xf32> -> vector<8x8xf32>
    %cst_93 = arith.constant dense<0xFF800000> : vector<8xf32>
    %168 = vector.multi_reduction <maximumf>, %164, %cst_93 [1] : vector<8x8xf32> to vector<8xf32>
    %169 = vector.shape_cast %168 : vector<8xf32> to vector<8x1xf32>
    %cst_94 = arith.constant dense<0xFF800000> : vector<8xf32>
    %170 = vector.multi_reduction <maximumf>, %167, %cst_94 [1] : vector<8x8xf32> to vector<8xf32>
    %171 = vector.shape_cast %170 : vector<8xf32> to vector<8x1xf32>
    %172 = arith.maximumf %169, %171 : vector<8x1xf32>
    %173 = vector.broadcast %172 : vector<8x1xf32> to vector<8x8xf32>
    %174 = arith.subf %164, %173 : vector<8x8xf32>
    %175 = math.exp %174 : vector<8x8xf32>
    %176 = vector.broadcast %172 : vector<8x1xf32> to vector<8x8xf32>
    %177 = arith.subf %167, %176 : vector<8x8xf32>
    %178 = math.exp %177 : vector<8x8xf32>
    %cst_95 = arith.constant dense<0.000000e+00> : vector<8xf32>
    %179 = vector.multi_reduction <add>, %175, %cst_95 [1] : vector<8x8xf32> to vector<8xf32>
    %180 = vector.shape_cast %179 : vector<8xf32> to vector<8x1xf32>
    %cst_96 = arith.constant dense<0.000000e+00> : vector<8xf32>
    %181 = vector.multi_reduction <add>, %178, %cst_96 [1] : vector<8x8xf32> to vector<8xf32>
    %182 = vector.shape_cast %181 : vector<8xf32> to vector<8x1xf32>
    %183 = arith.addf %180, %182 : vector<8x1xf32>
    %184 = arith.truncf %175 : vector<8x8xf32> to vector<8x8xbf16>
    %185 = vector.extract_strided_slice %155 {offsets = [0, 0], sizes = [8, 32], strides = [1, 1]} : vector<16x32xbf16> to vector<8x32xbf16>
    %cst_97 = arith.constant dense<0.000000e+00> : vector<8x32xf32>
    %186 = tpu.matmul %184, %185, %cst_97 {dimension_numbers = #tpu.dot_dimension_numbers<[1], [0], [0], [1], [0, 0, 1, 1], [], []>} : vector<8x8xbf16>, vector<8x32xbf16>, vector<8x32xf32> -> vector<8x32xf32>
    %187 = arith.truncf %178 : vector<8x8xf32> to vector<8x8xbf16>
    %188 = vector.extract_strided_slice %161 {offsets = [0, 0], sizes = [8, 32], strides = [1, 1]} : vector<16x32xbf16> to vector<8x32xbf16>
    %cst_98 = arith.constant dense<0.000000e+00> : vector<8x32xf32>
    %189 = tpu.matmul %187, %188, %cst_98 {dimension_numbers = #tpu.dot_dimension_numbers<[1], [0], [0], [1], [0, 0, 1, 1], [], []>} : vector<8x8xbf16>, vector<8x32xbf16>, vector<8x32xf32> -> vector<8x32xf32>
    %190 = arith.addf %186, %189 : vector<8x32xf32>
    %191 = tpu.reciprocal %183 {approx = true} : vector<8x1xf32> -> vector<8x1xf32>
    %192 = vector.broadcast %191 : vector<8x1xf32> to vector<8x32xf32>
    %193 = arith.mulf %190, %192 : vector<8x32xf32>
    %194 = arith.truncf %193 : vector<8x32xf32> to vector<8x32xbf16>
    %cst_99 = arith.constant dense<0.000000e+00> : vector<8x128xf32>
    %195 = tpu.matmul %194, %129, %cst_99 {dimension_numbers = #tpu.dot_dimension_numbers<[1], [0], [0], [1], [0, 0, 1, 1], [], []>} : vector<8x32xbf16>, vector<32x128xbf16>, vector<8x128xf32> -> vector<8x128xf32>
    %196 = arith.addf %86, %195 : vector<8x128xf32>
    %197 = vector.extract_strided_slice %137 {offsets = [8, 0], sizes = [8, 32], strides = [1, 1]} : vector<16x32xbf16> to vector<8x32xbf16>
    %198 = vector.extract_strided_slice %143 {offsets = [8, 0], sizes = [8, 32], strides = [1, 1]} : vector<16x32xbf16> to vector<8x32xbf16>
    %cst_100 = arith.constant dense<0.000000e+00> : vector<8x8xf32>
    %199 = tpu.matmul %197, %198, %cst_100 {dimension_numbers = #tpu.dot_dimension_numbers<[1], [1], [0], [0], [0, 0, 1, 0], [], []>} : vector<8x32xbf16>, vector<8x32xbf16>, vector<8x8xf32> -> vector<8x8xf32>
    %200 = vector.extract_strided_slice %137 {offsets = [8, 0], sizes = [8, 32], strides = [1, 1]} : vector<16x32xbf16> to vector<8x32xbf16>
    %201 = vector.extract_strided_slice %149 {offsets = [8, 0], sizes = [8, 32], strides = [1, 1]} : vector<16x32xbf16> to vector<8x32xbf16>
    %cst_101 = arith.constant dense<0.000000e+00> : vector<8x8xf32>
    %202 = tpu.matmul %200, %201, %cst_101 {dimension_numbers = #tpu.dot_dimension_numbers<[1], [1], [0], [0], [0, 0, 1, 0], [], []>} : vector<8x32xbf16>, vector<8x32xbf16>, vector<8x8xf32> -> vector<8x8xf32>
    %cst_102 = arith.constant dense<0xFF800000> : vector<8xf32>
    %203 = vector.multi_reduction <maximumf>, %199, %cst_102 [1] : vector<8x8xf32> to vector<8xf32>
    %204 = vector.shape_cast %203 : vector<8xf32> to vector<8x1xf32>
    %cst_103 = arith.constant dense<0xFF800000> : vector<8xf32>
    %205 = vector.multi_reduction <maximumf>, %202, %cst_103 [1] : vector<8x8xf32> to vector<8xf32>
    %206 = vector.shape_cast %205 : vector<8xf32> to vector<8x1xf32>
    %207 = arith.maximumf %204, %206 : vector<8x1xf32>
    %208 = vector.broadcast %207 : vector<8x1xf32> to vector<8x8xf32>
    %209 = arith.subf %199, %208 : vector<8x8xf32>
    %210 = math.exp %209 : vector<8x8xf32>
    %211 = vector.broadcast %207 : vector<8x1xf32> to vector<8x8xf32>
    %212 = arith.subf %202, %211 : vector<8x8xf32>
    %213 = math.exp %212 : vector<8x8xf32>
    %cst_104 = arith.constant dense<0.000000e+00> : vector<8xf32>
    %214 = vector.multi_reduction <add>, %210, %cst_104 [1] : vector<8x8xf32> to vector<8xf32>
    %215 = vector.shape_cast %214 : vector<8xf32> to vector<8x1xf32>
    %cst_105 = arith.constant dense<0.000000e+00> : vector<8xf32>
    %216 = vector.multi_reduction <add>, %213, %cst_105 [1] : vector<8x8xf32> to vector<8xf32>
    %217 = vector.shape_cast %216 : vector<8xf32> to vector<8x1xf32>
    %218 = arith.addf %215, %217 : vector<8x1xf32>
    %219 = arith.truncf %210 : vector<8x8xf32> to vector<8x8xbf16>
    %220 = vector.extract_strided_slice %155 {offsets = [8, 0], sizes = [8, 32], strides = [1, 1]} : vector<16x32xbf16> to vector<8x32xbf16>
    %cst_106 = arith.constant dense<0.000000e+00> : vector<8x32xf32>
    %221 = tpu.matmul %219, %220, %cst_106 {dimension_numbers = #tpu.dot_dimension_numbers<[1], [0], [0], [1], [0, 0, 1, 1], [], []>} : vector<8x8xbf16>, vector<8x32xbf16>, vector<8x32xf32> -> vector<8x32xf32>
    %222 = arith.truncf %213 : vector<8x8xf32> to vector<8x8xbf16>
    %223 = vector.extract_strided_slice %161 {offsets = [8, 0], sizes = [8, 32], strides = [1, 1]} : vector<16x32xbf16> to vector<8x32xbf16>
    %cst_107 = arith.constant dense<0.000000e+00> : vector<8x32xf32>
    %224 = tpu.matmul %222, %223, %cst_107 {dimension_numbers = #tpu.dot_dimension_numbers<[1], [0], [0], [1], [0, 0, 1, 1], [], []>} : vector<8x8xbf16>, vector<8x32xbf16>, vector<8x32xf32> -> vector<8x32xf32>
    %225 = arith.addf %221, %224 : vector<8x32xf32>
    %226 = tpu.reciprocal %218 {approx = true} : vector<8x1xf32> -> vector<8x1xf32>
    %227 = vector.broadcast %226 : vector<8x1xf32> to vector<8x32xf32>
    %228 = arith.mulf %225, %227 : vector<8x32xf32>
    %229 = arith.truncf %228 : vector<8x32xf32> to vector<8x32xbf16>
    %cst_108 = arith.constant dense<0.000000e+00> : vector<8x128xf32>
    %230 = tpu.matmul %229, %129, %cst_108 {dimension_numbers = #tpu.dot_dimension_numbers<[1], [0], [0], [1], [0, 0, 1, 1], [], []>} : vector<8x32xbf16>, vector<32x128xbf16>, vector<8x128xf32> -> vector<8x128xf32>
    %231 = arith.addf %121, %230 : vector<8x128xf32>
    %c2 = arith.constant 2 : index
    %c0_109 = arith.constant 0 : index
    %c0_110 = arith.constant 0 : index
    %232 = vector.load %arg4[%c2, %c0_109, %c0_110] : memref<4x128x32xbf16, #tpu.memory_space<vmem>>, vector<1x128x32xbf16>
    %233 = vector.shape_cast %232 : vector<1x128x32xbf16> to vector<128x32xbf16>
    %c2_111 = arith.constant 2 : index
    %c0_112 = arith.constant 0 : index
    %c0_113 = arith.constant 0 : index
    %234 = vector.load %arg5[%c2_111, %c0_112, %c0_113] : memref<4x128x32xbf16, #tpu.memory_space<vmem>>, vector<1x128x32xbf16>
    %235 = vector.shape_cast %234 : vector<1x128x32xbf16> to vector<128x32xbf16>
    %c2_114 = arith.constant 2 : index
    %c0_115 = arith.constant 0 : index
    %c0_116 = arith.constant 0 : index
    %236 = vector.load %arg6[%c2_114, %c0_115, %c0_116] : memref<4x128x32xbf16, #tpu.memory_space<vmem>>, vector<1x128x32xbf16>
    %237 = vector.shape_cast %236 : vector<1x128x32xbf16> to vector<128x32xbf16>
    %c2_117 = arith.constant 2 : index
    %c0_118 = arith.constant 0 : index
    %c0_119 = arith.constant 0 : index
    %238 = vector.load %arg10[%c2_117, %c0_118, %c0_119] : memref<4x32x128xbf16, #tpu.memory_space<vmem>>, vector<1x32x128xbf16>
    %239 = vector.shape_cast %238 : vector<1x32x128xbf16> to vector<32x128xbf16>
    %cst_120 = arith.constant dense<0.000000e+00> : vector<16x32xf32>
    %240 = tpu.matmul %8, %233, %cst_120 {dimension_numbers = #tpu.dot_dimension_numbers<[1], [0], [0], [1], [0, 0, 1, 1], [], []>} : vector<16x128xbf16>, vector<128x32xbf16>, vector<16x32xf32> -> vector<16x32xf32>
    %c2_121 = arith.constant 2 : index
    %c0_122 = arith.constant 0 : index
    %c0_123 = arith.constant 0 : index
    %241 = vector.load %arg7[%c2_121, %c0_122, %c0_123] : memref<4x1x32xf32, #tpu.memory_space<vmem>>, vector<1x1x32xf32>
    %242 = vector.shape_cast %241 : vector<1x1x32xf32> to vector<1x32xf32>
    %243 = vector.broadcast %242 : vector<1x32xf32> to vector<16x32xf32>
    %244 = arith.addf %240, %243 : vector<16x32xf32>
    %cst_124 = arith.constant 0.176776692 : f32
    %245 = vector.broadcast %cst_124 : f32 to vector<16x32xf32>
    %246 = arith.mulf %244, %245 : vector<16x32xf32>
    %247 = arith.truncf %246 : vector<16x32xf32> to vector<16x32xbf16>
    %cst_125 = arith.constant dense<0.000000e+00> : vector<16x32xf32>
    %248 = tpu.matmul %8, %235, %cst_125 {dimension_numbers = #tpu.dot_dimension_numbers<[1], [0], [0], [1], [0, 0, 1, 1], [], []>} : vector<16x128xbf16>, vector<128x32xbf16>, vector<16x32xf32> -> vector<16x32xf32>
    %c2_126 = arith.constant 2 : index
    %c0_127 = arith.constant 0 : index
    %c0_128 = arith.constant 0 : index
    %249 = vector.load %arg8[%c2_126, %c0_127, %c0_128] : memref<4x1x32xf32, #tpu.memory_space<vmem>>, vector<1x1x32xf32>
    %250 = vector.shape_cast %249 : vector<1x1x32xf32> to vector<1x32xf32>
    %251 = vector.broadcast %250 : vector<1x32xf32> to vector<16x32xf32>
    %252 = arith.addf %248, %251 : vector<16x32xf32>
    %253 = arith.truncf %252 : vector<16x32xf32> to vector<16x32xbf16>
    %cst_129 = arith.constant dense<0.000000e+00> : vector<16x32xf32>
    %254 = tpu.matmul %9, %235, %cst_129 {dimension_numbers = #tpu.dot_dimension_numbers<[1], [0], [0], [1], [0, 0, 1, 1], [], []>} : vector<16x128xbf16>, vector<128x32xbf16>, vector<16x32xf32> -> vector<16x32xf32>
    %c2_130 = arith.constant 2 : index
    %c0_131 = arith.constant 0 : index
    %c0_132 = arith.constant 0 : index
    %255 = vector.load %arg8[%c2_130, %c0_131, %c0_132] : memref<4x1x32xf32, #tpu.memory_space<vmem>>, vector<1x1x32xf32>
    %256 = vector.shape_cast %255 : vector<1x1x32xf32> to vector<1x32xf32>
    %257 = vector.broadcast %256 : vector<1x32xf32> to vector<16x32xf32>
    %258 = arith.addf %254, %257 : vector<16x32xf32>
    %259 = arith.truncf %258 : vector<16x32xf32> to vector<16x32xbf16>
    %cst_133 = arith.constant dense<0.000000e+00> : vector<16x32xf32>
    %260 = tpu.matmul %8, %237, %cst_133 {dimension_numbers = #tpu.dot_dimension_numbers<[1], [0], [0], [1], [0, 0, 1, 1], [], []>} : vector<16x128xbf16>, vector<128x32xbf16>, vector<16x32xf32> -> vector<16x32xf32>
    %c2_134 = arith.constant 2 : index
    %c0_135 = arith.constant 0 : index
    %c0_136 = arith.constant 0 : index
    %261 = vector.load %arg9[%c2_134, %c0_135, %c0_136] : memref<4x1x32xf32, #tpu.memory_space<vmem>>, vector<1x1x32xf32>
    %262 = vector.shape_cast %261 : vector<1x1x32xf32> to vector<1x32xf32>
    %263 = vector.broadcast %262 : vector<1x32xf32> to vector<16x32xf32>
    %264 = arith.addf %260, %263 : vector<16x32xf32>
    %265 = arith.truncf %264 : vector<16x32xf32> to vector<16x32xbf16>
    %cst_137 = arith.constant dense<0.000000e+00> : vector<16x32xf32>
    %266 = tpu.matmul %9, %237, %cst_137 {dimension_numbers = #tpu.dot_dimension_numbers<[1], [0], [0], [1], [0, 0, 1, 1], [], []>} : vector<16x128xbf16>, vector<128x32xbf16>, vector<16x32xf32> -> vector<16x32xf32>
    %c2_138 = arith.constant 2 : index
    %c0_139 = arith.constant 0 : index
    %c0_140 = arith.constant 0 : index
    %267 = vector.load %arg9[%c2_138, %c0_139, %c0_140] : memref<4x1x32xf32, #tpu.memory_space<vmem>>, vector<1x1x32xf32>
    %268 = vector.shape_cast %267 : vector<1x1x32xf32> to vector<1x32xf32>
    %269 = vector.broadcast %268 : vector<1x32xf32> to vector<16x32xf32>
    %270 = arith.addf %266, %269 : vector<16x32xf32>
    %271 = arith.truncf %270 : vector<16x32xf32> to vector<16x32xbf16>
    %272 = vector.extract_strided_slice %247 {offsets = [0, 0], sizes = [8, 32], strides = [1, 1]} : vector<16x32xbf16> to vector<8x32xbf16>
    %273 = vector.extract_strided_slice %253 {offsets = [0, 0], sizes = [8, 32], strides = [1, 1]} : vector<16x32xbf16> to vector<8x32xbf16>
    %cst_141 = arith.constant dense<0.000000e+00> : vector<8x8xf32>
    %274 = tpu.matmul %272, %273, %cst_141 {dimension_numbers = #tpu.dot_dimension_numbers<[1], [1], [0], [0], [0, 0, 1, 0], [], []>} : vector<8x32xbf16>, vector<8x32xbf16>, vector<8x8xf32> -> vector<8x8xf32>
    %275 = vector.extract_strided_slice %247 {offsets = [0, 0], sizes = [8, 32], strides = [1, 1]} : vector<16x32xbf16> to vector<8x32xbf16>
    %276 = vector.extract_strided_slice %259 {offsets = [0, 0], sizes = [8, 32], strides = [1, 1]} : vector<16x32xbf16> to vector<8x32xbf16>
    %cst_142 = arith.constant dense<0.000000e+00> : vector<8x8xf32>
    %277 = tpu.matmul %275, %276, %cst_142 {dimension_numbers = #tpu.dot_dimension_numbers<[1], [1], [0], [0], [0, 0, 1, 0], [], []>} : vector<8x32xbf16>, vector<8x32xbf16>, vector<8x8xf32> -> vector<8x8xf32>
    %cst_143 = arith.constant dense<0xFF800000> : vector<8xf32>
    %278 = vector.multi_reduction <maximumf>, %274, %cst_143 [1] : vector<8x8xf32> to vector<8xf32>
    %279 = vector.shape_cast %278 : vector<8xf32> to vector<8x1xf32>
    %cst_144 = arith.constant dense<0xFF800000> : vector<8xf32>
    %280 = vector.multi_reduction <maximumf>, %277, %cst_144 [1] : vector<8x8xf32> to vector<8xf32>
    %281 = vector.shape_cast %280 : vector<8xf32> to vector<8x1xf32>
    %282 = arith.maximumf %279, %281 : vector<8x1xf32>
    %283 = vector.broadcast %282 : vector<8x1xf32> to vector<8x8xf32>
    %284 = arith.subf %274, %283 : vector<8x8xf32>
    %285 = math.exp %284 : vector<8x8xf32>
    %286 = vector.broadcast %282 : vector<8x1xf32> to vector<8x8xf32>
    %287 = arith.subf %277, %286 : vector<8x8xf32>
    %288 = math.exp %287 : vector<8x8xf32>
    %cst_145 = arith.constant dense<0.000000e+00> : vector<8xf32>
    %289 = vector.multi_reduction <add>, %285, %cst_145 [1] : vector<8x8xf32> to vector<8xf32>
    %290 = vector.shape_cast %289 : vector<8xf32> to vector<8x1xf32>
    %cst_146 = arith.constant dense<0.000000e+00> : vector<8xf32>
    %291 = vector.multi_reduction <add>, %288, %cst_146 [1] : vector<8x8xf32> to vector<8xf32>
    %292 = vector.shape_cast %291 : vector<8xf32> to vector<8x1xf32>
    %293 = arith.addf %290, %292 : vector<8x1xf32>
    %294 = arith.truncf %285 : vector<8x8xf32> to vector<8x8xbf16>
    %295 = vector.extract_strided_slice %265 {offsets = [0, 0], sizes = [8, 32], strides = [1, 1]} : vector<16x32xbf16> to vector<8x32xbf16>
    %cst_147 = arith.constant dense<0.000000e+00> : vector<8x32xf32>
    %296 = tpu.matmul %294, %295, %cst_147 {dimension_numbers = #tpu.dot_dimension_numbers<[1], [0], [0], [1], [0, 0, 1, 1], [], []>} : vector<8x8xbf16>, vector<8x32xbf16>, vector<8x32xf32> -> vector<8x32xf32>
    %297 = arith.truncf %288 : vector<8x8xf32> to vector<8x8xbf16>
    %298 = vector.extract_strided_slice %271 {offsets = [0, 0], sizes = [8, 32], strides = [1, 1]} : vector<16x32xbf16> to vector<8x32xbf16>
    %cst_148 = arith.constant dense<0.000000e+00> : vector<8x32xf32>
    %299 = tpu.matmul %297, %298, %cst_148 {dimension_numbers = #tpu.dot_dimension_numbers<[1], [0], [0], [1], [0, 0, 1, 1], [], []>} : vector<8x8xbf16>, vector<8x32xbf16>, vector<8x32xf32> -> vector<8x32xf32>
    %300 = arith.addf %296, %299 : vector<8x32xf32>
    %301 = tpu.reciprocal %293 {approx = true} : vector<8x1xf32> -> vector<8x1xf32>
    %302 = vector.broadcast %301 : vector<8x1xf32> to vector<8x32xf32>
    %303 = arith.mulf %300, %302 : vector<8x32xf32>
    %304 = arith.truncf %303 : vector<8x32xf32> to vector<8x32xbf16>
    %cst_149 = arith.constant dense<0.000000e+00> : vector<8x128xf32>
    %305 = tpu.matmul %304, %239, %cst_149 {dimension_numbers = #tpu.dot_dimension_numbers<[1], [0], [0], [1], [0, 0, 1, 1], [], []>} : vector<8x32xbf16>, vector<32x128xbf16>, vector<8x128xf32> -> vector<8x128xf32>
    %306 = arith.addf %196, %305 : vector<8x128xf32>
    %307 = vector.extract_strided_slice %247 {offsets = [8, 0], sizes = [8, 32], strides = [1, 1]} : vector<16x32xbf16> to vector<8x32xbf16>
    %308 = vector.extract_strided_slice %253 {offsets = [8, 0], sizes = [8, 32], strides = [1, 1]} : vector<16x32xbf16> to vector<8x32xbf16>
    %cst_150 = arith.constant dense<0.000000e+00> : vector<8x8xf32>
    %309 = tpu.matmul %307, %308, %cst_150 {dimension_numbers = #tpu.dot_dimension_numbers<[1], [1], [0], [0], [0, 0, 1, 0], [], []>} : vector<8x32xbf16>, vector<8x32xbf16>, vector<8x8xf32> -> vector<8x8xf32>
    %310 = vector.extract_strided_slice %247 {offsets = [8, 0], sizes = [8, 32], strides = [1, 1]} : vector<16x32xbf16> to vector<8x32xbf16>
    %311 = vector.extract_strided_slice %259 {offsets = [8, 0], sizes = [8, 32], strides = [1, 1]} : vector<16x32xbf16> to vector<8x32xbf16>
    %cst_151 = arith.constant dense<0.000000e+00> : vector<8x8xf32>
    %312 = tpu.matmul %310, %311, %cst_151 {dimension_numbers = #tpu.dot_dimension_numbers<[1], [1], [0], [0], [0, 0, 1, 0], [], []>} : vector<8x32xbf16>, vector<8x32xbf16>, vector<8x8xf32> -> vector<8x8xf32>
    %cst_152 = arith.constant dense<0xFF800000> : vector<8xf32>
    %313 = vector.multi_reduction <maximumf>, %309, %cst_152 [1] : vector<8x8xf32> to vector<8xf32>
    %314 = vector.shape_cast %313 : vector<8xf32> to vector<8x1xf32>
    %cst_153 = arith.constant dense<0xFF800000> : vector<8xf32>
    %315 = vector.multi_reduction <maximumf>, %312, %cst_153 [1] : vector<8x8xf32> to vector<8xf32>
    %316 = vector.shape_cast %315 : vector<8xf32> to vector<8x1xf32>
    %317 = arith.maximumf %314, %316 : vector<8x1xf32>
    %318 = vector.broadcast %317 : vector<8x1xf32> to vector<8x8xf32>
    %319 = arith.subf %309, %318 : vector<8x8xf32>
    %320 = math.exp %319 : vector<8x8xf32>
    %321 = vector.broadcast %317 : vector<8x1xf32> to vector<8x8xf32>
    %322 = arith.subf %312, %321 : vector<8x8xf32>
    %323 = math.exp %322 : vector<8x8xf32>
    %cst_154 = arith.constant dense<0.000000e+00> : vector<8xf32>
    %324 = vector.multi_reduction <add>, %320, %cst_154 [1] : vector<8x8xf32> to vector<8xf32>
    %325 = vector.shape_cast %324 : vector<8xf32> to vector<8x1xf32>
    %cst_155 = arith.constant dense<0.000000e+00> : vector<8xf32>
    %326 = vector.multi_reduction <add>, %323, %cst_155 [1] : vector<8x8xf32> to vector<8xf32>
    %327 = vector.shape_cast %326 : vector<8xf32> to vector<8x1xf32>
    %328 = arith.addf %325, %327 : vector<8x1xf32>
    %329 = arith.truncf %320 : vector<8x8xf32> to vector<8x8xbf16>
    %330 = vector.extract_strided_slice %265 {offsets = [8, 0], sizes = [8, 32], strides = [1, 1]} : vector<16x32xbf16> to vector<8x32xbf16>
    %cst_156 = arith.constant dense<0.000000e+00> : vector<8x32xf32>
    %331 = tpu.matmul %329, %330, %cst_156 {dimension_numbers = #tpu.dot_dimension_numbers<[1], [0], [0], [1], [0, 0, 1, 1], [], []>} : vector<8x8xbf16>, vector<8x32xbf16>, vector<8x32xf32> -> vector<8x32xf32>
    %332 = arith.truncf %323 : vector<8x8xf32> to vector<8x8xbf16>
    %333 = vector.extract_strided_slice %271 {offsets = [8, 0], sizes = [8, 32], strides = [1, 1]} : vector<16x32xbf16> to vector<8x32xbf16>
    %cst_157 = arith.constant dense<0.000000e+00> : vector<8x32xf32>
    %334 = tpu.matmul %332, %333, %cst_157 {dimension_numbers = #tpu.dot_dimension_numbers<[1], [0], [0], [1], [0, 0, 1, 1], [], []>} : vector<8x8xbf16>, vector<8x32xbf16>, vector<8x32xf32> -> vector<8x32xf32>
    %335 = arith.addf %331, %334 : vector<8x32xf32>
    %336 = tpu.reciprocal %328 {approx = true} : vector<8x1xf32> -> vector<8x1xf32>
    %337 = vector.broadcast %336 : vector<8x1xf32> to vector<8x32xf32>
    %338 = arith.mulf %335, %337 : vector<8x32xf32>
    %339 = arith.truncf %338 : vector<8x32xf32> to vector<8x32xbf16>
    %cst_158 = arith.constant dense<0.000000e+00> : vector<8x128xf32>
    %340 = tpu.matmul %339, %239, %cst_158 {dimension_numbers = #tpu.dot_dimension_numbers<[1], [0], [0], [1], [0, 0, 1, 1], [], []>} : vector<8x32xbf16>, vector<32x128xbf16>, vector<8x128xf32> -> vector<8x128xf32>
    %341 = arith.addf %231, %340 : vector<8x128xf32>
    %c3 = arith.constant 3 : index
    %c0_159 = arith.constant 0 : index
    %c0_160 = arith.constant 0 : index
    %342 = vector.load %arg4[%c3, %c0_159, %c0_160] : memref<4x128x32xbf16, #tpu.memory_space<vmem>>, vector<1x128x32xbf16>
    %343 = vector.shape_cast %342 : vector<1x128x32xbf16> to vector<128x32xbf16>
    %c3_161 = arith.constant 3 : index
    %c0_162 = arith.constant 0 : index
    %c0_163 = arith.constant 0 : index
    %344 = vector.load %arg5[%c3_161, %c0_162, %c0_163] : memref<4x128x32xbf16, #tpu.memory_space<vmem>>, vector<1x128x32xbf16>
    %345 = vector.shape_cast %344 : vector<1x128x32xbf16> to vector<128x32xbf16>
    %c3_164 = arith.constant 3 : index
    %c0_165 = arith.constant 0 : index
    %c0_166 = arith.constant 0 : index
    %346 = vector.load %arg6[%c3_164, %c0_165, %c0_166] : memref<4x128x32xbf16, #tpu.memory_space<vmem>>, vector<1x128x32xbf16>
    %347 = vector.shape_cast %346 : vector<1x128x32xbf16> to vector<128x32xbf16>
    %c3_167 = arith.constant 3 : index
    %c0_168 = arith.constant 0 : index
    %c0_169 = arith.constant 0 : index
    %348 = vector.load %arg10[%c3_167, %c0_168, %c0_169] : memref<4x32x128xbf16, #tpu.memory_space<vmem>>, vector<1x32x128xbf16>
    %349 = vector.shape_cast %348 : vector<1x32x128xbf16> to vector<32x128xbf16>
    %cst_170 = arith.constant dense<0.000000e+00> : vector<16x32xf32>
    %350 = tpu.matmul %8, %343, %cst_170 {dimension_numbers = #tpu.dot_dimension_numbers<[1], [0], [0], [1], [0, 0, 1, 1], [], []>} : vector<16x128xbf16>, vector<128x32xbf16>, vector<16x32xf32> -> vector<16x32xf32>
    %c3_171 = arith.constant 3 : index
    %c0_172 = arith.constant 0 : index
    %c0_173 = arith.constant 0 : index
    %351 = vector.load %arg7[%c3_171, %c0_172, %c0_173] : memref<4x1x32xf32, #tpu.memory_space<vmem>>, vector<1x1x32xf32>
    %352 = vector.shape_cast %351 : vector<1x1x32xf32> to vector<1x32xf32>
    %353 = vector.broadcast %352 : vector<1x32xf32> to vector<16x32xf32>
    %354 = arith.addf %350, %353 : vector<16x32xf32>
    %cst_174 = arith.constant 0.176776692 : f32
    %355 = vector.broadcast %cst_174 : f32 to vector<16x32xf32>
    %356 = arith.mulf %354, %355 : vector<16x32xf32>
    %357 = arith.truncf %356 : vector<16x32xf32> to vector<16x32xbf16>
    %cst_175 = arith.constant dense<0.000000e+00> : vector<16x32xf32>
    %358 = tpu.matmul %8, %345, %cst_175 {dimension_numbers = #tpu.dot_dimension_numbers<[1], [0], [0], [1], [0, 0, 1, 1], [], []>} : vector<16x128xbf16>, vector<128x32xbf16>, vector<16x32xf32> -> vector<16x32xf32>
    %c3_176 = arith.constant 3 : index
    %c0_177 = arith.constant 0 : index
    %c0_178 = arith.constant 0 : index
    %359 = vector.load %arg8[%c3_176, %c0_177, %c0_178] : memref<4x1x32xf32, #tpu.memory_space<vmem>>, vector<1x1x32xf32>
    %360 = vector.shape_cast %359 : vector<1x1x32xf32> to vector<1x32xf32>
    %361 = vector.broadcast %360 : vector<1x32xf32> to vector<16x32xf32>
    %362 = arith.addf %358, %361 : vector<16x32xf32>
    %363 = arith.truncf %362 : vector<16x32xf32> to vector<16x32xbf16>
    %cst_179 = arith.constant dense<0.000000e+00> : vector<16x32xf32>
    %364 = tpu.matmul %9, %345, %cst_179 {dimension_numbers = #tpu.dot_dimension_numbers<[1], [0], [0], [1], [0, 0, 1, 1], [], []>} : vector<16x128xbf16>, vector<128x32xbf16>, vector<16x32xf32> -> vector<16x32xf32>
    %c3_180 = arith.constant 3 : index
    %c0_181 = arith.constant 0 : index
    %c0_182 = arith.constant 0 : index
    %365 = vector.load %arg8[%c3_180, %c0_181, %c0_182] : memref<4x1x32xf32, #tpu.memory_space<vmem>>, vector<1x1x32xf32>
    %366 = vector.shape_cast %365 : vector<1x1x32xf32> to vector<1x32xf32>
    %367 = vector.broadcast %366 : vector<1x32xf32> to vector<16x32xf32>
    %368 = arith.addf %364, %367 : vector<16x32xf32>
    %369 = arith.truncf %368 : vector<16x32xf32> to vector<16x32xbf16>
    %cst_183 = arith.constant dense<0.000000e+00> : vector<16x32xf32>
    %370 = tpu.matmul %8, %347, %cst_183 {dimension_numbers = #tpu.dot_dimension_numbers<[1], [0], [0], [1], [0, 0, 1, 1], [], []>} : vector<16x128xbf16>, vector<128x32xbf16>, vector<16x32xf32> -> vector<16x32xf32>
    %c3_184 = arith.constant 3 : index
    %c0_185 = arith.constant 0 : index
    %c0_186 = arith.constant 0 : index
    %371 = vector.load %arg9[%c3_184, %c0_185, %c0_186] : memref<4x1x32xf32, #tpu.memory_space<vmem>>, vector<1x1x32xf32>
    %372 = vector.shape_cast %371 : vector<1x1x32xf32> to vector<1x32xf32>
    %373 = vector.broadcast %372 : vector<1x32xf32> to vector<16x32xf32>
    %374 = arith.addf %370, %373 : vector<16x32xf32>
    %375 = arith.truncf %374 : vector<16x32xf32> to vector<16x32xbf16>
    %cst_187 = arith.constant dense<0.000000e+00> : vector<16x32xf32>
    %376 = tpu.matmul %9, %347, %cst_187 {dimension_numbers = #tpu.dot_dimension_numbers<[1], [0], [0], [1], [0, 0, 1, 1], [], []>} : vector<16x128xbf16>, vector<128x32xbf16>, vector<16x32xf32> -> vector<16x32xf32>
    %c3_188 = arith.constant 3 : index
    %c0_189 = arith.constant 0 : index
    %c0_190 = arith.constant 0 : index
    %377 = vector.load %arg9[%c3_188, %c0_189, %c0_190] : memref<4x1x32xf32, #tpu.memory_space<vmem>>, vector<1x1x32xf32>
    %378 = vector.shape_cast %377 : vector<1x1x32xf32> to vector<1x32xf32>
    %379 = vector.broadcast %378 : vector<1x32xf32> to vector<16x32xf32>
    %380 = arith.addf %376, %379 : vector<16x32xf32>
    %381 = arith.truncf %380 : vector<16x32xf32> to vector<16x32xbf16>
    %382 = vector.extract_strided_slice %357 {offsets = [0, 0], sizes = [8, 32], strides = [1, 1]} : vector<16x32xbf16> to vector<8x32xbf16>
    %383 = vector.extract_strided_slice %363 {offsets = [0, 0], sizes = [8, 32], strides = [1, 1]} : vector<16x32xbf16> to vector<8x32xbf16>
    %cst_191 = arith.constant dense<0.000000e+00> : vector<8x8xf32>
    %384 = tpu.matmul %382, %383, %cst_191 {dimension_numbers = #tpu.dot_dimension_numbers<[1], [1], [0], [0], [0, 0, 1, 0], [], []>} : vector<8x32xbf16>, vector<8x32xbf16>, vector<8x8xf32> -> vector<8x8xf32>
    %385 = vector.extract_strided_slice %357 {offsets = [0, 0], sizes = [8, 32], strides = [1, 1]} : vector<16x32xbf16> to vector<8x32xbf16>
    %386 = vector.extract_strided_slice %369 {offsets = [0, 0], sizes = [8, 32], strides = [1, 1]} : vector<16x32xbf16> to vector<8x32xbf16>
    %cst_192 = arith.constant dense<0.000000e+00> : vector<8x8xf32>
    %387 = tpu.matmul %385, %386, %cst_192 {dimension_numbers = #tpu.dot_dimension_numbers<[1], [1], [0], [0], [0, 0, 1, 0], [], []>} : vector<8x32xbf16>, vector<8x32xbf16>, vector<8x8xf32> -> vector<8x8xf32>
    %cst_193 = arith.constant dense<0xFF800000> : vector<8xf32>
    %388 = vector.multi_reduction <maximumf>, %384, %cst_193 [1] : vector<8x8xf32> to vector<8xf32>
    %389 = vector.shape_cast %388 : vector<8xf32> to vector<8x1xf32>
    %cst_194 = arith.constant dense<0xFF800000> : vector<8xf32>
    %390 = vector.multi_reduction <maximumf>, %387, %cst_194 [1] : vector<8x8xf32> to vector<8xf32>
    %391 = vector.shape_cast %390 : vector<8xf32> to vector<8x1xf32>
    %392 = arith.maximumf %389, %391 : vector<8x1xf32>
    %393 = vector.broadcast %392 : vector<8x1xf32> to vector<8x8xf32>
    %394 = arith.subf %384, %393 : vector<8x8xf32>
    %395 = math.exp %394 : vector<8x8xf32>
    %396 = vector.broadcast %392 : vector<8x1xf32> to vector<8x8xf32>
    %397 = arith.subf %387, %396 : vector<8x8xf32>
    %398 = math.exp %397 : vector<8x8xf32>
    %cst_195 = arith.constant dense<0.000000e+00> : vector<8xf32>
    %399 = vector.multi_reduction <add>, %395, %cst_195 [1] : vector<8x8xf32> to vector<8xf32>
    %400 = vector.shape_cast %399 : vector<8xf32> to vector<8x1xf32>
    %cst_196 = arith.constant dense<0.000000e+00> : vector<8xf32>
    %401 = vector.multi_reduction <add>, %398, %cst_196 [1] : vector<8x8xf32> to vector<8xf32>
    %402 = vector.shape_cast %401 : vector<8xf32> to vector<8x1xf32>
    %403 = arith.addf %400, %402 : vector<8x1xf32>
    %404 = arith.truncf %395 : vector<8x8xf32> to vector<8x8xbf16>
    %405 = vector.extract_strided_slice %375 {offsets = [0, 0], sizes = [8, 32], strides = [1, 1]} : vector<16x32xbf16> to vector<8x32xbf16>
    %cst_197 = arith.constant dense<0.000000e+00> : vector<8x32xf32>
    %406 = tpu.matmul %404, %405, %cst_197 {dimension_numbers = #tpu.dot_dimension_numbers<[1], [0], [0], [1], [0, 0, 1, 1], [], []>} : vector<8x8xbf16>, vector<8x32xbf16>, vector<8x32xf32> -> vector<8x32xf32>
    %407 = arith.truncf %398 : vector<8x8xf32> to vector<8x8xbf16>
    %408 = vector.extract_strided_slice %381 {offsets = [0, 0], sizes = [8, 32], strides = [1, 1]} : vector<16x32xbf16> to vector<8x32xbf16>
    %cst_198 = arith.constant dense<0.000000e+00> : vector<8x32xf32>
    %409 = tpu.matmul %407, %408, %cst_198 {dimension_numbers = #tpu.dot_dimension_numbers<[1], [0], [0], [1], [0, 0, 1, 1], [], []>} : vector<8x8xbf16>, vector<8x32xbf16>, vector<8x32xf32> -> vector<8x32xf32>
    %410 = arith.addf %406, %409 : vector<8x32xf32>
    %411 = tpu.reciprocal %403 {approx = true} : vector<8x1xf32> -> vector<8x1xf32>
    %412 = vector.broadcast %411 : vector<8x1xf32> to vector<8x32xf32>
    %413 = arith.mulf %410, %412 : vector<8x32xf32>
    %414 = arith.truncf %413 : vector<8x32xf32> to vector<8x32xbf16>
    %cst_199 = arith.constant dense<0.000000e+00> : vector<8x128xf32>
    %415 = tpu.matmul %414, %349, %cst_199 {dimension_numbers = #tpu.dot_dimension_numbers<[1], [0], [0], [1], [0, 0, 1, 1], [], []>} : vector<8x32xbf16>, vector<32x128xbf16>, vector<8x128xf32> -> vector<8x128xf32>
    %416 = arith.addf %306, %415 : vector<8x128xf32>
    %417 = vector.extract_strided_slice %357 {offsets = [8, 0], sizes = [8, 32], strides = [1, 1]} : vector<16x32xbf16> to vector<8x32xbf16>
    %418 = vector.extract_strided_slice %363 {offsets = [8, 0], sizes = [8, 32], strides = [1, 1]} : vector<16x32xbf16> to vector<8x32xbf16>
    %cst_200 = arith.constant dense<0.000000e+00> : vector<8x8xf32>
    %419 = tpu.matmul %417, %418, %cst_200 {dimension_numbers = #tpu.dot_dimension_numbers<[1], [1], [0], [0], [0, 0, 1, 0], [], []>} : vector<8x32xbf16>, vector<8x32xbf16>, vector<8x8xf32> -> vector<8x8xf32>
    %420 = vector.extract_strided_slice %357 {offsets = [8, 0], sizes = [8, 32], strides = [1, 1]} : vector<16x32xbf16> to vector<8x32xbf16>
    %421 = vector.extract_strided_slice %369 {offsets = [8, 0], sizes = [8, 32], strides = [1, 1]} : vector<16x32xbf16> to vector<8x32xbf16>
    %cst_201 = arith.constant dense<0.000000e+00> : vector<8x8xf32>
    %422 = tpu.matmul %420, %421, %cst_201 {dimension_numbers = #tpu.dot_dimension_numbers<[1], [1], [0], [0], [0, 0, 1, 0], [], []>} : vector<8x32xbf16>, vector<8x32xbf16>, vector<8x8xf32> -> vector<8x8xf32>
    %cst_202 = arith.constant dense<0xFF800000> : vector<8xf32>
    %423 = vector.multi_reduction <maximumf>, %419, %cst_202 [1] : vector<8x8xf32> to vector<8xf32>
    %424 = vector.shape_cast %423 : vector<8xf32> to vector<8x1xf32>
    %cst_203 = arith.constant dense<0xFF800000> : vector<8xf32>
    %425 = vector.multi_reduction <maximumf>, %422, %cst_203 [1] : vector<8x8xf32> to vector<8xf32>
    %426 = vector.shape_cast %425 : vector<8xf32> to vector<8x1xf32>
    %427 = arith.maximumf %424, %426 : vector<8x1xf32>
    %428 = vector.broadcast %427 : vector<8x1xf32> to vector<8x8xf32>
    %429 = arith.subf %419, %428 : vector<8x8xf32>
    %430 = math.exp %429 : vector<8x8xf32>
    %431 = vector.broadcast %427 : vector<8x1xf32> to vector<8x8xf32>
    %432 = arith.subf %422, %431 : vector<8x8xf32>
    %433 = math.exp %432 : vector<8x8xf32>
    %cst_204 = arith.constant dense<0.000000e+00> : vector<8xf32>
    %434 = vector.multi_reduction <add>, %430, %cst_204 [1] : vector<8x8xf32> to vector<8xf32>
    %435 = vector.shape_cast %434 : vector<8xf32> to vector<8x1xf32>
    %cst_205 = arith.constant dense<0.000000e+00> : vector<8xf32>
    %436 = vector.multi_reduction <add>, %433, %cst_205 [1] : vector<8x8xf32> to vector<8xf32>
    %437 = vector.shape_cast %436 : vector<8xf32> to vector<8x1xf32>
    %438 = arith.addf %435, %437 : vector<8x1xf32>
    %439 = arith.truncf %430 : vector<8x8xf32> to vector<8x8xbf16>
    %440 = vector.extract_strided_slice %375 {offsets = [8, 0], sizes = [8, 32], strides = [1, 1]} : vector<16x32xbf16> to vector<8x32xbf16>
    %cst_206 = arith.constant dense<0.000000e+00> : vector<8x32xf32>
    %441 = tpu.matmul %439, %440, %cst_206 {dimension_numbers = #tpu.dot_dimension_numbers<[1], [0], [0], [1], [0, 0, 1, 1], [], []>} : vector<8x8xbf16>, vector<8x32xbf16>, vector<8x32xf32> -> vector<8x32xf32>
    %442 = arith.truncf %433 : vector<8x8xf32> to vector<8x8xbf16>
    %443 = vector.extract_strided_slice %381 {offsets = [8, 0], sizes = [8, 32], strides = [1, 1]} : vector<16x32xbf16> to vector<8x32xbf16>
    %cst_207 = arith.constant dense<0.000000e+00> : vector<8x32xf32>
    %444 = tpu.matmul %442, %443, %cst_207 {dimension_numbers = #tpu.dot_dimension_numbers<[1], [0], [0], [1], [0, 0, 1, 1], [], []>} : vector<8x8xbf16>, vector<8x32xbf16>, vector<8x32xf32> -> vector<8x32xf32>
    %445 = arith.addf %441, %444 : vector<8x32xf32>
    %446 = tpu.reciprocal %438 {approx = true} : vector<8x1xf32> -> vector<8x1xf32>
    %447 = vector.broadcast %446 : vector<8x1xf32> to vector<8x32xf32>
    %448 = arith.mulf %445, %447 : vector<8x32xf32>
    %449 = arith.truncf %448 : vector<8x32xf32> to vector<8x32xbf16>
    %cst_208 = arith.constant dense<0.000000e+00> : vector<8x128xf32>
    %450 = tpu.matmul %449, %349, %cst_208 {dimension_numbers = #tpu.dot_dimension_numbers<[1], [0], [0], [1], [0, 0, 1, 1], [], []>} : vector<8x32xbf16>, vector<32x128xbf16>, vector<8x128xf32> -> vector<8x128xf32>
    %451 = arith.addf %341, %450 : vector<8x128xf32>
    %452 = tpu.concatenate %416, %451 in 0 : vector<8x128xf32>, vector<8x128xf32> -> vector<16x128xf32>
    %c0_209 = arith.constant 0 : index
    %c0_210 = arith.constant 0 : index
    %453 = vector.load %arg11[%c0_209, %c0_210] : memref<1x128xf32, #tpu.memory_space<vmem>>, vector<1x128xf32>
    %454 = vector.broadcast %453 : vector<1x128xf32> to vector<16x128xf32>
    %455 = arith.addf %452, %454 : vector<16x128xf32>
    %456 = arith.addf %5, %455 : vector<16x128xf32>
    %c0_211 = arith.constant 0 : index
    %c0_212 = arith.constant 0 : index
    %457 = vector.load %arg16[%c0_211, %c0_212] : memref<1x128xf32, #tpu.memory_space<vmem>>, vector<1x128xf32>
    %c0_213 = arith.constant 0 : index
    %c0_214 = arith.constant 0 : index
    %458 = vector.load %arg17[%c0_213, %c0_214] : memref<1x128xf32, #tpu.memory_space<vmem>>, vector<1x128xf32>
    %cst_215 = arith.constant dense<0.000000e+00> : vector<16xf32>
    %459 = vector.multi_reduction <add>, %456, %cst_215 [1] : vector<16x128xf32> to vector<16xf32>
    %460 = vector.shape_cast %459 : vector<16xf32> to vector<16x1xf32>
    %cst_216 = arith.constant 1.280000e+02 : f32
    %461 = vector.broadcast %cst_216 : f32 to vector<16x1xf32>
    %462 = arith.divf %460, %461 : vector<16x1xf32>
    %463 = vector.broadcast %462 : vector<16x1xf32> to vector<16x128xf32>
    %464 = arith.subf %456, %463 : vector<16x128xf32>
    %465 = arith.mulf %464, %464 : vector<16x128xf32>
    %cst_217 = arith.constant dense<0.000000e+00> : vector<16xf32>
    %466 = vector.multi_reduction <add>, %465, %cst_217 [1] : vector<16x128xf32> to vector<16xf32>
    %467 = vector.shape_cast %466 : vector<16xf32> to vector<16x1xf32>
    %cst_218 = arith.constant 1.280000e+02 : f32
    %468 = vector.broadcast %cst_218 : f32 to vector<16x1xf32>
    %469 = arith.divf %467, %468 : vector<16x1xf32>
    %470 = vector.broadcast %462 : vector<16x1xf32> to vector<16x128xf32>
    %471 = arith.subf %456, %470 : vector<16x128xf32>
    %cst_219 = arith.constant 9.99999974E-6 : f32
    %472 = vector.broadcast %cst_219 : f32 to vector<16x1xf32>
    %473 = arith.addf %469, %472 : vector<16x1xf32>
    %474 = math.rsqrt %473 : vector<16x1xf32>
    %475 = vector.broadcast %474 : vector<16x1xf32> to vector<16x128xf32>
    %476 = arith.mulf %471, %475 : vector<16x128xf32>
    %477 = vector.broadcast %457 : vector<1x128xf32> to vector<16x128xf32>
    %478 = arith.mulf %476, %477 : vector<16x128xf32>
    %479 = vector.broadcast %458 : vector<1x128xf32> to vector<16x128xf32>
    %480 = arith.addf %478, %479 : vector<16x128xf32>
    %481 = arith.truncf %480 : vector<16x128xf32> to vector<16x128xbf16>
    %c0_220 = arith.constant 0 : index
    %c0_221 = arith.constant 0 : index
    %482 = vector.load %arg12[%c0_220, %c0_221] : memref<128x512xbf16, #tpu.memory_space<vmem>>, vector<128x512xbf16>
    %cst_222 = arith.constant dense<0.000000e+00> : vector<16x512xf32>
    %483 = tpu.matmul %481, %482, %cst_222 {dimension_numbers = #tpu.dot_dimension_numbers<[1], [0], [0], [1], [0, 0, 1, 1], [], []>} : vector<16x128xbf16>, vector<128x512xbf16>, vector<16x512xf32> -> vector<16x512xf32>
    %c0_223 = arith.constant 0 : index
    %c0_224 = arith.constant 0 : index
    %484 = vector.load %arg13[%c0_223, %c0_224] : memref<1x512xf32, #tpu.memory_space<vmem>>, vector<1x512xf32>
    %485 = vector.broadcast %484 : vector<1x512xf32> to vector<16x512xf32>
    %486 = arith.addf %483, %485 : vector<16x512xf32>
    %cst_225 = arith.constant 0.000000e+00 : f32
    %487 = vector.broadcast %cst_225 : f32 to vector<16x512xf32>
    %488 = arith.cmpf ogt, %486, %487 : vector<16x512xf32>
    %489 = math.exp %486 : vector<16x512xf32>
    %cst_226 = arith.constant 1.000000e+00 : f32
    %490 = vector.broadcast %cst_226 : f32 to vector<16x512xf32>
    %491 = arith.subf %489, %490 : vector<16x512xf32>
    %cst_227 = arith.constant 1.67326319 : f32
    %492 = vector.broadcast %cst_227 : f32 to vector<16x512xf32>
    %493 = arith.mulf %492, %491 : vector<16x512xf32>
    %494 = arith.select %488, %486, %493 : vector<16x512xi1>, vector<16x512xf32>
    %cst_228 = arith.constant 1.05070102 : f32
    %495 = vector.broadcast %cst_228 : f32 to vector<16x512xf32>
    %496 = arith.mulf %495, %494 : vector<16x512xf32>
    %497 = arith.truncf %496 : vector<16x512xf32> to vector<16x512xbf16>
    %c0_229 = arith.constant 0 : index
    %c0_230 = arith.constant 0 : index
    %498 = vector.load %arg14[%c0_229, %c0_230] : memref<512x128xbf16, #tpu.memory_space<vmem>>, vector<512x128xbf16>
    %cst_231 = arith.constant dense<0.000000e+00> : vector<16x128xf32>
    %499 = tpu.matmul %497, %498, %cst_231 {dimension_numbers = #tpu.dot_dimension_numbers<[1], [0], [0], [1], [0, 0, 1, 1], [], []>} : vector<16x512xbf16>, vector<512x128xbf16>, vector<16x128xf32> -> vector<16x128xf32>
    %c0_232 = arith.constant 0 : index
    %c0_233 = arith.constant 0 : index
    %500 = vector.load %arg15[%c0_232, %c0_233] : memref<1x128xf32, #tpu.memory_space<vmem>>, vector<1x128xf32>
    %501 = vector.broadcast %500 : vector<1x128xf32> to vector<16x128xf32>
    %502 = arith.addf %499, %501 : vector<16x128xf32>
    %503 = arith.addf %480, %502 : vector<16x128xf32>
    %c0_234 = arith.constant 0 : index
    %c0_235 = arith.constant 0 : index
    %504 = vector.load %arg18[%c0_234, %c0_235] : memref<1x128xf32, #tpu.memory_space<vmem>>, vector<1x128xf32>
    %c0_236 = arith.constant 0 : index
    %c0_237 = arith.constant 0 : index
    %505 = vector.load %arg19[%c0_236, %c0_237] : memref<1x128xf32, #tpu.memory_space<vmem>>, vector<1x128xf32>
    %cst_238 = arith.constant dense<0.000000e+00> : vector<16xf32>
    %506 = vector.multi_reduction <add>, %503, %cst_238 [1] : vector<16x128xf32> to vector<16xf32>
    %507 = vector.shape_cast %506 : vector<16xf32> to vector<16x1xf32>
    %cst_239 = arith.constant 1.280000e+02 : f32
    %508 = vector.broadcast %cst_239 : f32 to vector<16x1xf32>
    %509 = arith.divf %507, %508 : vector<16x1xf32>
    %510 = vector.broadcast %509 : vector<16x1xf32> to vector<16x128xf32>
    %511 = arith.subf %503, %510 : vector<16x128xf32>
    %512 = arith.mulf %511, %511 : vector<16x128xf32>
    %cst_240 = arith.constant dense<0.000000e+00> : vector<16xf32>
    %513 = vector.multi_reduction <add>, %512, %cst_240 [1] : vector<16x128xf32> to vector<16xf32>
    %514 = vector.shape_cast %513 : vector<16xf32> to vector<16x1xf32>
    %cst_241 = arith.constant 1.280000e+02 : f32
    %515 = vector.broadcast %cst_241 : f32 to vector<16x1xf32>
    %516 = arith.divf %514, %515 : vector<16x1xf32>
    %517 = vector.broadcast %509 : vector<16x1xf32> to vector<16x128xf32>
    %518 = arith.subf %503, %517 : vector<16x128xf32>
    %cst_242 = arith.constant 9.99999974E-6 : f32
    %519 = vector.broadcast %cst_242 : f32 to vector<16x1xf32>
    %520 = arith.addf %516, %519 : vector<16x1xf32>
    %521 = math.rsqrt %520 : vector<16x1xf32>
    %522 = vector.broadcast %521 : vector<16x1xf32> to vector<16x128xf32>
    %523 = arith.mulf %518, %522 : vector<16x128xf32>
    %524 = vector.broadcast %504 : vector<1x128xf32> to vector<16x128xf32>
    %525 = arith.mulf %523, %524 : vector<16x128xf32>
    %526 = vector.broadcast %505 : vector<1x128xf32> to vector<16x128xf32>
    %527 = arith.addf %525, %526 : vector<16x128xf32>
    %528 = vector.shape_cast %527 : vector<16x128xf32> to vector<2x8x128xf32>
    %c0_243 = arith.constant 0 : index
    %c0_244 = arith.constant 0 : index
    %c0_245 = arith.constant 0 : index
    %529 = vector.load %arg20[%c0_243, %c0_244, %c0_245] : memref<2x8x128xf32, #tpu.memory_space<vmem>>, vector<2x8x128xf32>
    tpu.vector_store %arg20[%c0_243, %c0_244, %c0_245], %528 {strides = array<i32>} : memref<2x8x128xf32, #tpu.memory_space<vmem>>, vector<2x8x128xf32>,
    return
  }
  func.func @transform_0(%arg0: i32) -> (i32, i32, i32) {
    %c0_i32 = arith.constant 0 : i32
    %c0_i32_0 = arith.constant 0 : i32
    %c0_i32_1 = arith.constant 0 : i32
    return %arg0, %c0_i32, %c0_i32_0 : i32, i32, i32
  }
  func.func @transform_1(%arg0: i32) -> (i32, i32) {
    %c0_i32 = arith.constant 0 : i32
    %c0_i32_0 = arith.constant 0 : i32
    return %arg0, %c0_i32 : i32, i32
  }
  func.func @transform_2(%arg0: i32) -> (i32, i32, i32) {
    %c0_i32 = arith.constant 0 : i32
    %c0_i32_0 = arith.constant 0 : i32
    %c0_i32_1 = arith.constant 0 : i32
    return %arg0, %c0_i32, %c0_i32_0 : i32, i32, i32
  }
  func.func @transform_3(%arg0: i32) -> (i32, i32, i32) {
    %c0_i32 = arith.constant 0 : i32
    %c0_i32_0 = arith.constant 0 : i32
    %c0_i32_1 = arith.constant 0 : i32
    %c0_i32_2 = arith.constant 0 : i32
    return %c0_i32, %c0_i32_0, %c0_i32_1 : i32, i32, i32
  }
  func.func @transform_4(%arg0: i32) -> (i32, i32, i32) {
    %c0_i32 = arith.constant 0 : i32
    %c0_i32_0 = arith.constant 0 : i32
    %c0_i32_1 = arith.constant 0 : i32
    %c0_i32_2 = arith.constant 0 : i32
    return %c0_i32, %c0_i32_0, %c0_i32_1 : i32, i32, i32
  }
  func.func @transform_5(%arg0: i32) -> (i32, i32, i32) {
    %c0_i32 = arith.constant 0 : i32
    %c0_i32_0 = arith.constant 0 : i32
    %c0_i32_1 = arith.constant 0 : i32
    %c0_i32_2 = arith.constant 0 : i32
    return %c0_i32, %c0_i32_0, %c0_i32_1 : i32, i32, i32
  }
  func.func @transform_6(%arg0: i32) -> (i32, i32, i32) {
    %c0_i32 = arith.constant 0 : i32
    %c0_i32_0 = arith.constant 0 : i32
    %c0_i32_1 = arith.constant 0 : i32
    %c0_i32_2 = arith.constant 0 : i32
    return %c0_i32, %c0_i32_0, %c0_i32_1 : i32, i32, i32
  }
  func.func @transform_7(%arg0: i32) -> (i32, i32, i32) {
    %c0_i32 = arith.constant 0 : i32
    %c0_i32_0 = arith.constant 0 : i32
    %c0_i32_1 = arith.constant 0 : i32
    %c0_i32_2 = arith.constant 0 : i32
    return %c0_i32, %c0_i32_0, %c0_i32_1 : i32, i32, i32
  }
  func.func @transform_8(%arg0: i32) -> (i32, i32, i32) {
    %c0_i32 = arith.constant 0 : i32
    %c0_i32_0 = arith.constant 0 : i32
    %c0_i32_1 = arith.constant 0 : i32
    %c0_i32_2 = arith.constant 0 : i32
    return %c0_i32, %c0_i32_0, %c0_i32_1 : i32, i32, i32
  }
  func.func @transform_9(%arg0: i32) -> (i32, i32, i32) {
    %c0_i32 = arith.constant 0 : i32
    %c0_i32_0 = arith.constant 0 : i32
    %c0_i32_1 = arith.constant 0 : i32
    %c0_i32_2 = arith.constant 0 : i32
    return %c0_i32, %c0_i32_0, %c0_i32_1 : i32, i32, i32
  }
  func.func @transform_10(%arg0: i32) -> (i32, i32) {
    %c0_i32 = arith.constant 0 : i32
    %c0_i32_0 = arith.constant 0 : i32
    %c0_i32_1 = arith.constant 0 : i32
    return %c0_i32, %c0_i32_0 : i32, i32
  }
  func.func @transform_11(%arg0: i32) -> (i32, i32) {
    %c0_i32 = arith.constant 0 : i32
    %c0_i32_0 = arith.constant 0 : i32
    %c0_i32_1 = arith.constant 0 : i32
    return %c0_i32, %c0_i32_0 : i32, i32
  }
  func.func @transform_12(%arg0: i32) -> (i32, i32) {
    %c0_i32 = arith.constant 0 : i32
    %c0_i32_0 = arith.constant 0 : i32
    %c0_i32_1 = arith.constant 0 : i32
    return %c0_i32, %c0_i32_0 : i32, i32
  }
  func.func @transform_13(%arg0: i32) -> (i32, i32) {
    %c0_i32 = arith.constant 0 : i32
    %c0_i32_0 = arith.constant 0 : i32
    %c0_i32_1 = arith.constant 0 : i32
    return %c0_i32, %c0_i32_0 : i32, i32
  }
  func.func @transform_14(%arg0: i32) -> (i32, i32) {
    %c0_i32 = arith.constant 0 : i32
    %c0_i32_0 = arith.constant 0 : i32
    %c0_i32_1 = arith.constant 0 : i32
    return %c0_i32, %c0_i32_0 : i32, i32
  }
  func.func @transform_15(%arg0: i32) -> (i32, i32) {
    %c0_i32 = arith.constant 0 : i32
    %c0_i32_0 = arith.constant 0 : i32
    %c0_i32_1 = arith.constant 0 : i32
    return %c0_i32, %c0_i32_0 : i32, i32
  }
  func.func @transform_16(%arg0: i32) -> (i32, i32) {
    %c0_i32 = arith.constant 0 : i32
    %c0_i32_0 = arith.constant 0 : i32
    %c0_i32_1 = arith.constant 0 : i32
    return %c0_i32, %c0_i32_0 : i32, i32
  }
  func.func @transform_17(%arg0: i32) -> (i32, i32) {
    %c0_i32 = arith.constant 0 : i32
    %c0_i32_0 = arith.constant 0 : i32
    %c0_i32_1 = arith.constant 0 : i32
    return %c0_i32, %c0_i32_0 : i32, i32
  }
  func.func @transform_18(%arg0: i32) -> (i32, i32) {
    %c0_i32 = arith.constant 0 : i32
    %c0_i32_0 = arith.constant 0 : i32
    %c0_i32_1 = arith.constant 0 : i32
    return %c0_i32, %c0_i32_0 : i32, i32
  }
  func.func @transform_19(%arg0: i32) -> (i32, i32, i32) {
    %c0_i32 = arith.constant 0 : i32
    %c0_i32_0 = arith.constant 0 : i32
    %c0_i32_1 = arith.constant 0 : i32
    return %arg0, %c0_i32, %c0_i32_0 : i32, i32, i32
  }
}

</mosaic_0001>

<bundles_post_ra>
// kernel: tpu_custom_call.1
= control target key start
LH: loop header
LB: loop body
LE: loop exit
PB: predicated region body
PF: predicated region fallthrough
CT: control target
= control target key end

     0   :  { %s8036_s0 = inlined_call_operand.hbm [shape: f32[2,8,128], index: 0, kind: input, shape index: {}]   ;;  %s8037_s1 = inlined_call_operand.hbm [shape: f32[2,128], index: 1, kind: input, shape index: {}]   ;;  %s8038_s2 = inlined_call_operand.hbm [shape: f32[2,8,128], index: 2, kind: input, shape index: {}]   ;;  %s8039_s3 = inlined_call_operand.hbm [shape: bf16[4,128,32], index: 3, kind: input, shape index: {}]   ;;  %s8040_s4 = inlined_call_operand.hbm [shape: bf16[4,128,32], index: 4, kind: input, shape index: {}]   ;;  %s8041_s5 = inlined_call_operand.hbm [shape: bf16[4,128,32], index: 5, kind: input, shape index: {}]   ;;  %s8042_s6 = inlined_call_operand.hbm [shape: f32[4,1,32], index: 6, kind: input, shape index: {}]   ;;  %s8043_s7 = inlined_call_operand.hbm [shape: f32[4,1,32], index: 7, kind: input, shape index: {}]   ;;  %s8044_s8 = inlined_call_operand.hbm [shape: f32[4,1,32], index: 8, kind: input, shape index: {}]   ;;  %s8045_s9 = inlined_call_operand.hbm [shape: bf16[4,32,128], index: 9, kind: input, shape index: {}]   ;;  %s8046_s10 = inlined_call_operand.hbm [shape: f32[1,128], index: 10, kind: input, shape index: {}]   ;;  %s8047_s11 = inlined_call_operand.hbm [shape: bf16[128,512], index: 11, kind: input, shape index: {}]   ;;  %s8048_s12 = inlined_call_operand.hbm [shape: f32[1,512], index: 12, kind: input, shape index: {}]   ;;  %s8049_s13 = inlined_call_operand.hbm [shape: bf16[512,128], index: 13, kind: input, shape index: {}]   ;;  %s8050_s14 = inlined_call_operand.hbm [shape: f32[1,128], index: 14, kind: input, shape index: {}]   ;;  %s8051_s15 = inlined_call_operand.hbm [shape: f32[1,128], index: 15, kind: input, shape index: {}]   ;;  %s8052_s16 = inlined_call_operand.hbm [shape: f32[1,128], index: 16, kind: input, shape index: {}]   ;;  %s8053_s17 = inlined_call_operand.hbm [shape: f32[1,128], index: 17, kind: input, shape index: {}]   ;;  %s8054_s18 = inlined_call_operand.hbm [shape: f32[1,128], index: 18, kind: input, shape index: {}]   ;;  %s8055_s19 = inlined_call_operand.hbm [shape: f32[2,8,128], index: 19, kind: output, shape index: {}]  }
   0x1   :  { %8061 = sst [smem:[#allocation44_spill]] %s8036_s0 }
   0x2   :  { %8062 = sst [smem:[#allocation45_spill]] %s8037_s1 }
   0x3   :  { %8063 = sst [smem:[#allocation46_spill]] %s8038_s2 }
   0x4   :  { %8064 = sst [smem:[#allocation47_spill]] %s8039_s3 }
   0x5   :  { %8065 = sst [smem:[#allocation48_spill]] %s8055_s19 }
   0x6   :  { %24 = vsyncpa [#allocation3], 0 }
   0x7   :  { %25 = vsyncpa [#allocation6], 0 }
   0x8   :  { %26 = vsyncpa [#allocation9], 0 }
   0x9   :  { %27 = vsyncpa [#allocation12], 0 }
   0xa   :  { %28 = vsyncpa [#allocation15], 0 }
   0xb   :  { %29 = vsyncpa [#allocation18], 0 }
   0xc   :  { %30 = vsyncpa [#allocation21], 0 }
   0xd   :  { %31 = vsyncpa [#allocation24], 0 }
   0xe   :  { %32 = vsyncpa [#allocation27], 0 }
   0xf   :  { %33 = vsyncpa [#allocation30], 0 }
  0x10   :  { %34 = vsyncpa [#allocation4], 0  ;;  %s6983_s0 = smov [#allocation5]   ;;  %s6984_s20 = smov [#allocation8]  }
  0x11   :  { %s53_s30 = sshll.u32 %s6983_s0, 4  ;;  %s74_s21 = sshll.u32 %s6984_s20, 4  ;;  %s54_s30 = int_to_ptr.vmem [resolvable:$true] %s53_s30  ;;  %s7114_s21 = int_to_ptr.vmem [resolvable:$true] %s74_s21 }
  0x12   :  { %s8066_s2 = sld [smem:[#allocation45_spill]] }
  0x18   :  { %s6521_s23 = scalar_lea.hbm %s8066_s2, 32 }
  0x19   :  { %p6522_p0 = scmp.ne.s32.totalorder %s8066_s2, %s6521_s23  ;;  %p6525_p1 = scmp.lt.u32.totalorder %s6521_s23, %s8066_s2 }
  0x1b   :  { %p6527_p2 = pnand %p6525_p1, %p6522_p0 }
  0x1d   :  { %6530 = shalt.err (!%p6527_p2)
}
  0x1e   :  { %s6531_s27 = scalar_lea.vmem %s54_s30, 32  ;;  %p6536_p4 = scmp.lt.s32.totalorder %s54_s30, %s54_s30 }
  0x1f   :  { %p6532_p3 = scmp.ne.s32.totalorder %s54_s30, %s6531_s27  ;;  %p6537_p5 = scmp.lt.s32.totalorder %s6531_s27, %s6531_s27 }
  0x21   :  { %p6538_p6 = por %p6537_p5, %p6536_p4 }
  0x23   :  { %p6539_p7 = pnand %p6538_p6, %p6532_p3 }
  0x25   :  { %6542 = shalt.err (!%p6539_p7)
}
  0x26   :  { %56 = dma.hbm_to_vmem [thread:$0]  %s8066_s2, 32, %s54_s30, [#allocation6]  }
  0x27   :  { %s8067_s1 = sld [smem:[#allocation47_spill]] }
  0x2d   :  { %s6543_s22 = scalar_lea.hbm %s8067_s1, 4096 }
  0x2e   :  { %p6544_p8 = scmp.ne.s32.totalorder %s8067_s1, %s6543_s22  ;;  %p6547_p9 = scmp.lt.u32.totalorder %s6543_s22, %s8067_s1 }
  0x30   :  { %p6549_p10 = pnand %p6547_p9, %p6544_p8 }
  0x32   :  { %6552 = shalt.err (!%p6549_p10)
}
  0x33   :  { %s6553_s26 = scalar_lea.vmem %s7114_s21, 4096  ;;  %p6558_p12 = scmp.lt.s32.totalorder %s7114_s21, %s7114_s21 }
  0x34   :  { %p6554_p11 = scmp.ne.s32.totalorder %s7114_s21, %s6553_s26  ;;  %p6559_p13 = scmp.lt.s32.totalorder %s6553_s26, %s6553_s26 }
  0x36   :  { %p6560_p0 = por %p6559_p13, %p6558_p12 }
  0x38   :  { %p6561_p1 = pnand %p6560_p0, %p6554_p11 }
  0x3a   :  { %6564 = shalt.err (!%p6561_p1)
}
  0x3b   :  { %s6985_s30 = smov 64   ;;  %s6986_s2 = smov 4  }
  0x3c   :  { %80 = dma.hbm_to_vmem [thread:$0]  %s8067_s1, 4096, %s7114_s21, [#allocation9], %s6985_s30, %s6985_s30, %s6986_s2  }
  0x3d   :  { %s6987_s29 = smov [#allocation11]   ;;  %s6565_s24 = scalar_lea.hbm %s8041_s5, 4096 }
  0x3e   :  { %s98_s0 = sshll.u32 %s6987_s29, 4  ;;  %p6566_p2 = scmp.ne.s32.totalorder %s8041_s5, %s6565_s24  ;;  %s99_s0 = int_to_ptr.vmem [resolvable:$true] %s98_s0 }
  0x3f   :  { %p6569_p3 = scmp.lt.u32.totalorder %s6565_s24, %s8041_s5 }
  0x41   :  { %p6571_p4 = pnand %p6569_p3, %p6566_p2 }
  0x43   :  { %6574 = shalt.err (!%p6571_p4)
}
  0x44   :  { %s6575_s19 = scalar_lea.vmem %s99_s0, 4096  ;;  %p6580_p6 = scmp.lt.s32.totalorder %s99_s0, %s99_s0 }
  0x45   :  { %p6576_p5 = scmp.ne.s32.totalorder %s99_s0, %s6575_s19  ;;  %p6581_p7 = scmp.lt.s32.totalorder %s6575_s19, %s6575_s19 }
  0x47   :  { %p6582_p8 = por %p6581_p7, %p6580_p6 }
  0x49   :  { %p6583_p9 = pnand %p6582_p8, %p6576_p5 }
  0x4b   :  { %6586 = shalt.err (!%p6583_p9)
}
  0x4c   :  { %104 = dma.hbm_to_vmem [thread:$0]  %s8041_s5, 4096, %s99_s0, [#allocation12], %s6985_s30, %s6985_s30, %s6986_s2  }
  0x4d   :  { %s6988_s27 = smov [#allocation14]   ;;  %s6989_s29 = smov [#allocation17]  }
  0x4e   :  { %s122_s28 = sshll.u32 %s6988_s27, 4  ;;  %s146_s20 = sshll.u32 %s6989_s29, 4  ;;  %s123_s28 = int_to_ptr.vmem [resolvable:$true] %s122_s28  ;;  %s147_s20 = int_to_ptr.vmem [resolvable:$true] %s146_s20 }
  0x4f   :  { %s6587_s25 = scalar_lea.hbm %s8043_s7, 64 }
  0x50   :  { %p6588_p10 = scmp.ne.s32.totalorder %s8043_s7, %s6587_s25  ;;  %p6591_p11 = scmp.lt.u32.totalorder %s6587_s25, %s8043_s7 }
  0x52   :  { %p6593_p12 = pnand %p6591_p11, %p6588_p10 }
  0x54   :  { %6596 = shalt.err (!%p6593_p12)
}
  0x55   :  { %s6597_s5 = scalar_lea.vmem %s123_s28, 64  ;;  %p6602_p0 = scmp.lt.s32.totalorder %s123_s28, %s123_s28 }
  0x56   :  { %p6598_p13 = scmp.ne.s32.totalorder %s123_s28, %s6597_s5  ;;  %p6603_p1 = scmp.lt.s32.totalorder %s6597_s5, %s6597_s5 }
  0x58   :  { %p6604_p2 = por %p6603_p1, %p6602_p0 }
  0x5a   :  { %p6605_p3 = pnand %p6604_p2, %p6598_p13 }
  0x5c   :  { %6608 = shalt.err (!%p6605_p3)
}
  0x5d   :  { %s6990_s0 = smov 16   ;;  %s6991_s21 = smov 1  }
  0x5e   :  { %128 = dma.hbm_to_vmem [thread:$0]  %s8043_s7, 64, %s123_s28, [#allocation15], %s6990_s0, %s6990_s0, %s6991_s21  }
  0x5f   :  { %s6609_s24 = scalar_lea.hbm %s8045_s9, 1024 }
  0x60   :  { %p6610_p4 = scmp.ne.s32.totalorder %s8045_s9, %s6609_s24  ;;  %p6613_p5 = scmp.lt.u32.totalorder %s6609_s24, %s8045_s9 }
  0x62   :  { %p6615_p6 = pnand %p6613_p5, %p6610_p4 }
  0x64   :  { %6618 = shalt.err (!%p6615_p6)
}
  0x65   :  { %s6619_s26 = scalar_lea.vmem %s147_s20, 1024  ;;  %p6624_p8 = scmp.lt.s32.totalorder %s147_s20, %s147_s20 }
  0x66   :  { %p6620_p7 = scmp.ne.s32.totalorder %s147_s20, %s6619_s26  ;;  %p6625_p9 = scmp.lt.s32.totalorder %s6619_s26, %s6619_s26 }
  0x68   :  { %p6626_p10 = por %p6625_p9, %p6624_p8 }
  0x6a   :  { %p6627_p11 = pnand %p6626_p10, %p6620_p7 }
  0x6c   :  { %6630 = shalt.err (!%p6627_p11)
}
  0x6d   :  { %152 = dma.hbm_to_vmem [thread:$0]  %s8045_s9, 1024, %s147_s20, [#allocation18], %s6985_s30, %s6985_s30, %s6986_s2  }
  0x6e   :  { %s6992_s5 = smov [#allocation20]   ;;  %s6631_s22 = scalar_lea.hbm %s8047_s11, 4096 }
  0x6f   :  { %s168_s1 = sshll.u32 %s6992_s5, 4  ;;  %p6632_p12 = scmp.ne.s32.totalorder %s8047_s11, %s6631_s22  ;;  %s169_s1 = int_to_ptr.vmem [resolvable:$true] %s168_s1 }
  0x70   :  { %p6635_p13 = scmp.lt.u32.totalorder %s6631_s22, %s8047_s11 }
  0x72   :  { %p6637_p0 = pnand %p6635_p13, %p6632_p12 }
  0x74   :  { %6640 = shalt.err (!%p6637_p0)
}
  0x75   :  { %s6641_s3 = scalar_lea.vmem %s169_s1, 4096  ;;  %p6646_p2 = scmp.lt.s32.totalorder %s169_s1, %s169_s1 }
  0x76   :  { %p6642_p1 = scmp.ne.s32.totalorder %s169_s1, %s6641_s3  ;;  %p6647_p3 = scmp.lt.s32.totalorder %s6641_s3, %s6641_s3 }
  0x78   :  { %p6648_p4 = por %p6647_p3, %p6646_p2 }
  0x7a   :  { %p6649_p5 = pnand %p6648_p4, %p6642_p1 }
  0x7c   :  { %6652 = shalt.err (!%p6649_p5)
}
  0x7d   :  { %s6993_s9 = smov 256   ;;  %s6994_s7 = smov [#allocation23]  }
  0x7e   :  { %174 = dma.hbm_to_vmem [thread:$0]  %s8047_s11, 4096, %s169_s1, [#allocation21], %s6993_s9, %s6993_s9, %s6990_s0  }
  0x7f   :  { %s190_s28 = sshll.u32 %s6994_s7, 4  ;;  %s6995_s5 = smov [#allocation26]   ;;  %s191_s28 = int_to_ptr.vmem [resolvable:$true] %s190_s28 }
  0x80   :  { %s213_s27 = sshll.u32 %s6995_s5, 4  ;;  %s6653_s24 = scalar_lea.hbm %s8049_s13, 4096  ;;  %s214_s27 = int_to_ptr.vmem [resolvable:$true] %s213_s27 }
  0x81   :  { %p6654_p6 = scmp.ne.s32.totalorder %s8049_s13, %s6653_s24  ;;  %p6657_p7 = scmp.lt.u32.totalorder %s6653_s24, %s8049_s13 }
  0x83   :  { %p6659_p8 = pnand %p6657_p7, %p6654_p6 }
  0x85   :  { %6662 = shalt.err (!%p6659_p8)
}
  0x86   :  { %s6663_s11 = scalar_lea.vmem %s191_s28, 4096  ;;  %p6668_p10 = scmp.lt.s32.totalorder %s191_s28, %s191_s28 }
  0x87   :  { %p6664_p9 = scmp.ne.s32.totalorder %s191_s28, %s6663_s11  ;;  %p6669_p11 = scmp.lt.s32.totalorder %s6663_s11, %s6663_s11 }
  0x89   :  { %p6670_p12 = por %p6669_p11, %p6668_p10 }
  0x8b   :  { %p6671_p13 = pnand %p6670_p12, %p6664_p9 }
  0x8d   :  { %6674 = shalt.err (!%p6671_p13)
}
  0x8e   :  { %196 = dma.hbm_to_vmem [thread:$0]  %s8049_s13, 4096, %s191_s28, [#allocation24], %s6985_s30, %s6985_s30, %s6986_s2  }
  0x8f   :  { %s6675_s7 = scalar_lea.hbm %s8051_s15, 16 }
  0x90   :  { %p6676_p0 = scmp.ne.s32.totalorder %s8051_s15, %s6675_s7  ;;  %p6679_p1 = scmp.lt.u32.totalorder %s6675_s7, %s8051_s15 }
  0x92   :  { %p6681_p2 = pnand %p6679_p1, %p6676_p0 }
  0x94   :  { %6684 = shalt.err (!%p6681_p2)
}
  0x95   :  { %s6685_s25 = scalar_lea.vmem %s214_s27, 16  ;;  %s6689_s19 = scalar_lea.vmem %s214_s27, 32 }
  0x96   :  { %p6686_p3 = scmp.ne.s32.totalorder %s214_s27, %s6685_s25  ;;  %p6690_p4 = scmp.lt.s32.totalorder %s214_s27, %s214_s27 }
  0x97   :  { %p6691_p5 = scmp.lt.s32.totalorder %s6689_s19, %s6685_s25 }
  0x99   :  { %p6692_p6 = por %p6691_p5, %p6690_p4 }
  0x9b   :  { %p6693_p7 = pnand %p6692_p6, %p6686_p3 }
  0x9d   :  { %6696 = shalt.err (!%p6693_p7)
}
  0x9e   :  { %216 = dma.hbm_to_vmem [thread:$0]  %s8051_s15, 16, %s214_s27, [#allocation27]  }
  0x9f   :  { %s6996_s23 = smov [#allocation29]   ;;  %s6997_s11 = smov [#allocation2]  }
  0xa0   :  { %s233_s3 = sshll.u32 %s6996_s23, 4  ;;  %s40_s1 = sshll.u32 %s6997_s11, 4  ;;  %s234_s3 = int_to_ptr.vmem [resolvable:$true] %s233_s3  ;;  %s41_s1 = int_to_ptr.vmem [resolvable:$true] %s40_s1 }
  0xa1   :  { %s6697_s26 = scalar_lea.hbm %s8053_s17, 16 }
  0xa2   :  { %p6698_p8 = scmp.ne.s32.totalorder %s8053_s17, %s6697_s26  ;;  %p6701_p9 = scmp.lt.u32.totalorder %s6697_s26, %s8053_s17 }
  0xa4   :  { %p6703_p10 = pnand %p6701_p9, %p6698_p8 }
  0xa6   :  { %6706 = shalt.err (!%p6703_p10)
}
  0xa7   :  { %s6707_s15 = scalar_lea.vmem %s234_s3, 16  ;;  %s6711_s27 = scalar_lea.vmem %s234_s3, 32 }
  0xa8   :  { %p6708_p11 = scmp.ne.s32.totalorder %s234_s3, %s6707_s15  ;;  %p6712_p12 = scmp.lt.s32.totalorder %s234_s3, %s234_s3 }
  0xa9   :  { %p6713_p13 = scmp.lt.s32.totalorder %s6711_s27, %s6707_s15 }
  0xab   :  { %p6714_p0 = por %p6713_p13, %p6712_p12 }
  0xad   :  { %p6715_p1 = pnand %p6714_p0, %p6708_p11 }
  0xaf   :  { %6718 = shalt.err (!%p6715_p1)
}
  0xb0   :  { %236 = dma.hbm_to_vmem [thread:$0]  %s8053_s17, 16, %s234_s3, [#allocation30]  }
  0xb1   :  { %s8068_s28 = sld [smem:[#allocation44_spill]] }
  0xb7   :  { %s6719_s23 = scalar_lea.hbm %s8068_s28, 256 }
  0xb8   :  { %p6720_p2 = scmp.ne.s32.totalorder %s8068_s28, %s6719_s23  ;;  %p6723_p3 = scmp.lt.u32.totalorder %s6719_s23, %s8068_s28 }
  0xba   :  { %p6725_p4 = pnand %p6723_p3, %p6720_p2 }
  0xbc   :  { %6728 = shalt.err (!%p6725_p4)
}
  0xbd   :  { %s6729_s7 = scalar_lea.vmem %s41_s1, 256  ;;  %p6734_p6 = scmp.lt.s32.totalorder %s41_s1, %s41_s1 }
  0xbe   :  { %p6730_p5 = scmp.ne.s32.totalorder %s41_s1, %s6729_s7  ;;  %p6735_p7 = scmp.lt.s32.totalorder %s6729_s7, %s6729_s7 }
  0xc0   :  { %p6736_p8 = por %p6735_p7, %p6734_p6 }
  0xc2   :  { %p6737_p9 = pnand %p6736_p8, %p6730_p5 }
  0xc4   :  { %6740 = shalt.err (!%p6737_p9)
}
  0xc5   :  { %s6998_s17 = smov 128   ;;  %s6999_s3 = smov 8  }
  0xc6   :  { %46 = dma.hbm_to_vmem [thread:$0]  %s8068_s28, 256, %s41_s1, [#allocation3], %s6998_s17, %s6998_s17, %s6999_s3  }
  0xc7   :  { %s7000_s22 = smov [#allocation7]   ;;  %s7001_s27 = smov [#allocation10]  }
  0xc8   :  { %s62_s15 = sshll.u32 %s7000_s22, 4  ;;  %s86_s24 = sshll.u32 %s7001_s27, 4  ;;  %s63_s15 = int_to_ptr.vmem [resolvable:$true] %s62_s15  ;;  %s87_s24 = int_to_ptr.vmem [resolvable:$true] %s86_s24 }
  0xc9   :  { %s8069_s13 = sld [smem:[#allocation46_spill]] }
  0xcf   :  { %s6741_s23 = scalar_lea.hbm %s8069_s13, 256 }
  0xd0   :  { %p6742_p10 = scmp.ne.s32.totalorder %s8069_s13, %s6741_s23  ;;  %p6745_p11 = scmp.lt.u32.totalorder %s6741_s23, %s8069_s13 }
  0xd2   :  { %p6747_p12 = pnand %p6745_p11, %p6742_p10 }
  0xd4   :  { %6750 = shalt.err (!%p6747_p12)
}
  0xd5   :  { %s6751_s1 = scalar_lea.vmem %s63_s15, 256  ;;  %p6756_p0 = scmp.lt.s32.totalorder %s63_s15, %s63_s15 }
  0xd6   :  { %p6752_p13 = scmp.ne.s32.totalorder %s63_s15, %s6751_s1  ;;  %p6757_p1 = scmp.lt.s32.totalorder %s6751_s1, %s6751_s1 }
  0xd8   :  { %p6758_p2 = por %p6757_p1, %p6756_p0 }
  0xda   :  { %p6759_p3 = pnand %p6758_p2, %p6752_p13 }
  0xdc   :  { %6762 = shalt.err (!%p6759_p3)
}
  0xdd   :  { %68 = dma.hbm_to_vmem [thread:$0]  %s8069_s13, 256, %s63_s15, [#allocation6], %s6998_s17, %s6998_s17, %s6999_s3  }
  0xde   :  { %s6763_s22 = scalar_lea.hbm %s8040_s4, 4096 }
  0xdf   :  { %p6764_p4 = scmp.ne.s32.totalorder %s8040_s4, %s6763_s22  ;;  %p6767_p5 = scmp.lt.u32.totalorder %s6763_s22, %s8040_s4 }
  0xe1   :  { %p6769_p6 = pnand %p6767_p5, %p6764_p4 }
  0xe3   :  { %6772 = shalt.err (!%p6769_p6)
}
  0xe4   :  { %s6773_s11 = scalar_lea.vmem %s87_s24, 4096  ;;  %p6778_p8 = scmp.lt.s32.totalorder %s87_s24, %s87_s24 }
  0xe5   :  { %p6774_p7 = scmp.ne.s32.totalorder %s87_s24, %s6773_s11  ;;  %p6779_p9 = scmp.lt.s32.totalorder %s6773_s11, %s6773_s11 }
  0xe7   :  { %p6780_p10 = por %p6779_p9, %p6778_p8 }
  0xe9   :  { %p6781_p11 = pnand %p6780_p10, %p6774_p7 }
  0xeb   :  { %6784 = shalt.err (!%p6781_p11)
}
  0xec   :  { %92 = dma.hbm_to_vmem [thread:$0]  %s8040_s4, 4096, %s87_s24, [#allocation9], %s6985_s30, %s6985_s30, %s6986_s2  }
  0xed   :  { %s7002_s9 = smov [#allocation13]   ;;  %s7003_s26 = smov [#allocation16]  }
  0xee   :  { %s110_s20 = sshll.u32 %s7002_s9, 4  ;;  %s134_s1 = sshll.u32 %s7003_s26, 4  ;;  %s111_s20 = int_to_ptr.vmem [resolvable:$true] %s110_s20  ;;  %s135_s1 = int_to_ptr.vmem [resolvable:$true] %s134_s1 }
  0xef   :  { %s6785_s5 = scalar_lea.hbm %s8042_s6, 64 }
  0xf0   :  { %p6786_p12 = scmp.ne.s32.totalorder %s8042_s6, %s6785_s5  ;;  %p6789_p13 = scmp.lt.u32.totalorder %s6785_s5, %s8042_s6 }
  0xf2   :  { %p6791_p0 = pnand %p6789_p13, %p6786_p12 }
  0xf4   :  { %6794 = shalt.err (!%p6791_p0)
}
  0xf5   :  { %s6795_s4 = scalar_lea.vmem %s111_s20, 64  ;;  %p6800_p2 = scmp.lt.s32.totalorder %s111_s20, %s111_s20 }
  0xf6   :  { %p6796_p1 = scmp.ne.s32.totalorder %s111_s20, %s6795_s4  ;;  %p6801_p3 = scmp.lt.s32.totalorder %s6795_s4, %s6795_s4 }
  0xf8   :  { %p6802_p4 = por %p6801_p3, %p6800_p2 }
  0xfa   :  { %p6803_p5 = pnand %p6802_p4, %p6796_p1 }
  0xfc   :  { %6806 = shalt.err (!%p6803_p5)
}
  0xfd   :  { %116 = dma.hbm_to_vmem [thread:$0]  %s8042_s6, 64, %s111_s20, [#allocation12], %s6990_s0, %s6990_s0, %s6991_s21  }
  0xfe   :  { %s6807_s23 = scalar_lea.hbm %s8044_s8, 64 }
  0xff   :  { %p6808_p6 = scmp.ne.s32.totalorder %s8044_s8, %s6807_s23  ;;  %p6811_p7 = scmp.lt.u32.totalorder %s6807_s23, %s8044_s8 }
 0x101   :  { %p6813_p8 = pnand %p6811_p7, %p6808_p6 }
 0x103   :  { %6816 = shalt.err (!%p6813_p8)
}
 0x104   :  { %s6817_s26 = scalar_lea.vmem %s135_s1, 64  ;;  %p6822_p10 = scmp.lt.s32.totalorder %s135_s1, %s135_s1 }
 0x105   :  { %p6818_p9 = scmp.ne.s32.totalorder %s135_s1, %s6817_s26  ;;  %p6823_p11 = scmp.lt.s32.totalorder %s6817_s26, %s6817_s26 }
 0x107   :  { %p6824_p12 = por %p6823_p11, %p6822_p10 }
 0x109   :  { %p6825_p13 = pnand %p6824_p12, %p6818_p9 }
 0x10b   :  { %6828 = shalt.err (!%p6825_p13)
}
 0x10c   :  { %140 = dma.hbm_to_vmem [thread:$0]  %s8044_s8, 64, %s135_s1, [#allocation15], %s6990_s0, %s6990_s0, %s6991_s21  }
 0x10d   :  { %s7004_s28 = smov [#allocation19]   ;;  %s7005_s5 = smov [#allocation22]  }
 0x10e   :  { %s159_s7 = sshll.u32 %s7004_s28, 4  ;;  %s181_s29 = sshll.u32 %s7005_s5, 4  ;;  %s160_s7 = int_to_ptr.vmem [resolvable:$true] %s159_s7  ;;  %s182_s29 = int_to_ptr.vmem [resolvable:$true] %s181_s29 }
 0x10f   :  { %s6829_s25 = scalar_lea.hbm %s8046_s10, 16 }
 0x110   :  { %p6830_p0 = scmp.ne.s32.totalorder %s8046_s10, %s6829_s25  ;;  %p6833_p1 = scmp.lt.u32.totalorder %s6829_s25, %s8046_s10 }
 0x112   :  { %p6835_p2 = pnand %p6833_p1, %p6830_p0 }
 0x114   :  { %6838 = shalt.err (!%p6835_p2)
}
 0x115   :  { %s6839_s8 = scalar_lea.vmem %s160_s7, 16  ;;  %s6843_s0 = scalar_lea.vmem %s160_s7, 32 }
 0x116   :  { %p6840_p3 = scmp.ne.s32.totalorder %s160_s7, %s6839_s8  ;;  %p6844_p4 = scmp.lt.s32.totalorder %s160_s7, %s160_s7 }
 0x117   :  { %p6845_p5 = scmp.lt.s32.totalorder %s6843_s0, %s6839_s8 }
 0x119   :  { %p6846_p6 = por %p6845_p5, %p6844_p4 }
 0x11b   :  { %p6847_p7 = pnand %p6846_p6, %p6840_p3 }
 0x11d   :  { %6850 = shalt.err (!%p6847_p7)
}
 0x11e   :  { %162 = dma.hbm_to_vmem [thread:$0]  %s8046_s10, 16, %s160_s7, [#allocation18]  }
 0x11f   :  { %s6851_s11 = scalar_lea.hbm %s8048_s12, 64 }
 0x120   :  { %p6852_p8 = scmp.ne.s32.totalorder %s8048_s12, %s6851_s11  ;;  %p6855_p9 = scmp.lt.u32.totalorder %s6851_s11, %s8048_s12 }
 0x122   :  { %p6857_p10 = pnand %p6855_p9, %p6852_p8 }
 0x124   :  { %6860 = shalt.err (!%p6857_p10)
}
 0x125   :  { %s6861_s6 = scalar_lea.vmem %s182_s29, 64  ;;  %p6866_p12 = scmp.lt.s32.totalorder %s182_s29, %s182_s29 }
 0x126   :  { %p6862_p11 = scmp.ne.s32.totalorder %s182_s29, %s6861_s6  ;;  %p6867_p13 = scmp.lt.s32.totalorder %s6861_s6, %s6861_s6 }
 0x128   :  { %p6868_p0 = por %p6867_p13, %p6866_p12 }
 0x12a   :  { %p6869_p1 = pnand %p6868_p0, %p6862_p11 }
 0x12c   :  { %6872 = shalt.err (!%p6869_p1)
}
 0x12d   :  { %184 = dma.hbm_to_vmem [thread:$0]  %s8048_s12, 64, %s182_s29, [#allocation21]  }
 0x12e   :  { %s7006_s28 = smov [#allocation25]   ;;  %s7007_s5 = smov [#allocation28]  }
 0x12f   :  { %s203_s7 = sshll.u32 %s7006_s28, 4  ;;  %s223_s22 = sshll.u32 %s7007_s5, 4  ;;  %s204_s7 = int_to_ptr.vmem [resolvable:$true] %s203_s7  ;;  %s224_s22 = int_to_ptr.vmem [resolvable:$true] %s223_s22 }
 0x130   :  { %s6873_s4 = scalar_lea.hbm %s8050_s14, 16 }
 0x131   :  { %p6874_p2 = scmp.ne.s32.totalorder %s8050_s14, %s6873_s4  ;;  %p6877_p3 = scmp.lt.u32.totalorder %s6873_s4, %s8050_s14 }
 0x133   :  { %p6879_p4 = pnand %p6877_p3, %p6874_p2 }
 0x135   :  { %6882 = shalt.err (!%p6879_p4)
}
 0x136   :  { %s6883_s12 = scalar_lea.vmem %s204_s7, 16  ;;  %s6887_s29 = scalar_lea.vmem %s204_s7, 32 }
 0x137   :  { %p6884_p5 = scmp.ne.s32.totalorder %s204_s7, %s6883_s12  ;;  %p6888_p6 = scmp.lt.s32.totalorder %s204_s7, %s204_s7 }
 0x138   :  { %p6889_p7 = scmp.lt.s32.totalorder %s6887_s29, %s6883_s12 }
 0x13a   :  { %p6890_p8 = por %p6889_p7, %p6888_p6 }
 0x13c   :  { %p6891_p9 = pnand %p6890_p8, %p6884_p5 }
 0x13e   :  { %6894 = shalt.err (!%p6891_p9)
}
 0x13f   :  { %206 = dma.hbm_to_vmem [thread:$0]  %s8050_s14, 16, %s204_s7, [#allocation24]  }
 0x140   :  { %s6895_s23 = scalar_lea.hbm %s8052_s16, 16 }
 0x141   :  { %p6896_p10 = scmp.ne.s32.totalorder %s8052_s16, %s6895_s23  ;;  %p6899_p11 = scmp.lt.u32.totalorder %s6895_s23, %s8052_s16 }
 0x143   :  { %p6901_p12 = pnand %p6899_p11, %p6896_p10 }
 0x145   :  { %6904 = shalt.err (!%p6901_p12)
}
 0x146   :  { %s6905_s26 = scalar_lea.vmem %s224_s22, 16  ;;  %s6909_s6 = scalar_lea.vmem %s224_s22, 32 }
 0x147   :  { %p6906_p13 = scmp.ne.s32.totalorder %s224_s22, %s6905_s26  ;;  %p6910_p0 = scmp.lt.s32.totalorder %s224_s22, %s224_s22 }
 0x148   :  { %p6911_p1 = scmp.lt.s32.totalorder %s6909_s6, %s6905_s26 }
 0x14a   :  { %p6912_p2 = por %p6911_p1, %p6910_p0 }
 0x14c   :  { %p6913_p3 = pnand %p6912_p2, %p6906_p13 }
 0x14e   :  { %6916 = shalt.err (!%p6913_p3)
}
 0x14f   :  { %226 = dma.hbm_to_vmem [thread:$0]  %s8052_s16, 16, %s224_s22, [#allocation27]  }
 0x150   :  { %s7008_s20 = smov [#allocation31]   ;;  %s6917_s27 = scalar_lea.hbm %s8054_s18, 16 }
 0x151   :  { %s243_s28 = sshll.u32 %s7008_s20, 4  ;;  %p6918_p4 = scmp.ne.s32.totalorder %s8054_s18, %s6917_s27  ;;  %s244_s28 = int_to_ptr.vmem [resolvable:$true] %s243_s28 }
 0x152   :  { %p6921_p5 = scmp.lt.u32.totalorder %s6917_s27, %s8054_s18 }
 0x154   :  { %p6923_p6 = pnand %p6921_p5, %p6918_p4 }
 0x156   :  { %6926 = shalt.err (!%p6923_p6)
}
 0x157   :  { %s6927_s24 = scalar_lea.vmem %s244_s28, 16  ;;  %s6931_s16 = scalar_lea.vmem %s244_s28, 32 }
 0x158   :  { %p6928_p7 = scmp.ne.s32.totalorder %s244_s28, %s6927_s24  ;;  %p6932_p8 = scmp.lt.s32.totalorder %s244_s28, %s244_s28 }
 0x159   :  { %p6933_p9 = scmp.lt.s32.totalorder %s6931_s16, %s6927_s24 }
 0x15b   :  { %p6934_p10 = por %p6933_p9, %p6932_p8 }
 0x15d   :  { %p6935_p11 = pnand %p6934_p10, %p6928_p7 }
 0x15f   :  { %6938 = shalt.err (!%p6935_p11)
}
 0x160   :  { %246 = dma.hbm_to_vmem [thread:$0]  %s8054_s18, 16, %s244_s28, [#allocation30]  }
 0x161   :  { %6961 = dma.done.wait [#allocation3], 256  }
 0x162   :  { %6962 = vsyncadd [#allocation3], 4294967040 }
 0x163   :  { %6963 = dma.done.wait [#allocation6], 288  }
 0x164   :  { %6964 = vsyncadd [#allocation6], 4294967008 }
 0x165   :  { %6965 = dma.done.wait [#allocation9], 8192  }
 0x166   :  { %6966 = vsyncadd [#allocation9], 4294959104 }
 0x167   :  { %6967 = dma.done.wait [#allocation12], 4160  }
 0x168   :  { %6968 = vsyncadd [#allocation12], 4294963136 }
 0x169   :  { %6969 = dma.done.wait [#allocation15], 128  }
 0x16a   :  { %6970 = vsyncadd [#allocation15], 4294967168 }
 0x16b   :  { %6971 = dma.done.wait [#allocation18], 1040  }
 0x16c   :  { %6972 = vsyncadd [#allocation18], 4294966256 }
 0x16d   :  { %6973 = dma.done.wait [#allocation21], 4160  }
 0x16e   :  { %6974 = vsyncadd [#allocation21], 4294963136 }
 0x16f   :  { %6975 = dma.done.wait [#allocation24], 4112  }
 0x170   :  { %6976 = vsyncadd [#allocation24], 4294963184 }
 0x171   :  { %6977 = dma.done.wait [#allocation27], 32  }
 0x172   :  { %6978 = vsyncadd [#allocation27], 4294967264 }
 0x173   :  { %6979 = dma.done.wait [#allocation30], 32  }
 0x174   :  { %6980 = vsyncadd [#allocation30], 4294967264  ;;  %v7009_v0 = vmov 0.0   ;;  %vm7010_vm0 = vmmov 0   ;;  %v6265_v1 = vld [vmem:[#allocation8] sm:$0xff]   ;;  %v6267_v3 = vld [vmem:[#allocation8 + $0x8] sm:$0xff]   ;;  %v320_v7 = vlaneseq }
 0x175   :  { %5546 = vmatprep.subr.bf16.mxu0 %v7009_v0  ;;  %5566 = vmatprep.subr.bf16.mxu1 %v7009_v0  ;;  %v7386_v2 = vld [vmem:[#allocation10] sm:$0xff]   ;;  %v7390_v4 = vld [vmem:[#allocation10 + $0x8] sm:$0xff]   ;;  %v7011_v5 = vmov 1966171168   ;;  %v6269_v8 = vld [vmem:[#allocation8 + $0x10] sm:$0xff]   ;;  %vm776_vm1 = vcmask 261120  }
 0x176   :  { %5562 = vmatprep.mubr.msk.bf16.mxu0 %vm7010_vm0, %v7009_v0  ;;  %5582 = vmatprep.mubr.msk.bf16.mxu1 %vm7010_vm0, %v7009_v0  ;;  %v318_v6 = vunpack.c.l.s4 %v7011_v5  ;;  %v7395_v9 = vld [vmem:[#allocation10 + $0x10] sm:$0xff]   ;;  %v7398_v11 = vshrl.u32 %v320_v7, 7  ;;  %v6271_v12 = vld [vmem:[#allocation8 + $0x18] sm:$0xff]   ;;  %v6273_v15 = vld [vmem:[#allocation8 + $0x20] sm:$0xff]   ;;  %vm866_vm2 = vcmask 64512   ;;  %vm892_vm3 = vcmask 1043456  }
 0x177   :  { %5547 = vmatpush3.bf16.msra.mxu0 %v6265_v1  ;;  %5567 = vmatpush3.bf16.msra.mxu1 %v7386_v2  ;;  %v6272_v13 = vld [vmem:[#allocation10 + $0x18] sm:$0xff]   ;;  %v6274_v16 = vld [vmem:[#allocation10 + $0x20] sm:$0xff]   ;;  %v4999_v17 = vld.sshfl [vmem:[#allocation5] sm:$0x11 pattern:$0x75316420] }
 0x178   :  { %5548 = vmatprep.subr.bf16.mxu0 %v7009_v0  ;;  %5568 = vmatprep.subr.bf16.mxu1 %v7009_v0  ;;  %v319_v10 = vunpack.c.0.s8 %v318_v6  ;;  %v316_v18 = vcombine.high %v4999_v17, %v4999_v17  ;;  %v7407_v20 = vsub.s32 0, %v7398_v11  ;;  %v6275_v21 = vld [vmem:[#allocation8 + $0x28] sm:$0xff]   ;;  %v6277_v24 = vld [vmem:[#allocation8 + $0x30] sm:$0xff]   ;;  %v305_v25 = vld [vmem:[#allocation2] sm:$0xff]  ;;  %s7013_s18 = smov [#allocation32]  }
 0x179   :  { %v6276_v22 = vld [vmem:[#allocation10 + $0x28] sm:$0xff]   ;;  %v6278_v29 = vld [vmem:[#allocation10 + $0x30] sm:$0xff]   ;;  %v6279_v30 = vld [vmem:[#allocation8 + $0x38] sm:$0xff]   ;;  %s4978_s12 = sshll.u32 %s7013_s18, 4  ;;  %s4979_s12 = int_to_ptr.vmem [resolvable:$true] %s4978_s12 }
 0x17a   :  { %v322_v14 = vsub.s32 %v319_v10, %v7398_v11  ;;  %v306_v28 = vld [vmem:[#allocation2 + $0x8] sm:$0xff]  ;;  %v6280_v31 = vld [vmem:[#allocation10 + $0x38] sm:$0xff]   ;;  %v6283_v37 = vld [vmem:[#allocation11 + $0x10] sm:$0xff]   ;;  %s6939_s29 = scalar_lea.vmem %s4979_s12, 256  ;;  %p6944_p13 = scmp.lt.s32.totalorder %s4979_s12, %s4979_s12 }
 0x17b   :  { %5549 = vmatpush3.bf16.msra.mxu0 %v6267_v3  ;;  %5569 = vmatpush3.bf16.msra.mxu1 %v7390_v4  ;;  %v6281_v35 = vld [vmem:[#allocation11] sm:$0xff]   ;;  %v6282_v36 = vld [vmem:[#allocation11 + $0x8] sm:$0xff]   ;;  %v6284_v38 = vld [vmem:[#allocation11 + $0x18] sm:$0xff]   ;;  %p6940_p12 = scmp.ne.s32.totalorder %s4979_s12, %s6939_s29  ;;  %p6945_p0 = scmp.lt.s32.totalorder %s6939_s29, %s6939_s29 }
 0x17c   :  { %5550 = vmatprep.subr.bf16.mxu0 %v7009_v0  ;;  %5570 = vmatprep.subr.bf16.mxu1 %v7009_v0  ;;  %v323_v19 = vrot.slane %v4999_v17, %v322_v14  ;;  %v330_v23 = vrot.slane %v316_v18, %v322_v14  ;;  %v6285_v39 = vld [vmem:[#allocation11 + $0x20] sm:$0xff]   ;;  %v6286_v40 = vld [vmem:[#allocation11 + $0x28] sm:$0xff]   ;;  %v6287_v41 = vld [vmem:[#allocation11 + $0x30] sm:$0xff]  }
 0x17d   :  { %v343_v42 = vld [vmem:[#allocation7] sm:$0xff]  ;;  %v344_v43 = vld [vmem:[#allocation7 + $0x8] sm:$0xff]  ;;  %v5000_v46 = vld [vmem:[#allocation13] ss:$0 sm:$0xff]  ;;  %p6946_p1 = por %p6945_p0, %p6944_p13 }
 0x17e   :  { %v334_v26 = vrot.slane %v323_v19, %v7407_v20  ;;  %v338_v27 = vrot.slane %v330_v23, %v7407_v20  ;;  %v6288_v44 = vld [vmem:[#allocation11 + $0x38] sm:$0xff]   ;;  %v7449_v45 = vpack.c.bf16 %v344_v43, %v343_v42  ;;  %v5009_v47 = vld [vmem:[#allocation14] ss:$0 sm:$0xff]  ;;  %v5018_v6 = vld [vmem:[#allocation16] ss:$0 sm:$0xff] }
 0x17f   :  { %5551 = vmatpush3.bf16.msra.mxu0 %v6269_v8  ;;  %5571 = vmatpush3.bf16.msra.mxu1 %v7395_v9  ;;  %p6947_p2 = pnand %p6946_p1, %p6940_p12 }
 0x180   :  { %5552 = vmatprep.subr.bf16.mxu0 %v7009_v0  ;;  %5572 = vmatprep.subr.bf16.mxu1 %v7009_v0  ;;  %v7415_v32 = vadd.f32 %v334_v26, %v305_v25  ;;  %v7417_v33 = vadd.f32 %v338_v27, %v306_v28 }
 0x182   :  { %v7423_v34 = vpack.c.bf16 %v7417_v33, %v7415_v32 }
 0x183   :  { %5553 = vmatpush3.bf16.msra.mxu0 %v6271_v12  ;;  %5573 = vmatpush3.bf16.msra.mxu1 %v6272_v13 }
 0x184   :  { %5554 = vmatprep.subr.bf16.mxu0 %v7009_v0  ;;  %5574 = vmatprep.subr.bf16.mxu1 %v7009_v0 }
 0x187   :  { %5555 = vmatpush3.bf16.msra.mxu0 %v6273_v15  ;;  %5575 = vmatpush3.bf16.msra.mxu1 %v6274_v16 }
 0x188   :  { %5556 = vmatprep.subr.bf16.mxu0 %v7009_v0  ;;  %5576 = vmatprep.subr.bf16.mxu1 %v7009_v0 }
 0x18b   :  { %5557 = vmatpush3.bf16.msra.mxu0 %v6275_v21  ;;  %5577 = vmatpush3.bf16.msra.mxu1 %v6276_v22 }
 0x18c   :  { %5558 = vmatprep.subr.bf16.mxu0 %v7009_v0  ;;  %5578 = vmatprep.subr.bf16.mxu1 %v7009_v0 }
 0x18f   :  { %5559 = vmatpush3.bf16.msra.mxu0 %v6277_v24  ;;  %5579 = vmatpush3.bf16.msra.mxu1 %v6278_v29 }
 0x190   :  { %5560 = vmatprep.subr.bf16.mxu0 %v7009_v0  ;;  %5580 = vmatprep.subr.bf16.mxu1 %v7009_v0 }
 0x193   :  { %5561 = vmatpush3.bf16.msra.mxu0 %v6279_v30  ;;  %5581 = vmatpush3.bf16.msra.mxu1 %v6280_v31 }
 0x194   :  { %5586 = vmatprep.subr.bf16.mxu0 %v7009_v0  ;;  %5606 = vmatprep.subr.bf16.mxu1 %v7009_v0 }
 0x196   :  { %5563 = vmatmul.mubr.bf16.vlgmr.msra.gmra.mrb[0].mxu0 %v7423_v34  ;;  %5583 = vmatmul.mubr.bf16.vlgmr.msra.gmra.mrb[0].mxu1 %v7423_v34 }
 0x197   :  { %5587 = vmatpush3.bf16.msra.mxu0 %v7386_v2  ;;  %5602 = vmatprep.mubr.msk.bf16.mxu0 %vm7010_vm0, %v7009_v0 }
 0x198   :  { %5588 = vmatprep.subr.bf16.mxu0 %v7009_v0  ;;  %5607 = vmatpush3.bf16.msra.mxu1 %v6281_v35 }
 0x199   :  { %5622 = vmatprep.mubr.msk.bf16.mxu1 %vm7010_vm0, %v7009_v0  ;;  %5608 = vmatprep.subr.bf16.mxu1 %v7009_v0 }
 0x19b   :  { %5589 = vmatpush3.bf16.msra.mxu0 %v7390_v4 }
 0x19c   :  { %5590 = vmatprep.subr.bf16.mxu0 %v7009_v0  ;;  %5609 = vmatpush3.bf16.msra.mxu1 %v6282_v36 }
 0x19d   :  { %5610 = vmatprep.subr.bf16.mxu1 %v7009_v0 }
 0x19f   :  { %5591 = vmatpush3.bf16.msra.mxu0 %v7395_v9 }
 0x1a0   :  { %5592 = vmatprep.subr.bf16.mxu0 %v7009_v0  ;;  %5611 = vmatpush3.bf16.msra.mxu1 %v6283_v37 }
 0x1a1   :  { %5612 = vmatprep.subr.bf16.mxu1 %v7009_v0 }
 0x1a3   :  { %5593 = vmatpush3.bf16.msra.mxu0 %v6272_v13 }
 0x1a4   :  { %5594 = vmatprep.subr.bf16.mxu0 %v7009_v0  ;;  %5613 = vmatpush3.bf16.msra.mxu1 %v6284_v38 }
 0x1a5   :  { %5614 = vmatprep.subr.bf16.mxu1 %v7009_v0 }
 0x1a7   :  { %5595 = vmatpush3.bf16.msra.mxu0 %v6274_v16 }
 0x1a8   :  { %5596 = vmatprep.subr.bf16.mxu0 %v7009_v0  ;;  %5615 = vmatpush3.bf16.msra.mxu1 %v6285_v39 }
 0x1a9   :  { %5616 = vmatprep.subr.bf16.mxu1 %v7009_v0 }
 0x1ab   :  { %5597 = vmatpush3.bf16.msra.mxu0 %v6276_v22 }
 0x1ac   :  { %5598 = vmatprep.subr.bf16.mxu0 %v7009_v0  ;;  %5617 = vmatpush3.bf16.msra.mxu1 %v6286_v40 }
 0x1ad   :  { %5618 = vmatprep.subr.bf16.mxu1 %v7009_v0 }
 0x1af   :  { %5599 = vmatpush3.bf16.msra.mxu0 %v6278_v29 }
 0x1b0   :  { %5600 = vmatprep.subr.bf16.mxu0 %v7009_v0  ;;  %5619 = vmatpush3.bf16.msra.mxu1 %v6287_v41 }
 0x1b1   :  { %5620 = vmatprep.subr.bf16.mxu1 %v7009_v0 }
 0x1b3   :  { %5601 = vmatpush3.bf16.msra.mxu0 %v6280_v31 }
 0x1b4   :  { %5626 = vmatprep.subr.bf16.mxu0 %v7009_v0  ;;  %5621 = vmatpush3.bf16.msra.mxu1 %v6288_v44 }
 0x1b5   :  { %5646 = vmatprep.subr.bf16.mxu1 %v7009_v0 }
 0x1b6   :  { %5603 = vmatmul.mubr.bf16.vlgmr.msra.gmra.mrb[4].mxu0 %v7449_v45 }
 0x1b7   :  { %5627 = vmatpush3.bf16.msra.mxu0 %v6281_v35  ;;  %5642 = vmatprep.mubr.msk.bf16.mxu0 %vm7010_vm0, %v7009_v0 }
 0x1b8   :  { %5628 = vmatprep.subr.bf16.mxu0 %v7009_v0  ;;  %5623 = vmatmul.mubr.bf16.vlgmr.msra.gmra.mrb[4].mxu1 %v7423_v34 }
 0x1b9   :  { %5648 = vmatprep.mubr.msk.bf16.mxu1 %vm7010_vm0, %v7009_v0 }
 0x1bb   :  { %5629 = vmatpush3.bf16.msra.mxu0 %v6282_v36 }
 0x1bc   :  { %5630 = vmatprep.subr.bf16.mxu0 %v7009_v0 }
 0x1bf   :  { %5631 = vmatpush3.bf16.msra.mxu0 %v6283_v37 }
 0x1c0   :  { %5632 = vmatprep.subr.bf16.mxu0 %v7009_v0 }
 0x1c3   :  { %5633 = vmatpush3.bf16.msra.mxu0 %v6284_v38 }
 0x1c4   :  { %5634 = vmatprep.subr.bf16.mxu0 %v7009_v0 }
 0x1c7   :  { %5635 = vmatpush3.bf16.msra.mxu0 %v6285_v39 }
 0x1c8   :  { %5636 = vmatprep.subr.bf16.mxu0 %v7009_v0 }
 0x1cb   :  { %5637 = vmatpush3.bf16.msra.mxu0 %v6286_v40 }
 0x1cc   :  { %5638 = vmatprep.subr.bf16.mxu0 %v7009_v0 }
 0x1cf   :  { %5639 = vmatpush3.bf16.msra.mxu0 %v6287_v41 }
 0x1d0   :  { %5640 = vmatprep.subr.bf16.mxu0 %v7009_v0 }
 0x1d3   :  { %5641 = vmatpush3.bf16.msra.mxu0 %v6288_v44 }
 0x1d4   :  { %5670 = vmatprep.subr.bf16.mxu0 %v7009_v0 }
 0x1d6   :  { %5643 = vmatmul.mubr.bf16.vlgmr.msra.gmra.mrb[8].mxu0 %v7449_v45 }
 0x1d7   :  { %5672 = vmatprep.mubr.msk.bf16.mxu0 %vm7010_vm0, %v7009_v0 }
 0x269   :  { %v488_v48 = vpop.f32.mrb[0].mxu0  ;;  %v587_v50 = vpop.f32.mrb[0].mxu1 }
 0x26a   :  { %v489_v49 = vadd.f32 %v5000_v46, %v488_v48  ;;  %v5564_v51 = vpop.f32.mrb[1].mxu0  ;;  %v588_v52 = vadd.f32 %v5009_v47, %v587_v50  ;;  %v5584_v53 = vpop.f32.mrb[1].mxu1 }
 0x26b   :  { %v491_v54 = vpop.f32.mrb[2].mxu0  ;;  %v590_v57 = vpop.f32.mrb[2].mxu1 }
 0x26c   :  { %v495_v55 = vmul.f32 0.17677669, %v489_v49  ;;  %v492_v56 = vadd.f32 %v5000_v46, %v491_v54  ;;  %v5565_v58 = vpop.f32.mrb[3].mxu0  ;;  %v591_v59 = vadd.f32 %v5009_v47, %v590_v57  ;;  %v5585_v60 = vpop.f32.mrb[3].mxu1 }
 0x26e   :  { %v496_v61 = vmul.f32 0.17677669, %v492_v56  ;;  %v594_v62 = vpack.c.bf16 %v591_v59, %v588_v52 }
 0x270   :  { %v7471_v63 = vpack.c.bf16 %v496_v61, %v495_v55  ;;  %v988_v1 = vrot.slane %v594_v62, 4  ;;  %v781_v2 = vsel %vm776_vm1, %v594_v62, 0 }
 0x271   :  { %5647 = vmatpush3.bf16.xpose.msra.mxu1 %v781_v2 }
 0x272   :  { %v993_v3 = vsel %vm776_vm1, %v988_v1, 0  ;;  %5652 = vmatprep.subr.bf16.mxu1 %v7009_v0  ;;  %v986_v4 = vrot.slane %v7471_v63, 4 }
 0x273   :  { %5671 = vmatpush3.bf16.xpose.msra.mxu0 %v993_v3 }
 0x274   :  { %5682 = vmatprep.subr.bf16.mxu0 %v7009_v0 }
 0x278   :  { %5649 = vmatmul.mubr.msk.bf16.vlgmr.msra.gmra.mrb[8].mxu1 %vm776_vm1, %v7471_v63 }
 0x279   :  { %5654 = vmatprep.mubr.msk.bf16.mxu1 %vm7010_vm0, %v7009_v0 }
 0x27a   :  { %5673 = vmatmul.mubr.msk.bf16.vlgmr.msra.gmra.mrb[12].mxu0 %vm776_vm1, %v986_v4 }
 0x27b   :  { %5684 = vmatprep.mubr.msk.bf16.mxu0 %vm7010_vm0, %v7009_v0 }
 0x289   :  { %v629_v5 = vpop.f32.mrb[4].mxu0 }
 0x28a   :  { %v5604_v7 = vpop.f32.mrb[5].mxu0  ;;  %v630_v10 = vadd.f32 %v5009_v47, %v629_v5 }
 0x28b   :  { %v632_v8 = vpop.f32.mrb[6].mxu0  ;;  %v726_v9 = vpop.f32.mrb[4].mxu1 }
 0x28c   :  { %v633_v12 = vadd.f32 %v5009_v47, %v632_v8  ;;  %v5605_v13 = vpop.f32.mrb[7].mxu0  ;;  %v727_v14 = vadd.f32 %v5018_v6, %v726_v9  ;;  %v5624_v15 = vpop.f32.mrb[5].mxu1 }
 0x28d   :  { %v729_v16 = vpop.f32.mrb[6].mxu1  ;;  %v6289_v15 = vld [vmem:[#allocation8 + $0x40] sm:$0xff]  }
 0x28e   :  { %v7487_v17 = vpack.c.bf16 %v633_v12, %v630_v10  ;;  %v730_v18 = vadd.f32 %v5018_v6, %v729_v16  ;;  %v5625_v19 = vpop.f32.mrb[7].mxu1  ;;  %v6292_v16 = vld [vmem:[#allocation8 + $0x58] sm:$0xff]  }
 0x28f   :  { %v6295_v19 = vld [vmem:[#allocation8 + $0x70] sm:$0xff]  }
 0x290   :  { %v824_v21 = vsel %vm776_vm1, %v7487_v17, 0  ;;  %v7491_v22 = vpack.c.bf16 %v730_v18, %v727_v14  ;;  %v1036_v1 = vrot.slane %v7487_v17, 4  ;;  %v6293_v17 = vld [vmem:[#allocation8 + $0x60] sm:$0xff]   ;;  %v6294_v18 = vld [vmem:[#allocation8 + $0x68] sm:$0xff]  }
 0x291   :  { %5653 = vmatpush3.bf16.xpose.msra.mxu1 %v824_v21  ;;  %v6297_v21 = vld [vmem:[#allocation8 + $0x78] sm:$0xff]  }
 0x292   :  { %5658 = vmatprep.subr.bf16.mxu1 %v7009_v0  ;;  %v940_v61 = vsel %vm892_vm3, %v7491_v22, 0  ;;  %v1038_v3 = vsel %vm776_vm1, %v1036_v1, 0  ;;  %v6309_v1 = vld [vmem:[#allocation11 + $0x60] sm:$0xff]  }
 0x298   :  { %5655 = vmatmul.mubr.msk.bf16.vlgmr.msra.gmra.mrb[12].mxu1 %vm776_vm1, %v7471_v63  ;;  %v6290_v63 = vld [vmem:[#allocation8 + $0x48] sm:$0xff]  }
 0x299   :  { %5660 = vmatprep.mubr.msk.bf16.mxu1 %vm7010_vm0, %v7009_v0 }
 0x2a9   :  { %v768_v23 = vpop.f32.mrb[8].mxu0 }
 0x2aa   :  { %v769_v24 = vadd.f32 %v5018_v6, %v768_v23  ;;  %v5644_v25 = vpop.f32.mrb[9].mxu0  ;;  %v6296_v23 = vld [vmem:[#allocation10 + $0x40] sm:$0xff]  }
 0x2ab   :  { %v771_v26 = vpop.f32.mrb[10].mxu0  ;;  %v6299_v25 = vld [vmem:[#allocation10 + $0x50] sm:$0xff]  }
 0x2ac   :  { %v772_v27 = vadd.f32 %v5018_v6, %v771_v26  ;;  %v5645_v28 = vpop.f32.mrb[11].mxu0  ;;  %v6300_v26 = vld [vmem:[#allocation10 + $0x58] sm:$0xff]  }
 0x2ad   :  { %v6302_v28 = vld [vmem:[#allocation10 + $0x68] sm:$0xff]  }
 0x2ae   :  { %v775_v29 = vpack.c.bf16 %v772_v27, %v769_v24  ;;  %v6298_v24 = vld [vmem:[#allocation10 + $0x48] sm:$0xff]   ;;  %v6301_v27 = vld [vmem:[#allocation10 + $0x60] sm:$0xff]  }
 0x2b0   :  { %v1103_v49 = vrot.slane %v775_v29, 4  ;;  %v894_v50 = vsel %vm892_vm3, %v775_v29, 0  ;;  %v6303_v29 = vld [vmem:[#allocation10 + $0x70] sm:$0xff]  }
 0x2b1   :  { %5659 = vmatpush3.bf16.msra.mxu1 %v894_v50 }
 0x2b2   :  { %v1108_v51 = vsel %vm892_vm3, %v1103_v49, 0  ;;  %5664 = vmatprep.subr.bf16.mxu1 %v7009_v0  ;;  %v6306_v49 = vld [vmem:[#allocation11 + $0x48] sm:$0xff]  }
 0x2b3   :  { %5683 = vmatpush3.bf16.msra.mxu0 %v1108_v51 }
 0x2b4   :  { %5688 = vmatprep.subr.bf16.mxu0 %v7009_v0 }
 0x34b   :  { %v817_v30 = vpop.f32.mrb[8].mxu1 }
 0x34c   :  { %v5650_v31 = vpop.f32.mrb[9].mxu1  ;;  %v867_v35 = vsel %vm866_vm2, %v817_v30, -inf }
 0x34d   :  { %868 = vmax.xlane.f32.xlu0 %v867_v35  ;;  %v820_v36 = vpop.f32.mrb[10].mxu1  ;;  %v7499_v37 = vpop.f32.mrb[12].mxu0 }
 0x34e   :  { %v5651_v38 = vpop.f32.mrb[11].mxu1  ;;  %v5674_v39 = vpop.f32.mrb[13].mxu0  ;;  %v1080_v40 = vsel %vm866_vm2, %v7499_v37, -inf }
 0x34f   :  { %1081 = vmax.xlane.f32.xlu1 %v1080_v40  ;;  %v1032_v41 = vpop.f32.mrb[14].mxu0 }
 0x350   :  { %v5675_v42 = vpop.f32.mrb[15].mxu0 }
 0x351   :  { %v1151_v42 = vrot.slane %v7491_v22, 4 }
 0x36b   :  { %v860_v43 = vpop.f32.mrb[12].mxu1 }
 0x36c   :  { %v5656_v44 = vpop.f32.mrb[13].mxu1  ;;  %v870_v46 = vsel %vm866_vm2, %v860_v43, -inf }
 0x36d   :  { %871 = vmax.xlane.f32.xlu0 %v870_v46  ;;  %v863_v47 = vpop.f32.mrb[14].mxu1  ;;  %v1156_v46 = vsel %vm892_vm3, %v1151_v42, 0 }
 0x36e   :  { %v5657_v48 = vpop.f32.mrb[15].mxu1  ;;  %v6305_v47 = vld [vmem:[#allocation11 + $0x40] sm:$0xff]  }
 0x36f   :  { %v5035_v48 = vld [vmem:[#allocation13 + $0x1] ss:$0 sm:$0xff] }
 0x3da   :  { %v869_v52 = vpop.xlane.xlu0 %868 }
 0x3dc   :  { %v1082_v31 = vpop.xlane.xlu1 %1081 }
 0x3fa   :  { %v872_v53 = vpop.xlane.xlu0 %871 }
 0x3fb   :  { %v873_v54 = vmax.f32 %v869_v52, %v872_v53 }
 0x3fd   :  { %v877_v55 = vsub.f32 %v860_v43, %v873_v54  ;;  %v874_v57 = vsub.f32 %v817_v30, %v873_v54  ;;  %v6304_v30 = vld [vmem:[#allocation10 + $0x78] sm:$0xff]   ;;  %v6307_v54 = vld [vmem:[#allocation11 + $0x50] sm:$0xff]  }
 0x3ff   :  { %v878_v56 = vmul.f32 1.442695, %v877_v55  ;;  %v875_v58 = vmul.f32 1.442695, %v874_v57 }
 0x401   :  { %6449 = vpow2.f32 %v878_v56 }
 0x402   :  { %6451 = vpow2.f32 %v875_v58 }
 0x40b   :  { %v7508_v59 = vpop.eup %6449 }
 0x40c   :  { %v888_v60 = vpack.c.bf16 %v7508_v59, %v7508_v59  ;;  %v7518_v62 = vpop.eup %6451 }
 0x40d   :  { %v887_v2 = vpack.c.bf16 %v7518_v62, %v7518_v62 }
 0x40e   :  { %5661 = vmatmul.mubr.msk.bf16.vlgmr.msra.gmra.mrb[16].mxu1 %vm866_vm2, %v888_v60  ;;  %v6308_v60 = vld [vmem:[#allocation11 + $0x58] sm:$0xff]  }
 0x40f   :  { %5665 = vmatpush3.bf16.msra.mxu1 %v940_v61  ;;  %5666 = vmatprep.mubr.msk.bf16.mxu1 %vm7010_vm0, %v7009_v0 }
 0x410   :  { %5676 = vmatprep.subr.bf16.mxu1 %v7009_v0 }
 0x41a   :  { %5667 = vmatmul.mubr.msk.bf16.vlgmr.msra.gmra.mrb[16].mxu1 %vm866_vm2, %v887_v2  ;;  %v6310_v2 = vld [vmem:[#allocation11 + $0x68] sm:$0xff]  }
 0x41b   :  { %5677 = vmatpush3.bf16.xpose.msra.mxu1 %v1038_v3  ;;  %5678 = vmatprep.mubr.msk.bf16.mxu1 %vm7010_vm0, %v7009_v0  ;;  %v6311_v3 = vld [vmem:[#allocation11 + $0x70] sm:$0xff]  }
 0x41c   :  { %5694 = vmatprep.subr.bf16.mxu1 %v7009_v0 }
 0x422   :  { %5679 = vmatmul.mubr.msk.bf16.vlgmr.msra.gmra.mrb[20].mxu1 %vm776_vm1, %v986_v4  ;;  %v6291_v4 = vld [vmem:[#allocation8 + $0x50] sm:$0xff]  }
 0x423   :  { %5710 = vmatprep.mubr.msk.bf16.mxu1 %vm7010_vm0, %v7009_v0  ;;  %5695 = vmatpush3.bf16.msra.mxu1 %v6289_v15 }
 0x424   :  { %5696 = vmatprep.subr.bf16.mxu1 %v7009_v0 }
 0x427   :  { %5697 = vmatpush3.bf16.msra.mxu1 %v6290_v63 }
 0x428   :  { %5698 = vmatprep.subr.bf16.mxu1 %v7009_v0 }
 0x42b   :  { %5699 = vmatpush3.bf16.msra.mxu1 %v6291_v4 }
 0x42c   :  { %5700 = vmatprep.subr.bf16.mxu1 %v7009_v0 }
 0x42f   :  { %5701 = vmatpush3.bf16.msra.mxu1 %v6292_v16 }
 0x430   :  { %5702 = vmatprep.subr.bf16.mxu1 %v7009_v0 }
 0x433   :  { %5703 = vmatpush3.bf16.msra.mxu1 %v6293_v17 }
 0x434   :  { %5704 = vmatprep.subr.bf16.mxu1 %v7009_v0 }
 0x437   :  { %5705 = vmatpush3.bf16.msra.mxu1 %v6294_v18 }
 0x438   :  { %5706 = vmatprep.subr.bf16.mxu1 %v7009_v0 }
 0x43b   :  { %5707 = vmatpush3.bf16.msra.mxu1 %v6295_v19 }
 0x43c   :  { %5708 = vmatprep.subr.bf16.mxu1 %v7009_v0 }
 0x43f   :  { %5709 = vmatpush3.bf16.msra.mxu1 %v6297_v21 }
 0x440   :  { %5734 = vmatprep.subr.bf16.mxu1 %v7009_v0 }
 0x442   :  { %5711 = vmatmul.mubr.bf16.vlgmr.msra.gmra.mrb[24].mxu1 %v7423_v34 }
 0x443   :  { %5735 = vmatpush3.bf16.msra.mxu1 %v6296_v23  ;;  %5750 = vmatprep.mubr.msk.bf16.mxu1 %vm7010_vm0, %v7009_v0 }
 0x444   :  { %5736 = vmatprep.subr.bf16.mxu1 %v7009_v0 }
 0x447   :  { %5737 = vmatpush3.bf16.msra.mxu1 %v6298_v24 }
 0x448   :  { %5738 = vmatprep.subr.bf16.mxu1 %v7009_v0 }
 0x44b   :  { %5739 = vmatpush3.bf16.msra.mxu1 %v6299_v25 }
 0x44c   :  { %5740 = vmatprep.subr.bf16.mxu1 %v7009_v0 }
 0x44f   :  { %5741 = vmatpush3.bf16.msra.mxu1 %v6300_v26 }
 0x450   :  { %5742 = vmatprep.subr.bf16.mxu1 %v7009_v0 }
 0x453   :  { %5743 = vmatpush3.bf16.msra.mxu1 %v6301_v27 }
 0x454   :  { %5744 = vmatprep.subr.bf16.mxu1 %v7009_v0 }
 0x457   :  { %5745 = vmatpush3.bf16.msra.mxu1 %v6302_v28 }
 0x458   :  { %5746 = vmatprep.subr.bf16.mxu1 %v7009_v0 }
 0x45b   :  { %5747 = vmatpush3.bf16.msra.mxu1 %v6303_v29 }
 0x45c   :  { %5748 = vmatprep.subr.bf16.mxu1 %v7009_v0 }
 0x45f   :  { %5749 = vmatpush3.bf16.msra.mxu1 %v6304_v30 }
 0x460   :  { %5774 = vmatprep.subr.bf16.mxu1 %v7009_v0 }
 0x462   :  { %5751 = vmatmul.mubr.bf16.vlgmr.msra.gmra.mrb[28].mxu1 %v7449_v45 }
 0x463   :  { %5790 = vmatprep.mubr.msk.bf16.mxu1 %vm7010_vm0, %v7009_v0  ;;  %5775 = vmatpush3.bf16.msra.mxu1 %v6305_v47 }
 0x464   :  { %5776 = vmatprep.subr.bf16.mxu1 %v7009_v0 }
 0x467   :  { %5777 = vmatpush3.bf16.msra.mxu1 %v6306_v49 }
 0x468   :  { %5778 = vmatprep.subr.bf16.mxu1 %v7009_v0 }
 0x46b   :  { %5779 = vmatpush3.bf16.msra.mxu1 %v6307_v54 }
 0x46c   :  { %5780 = vmatprep.subr.bf16.mxu1 %v7009_v0 }
 0x46f   :  { %5781 = vmatpush3.bf16.msra.mxu1 %v6308_v60 }
 0x470   :  { %5782 = vmatprep.subr.bf16.mxu1 %v7009_v0 }
 0x473   :  { %5783 = vmatpush3.bf16.msra.mxu1 %v6309_v1 }
 0x474   :  { %5784 = vmatprep.subr.bf16.mxu1 %v7009_v0 }
 0x477   :  { %5785 = vmatpush3.bf16.msra.mxu1 %v6310_v2 }
 0x478   :  { %5786 = vmatprep.subr.bf16.mxu1 %v7009_v0 }
 0x47b   :  { %5787 = vmatpush3.bf16.msra.mxu1 %v6311_v3 }
 0x47c   :  { %5788 = vmatprep.subr.bf16.mxu1 %v7009_v0 }
 0x4ed   :  { %v7533_v5 = vpop.f32.mrb[16].mxu1 }
 0x4ee   :  { %v5668_v6 = vpop.f32.mrb[17].mxu1 }
 0x4ef   :  { %v979_v7 = vpop.f32.mrb[18].mxu1  ;;  %v6312_v6 = vld [vmem:[#allocation11 + $0x78] sm:$0xff]  }
 0x4f0   :  { %v5669_v8 = vpop.f32.mrb[19].mxu1  ;;  %5789 = vmatpush3.bf16.msra.mxu1 %v6312_v6 }
 0x4f1   :  { %5818 = vmatprep.subr.bf16.mxu1 %v7009_v0  ;;  %v5044_v8 = vld [vmem:[#allocation14 + $0x1] ss:$0 sm:$0xff] }
 0x4f3   :  { %5791 = vmatmul.mubr.bf16.vlgmr.msra.gmra.mrb[32].mxu1 %v7449_v45 }
 0x4f4   :  { %5822 = vmatprep.mubr.msk.bf16.mxu1 %vm7010_vm0, %v7009_v0 }
 0x4f5   :  { %v1074_v9 = vpop.f32.mrb[20].mxu1 }
 0x4f6   :  { %v5680_v10 = vpop.f32.mrb[21].mxu1  ;;  %v1083_v12 = vsel %vm866_vm2, %v1074_v9, -inf }
 0x4f7   :  { %v1077_v13 = vpop.f32.mrb[22].mxu1  ;;  %1084 = vmax.xlane.f32.xlu1 %v1083_v12 }
 0x4f8   :  { %v5681_v14 = vpop.f32.mrb[23].mxu1 }
 0x515   :  { %v1347_v50 = vpop.f32.mrb[24].mxu1 }
 0x516   :  { %v1348_v51 = vadd.f32 %v5035_v48, %v1347_v50  ;;  %v5712_v52 = vpop.f32.mrb[25].mxu1 }
 0x517   :  { %v1350_v53 = vpop.f32.mrb[26].mxu1 }
 0x518   :  { %v1354_v55 = vmul.f32 0.17677669, %v1348_v51  ;;  %v1351_v56 = vadd.f32 %v5035_v48, %v1350_v53  ;;  %v5713_v57 = vpop.f32.mrb[27].mxu1 }
 0x51a   :  { %v1355_v58 = vmul.f32 0.17677669, %v1351_v56 }
 0x51c   :  { %v7591_v61 = vpack.c.bf16 %v1355_v58, %v1354_v55 }
 0x535   :  { %v1489_v7 = vpop.f32.mrb[28].mxu1 }
 0x536   :  { %v1490_v10 = vadd.f32 %v5044_v8, %v1489_v7 }
 0x584   :  { %v1085_v35 = vpop.xlane.xlu1 %1084 }
 0x585   :  { %v1086_v36 = vmax.f32 %v1082_v31, %v1085_v35 }
 0x587   :  { %v1090_v38 = vsub.f32 %v1074_v9, %v1086_v36  ;;  %v1087_v40 = vsub.f32 %v7499_v37, %v1086_v36  ;;  %v5752_v9 = vpop.f32.mrb[29].mxu1 }
 0x588   :  { %v1492_v12 = vpop.f32.mrb[30].mxu1 }
 0x589   :  { %v1091_v39 = vmul.f32 1.442695, %v1090_v38  ;;  %v1088_v41 = vmul.f32 1.442695, %v1087_v40  ;;  %v1493_v13 = vadd.f32 %v5044_v8, %v1492_v12  ;;  %v5753_v14 = vpop.f32.mrb[31].mxu1 }
 0x58b   :  { %6453 = vpow2.f32 %v1091_v39  ;;  %v7611_v15 = vpack.c.bf16 %v1493_v13, %v1490_v10 }
 0x58c   :  { %6455 = vpow2.f32 %v1088_v41 }
 0x595   :  { %v7560_v43 = vpop.eup %6453 }
 0x596   :  { %v1101_v44 = vpack.c.bf16 %v7560_v43, %v7560_v43  ;;  %v7569_v37 = vpop.eup %6455 }
 0x597   :  { %v1100_v22 = vpack.c.bf16 %v7569_v37, %v7569_v37 }
 0x598   :  { %5685 = vmatmul.mubr.msk.bf16.vlgmr.msra.gmra.mrb[16].mxu0 %vm866_vm2, %v1101_v44 }
 0x599   :  { %5689 = vmatpush3.bf16.msra.mxu0 %v1156_v46  ;;  %5690 = vmatprep.mubr.msk.bf16.mxu0 %vm7010_vm0, %v7009_v0 }
 0x59a   :  { %5714 = vmatprep.subr.bf16.mxu0 %v7009_v0 }
 0x5a4   :  { %5691 = vmatmul.mubr.msk.bf16.vlgmr.msra.gmra.mrb[16].mxu0 %vm866_vm2, %v1100_v22 }
 0x5a5   :  { %5715 = vmatpush3.bf16.msra.mxu0 %v6296_v23  ;;  %5730 = vmatprep.mubr.msk.bf16.mxu0 %vm7010_vm0, %v7009_v0 }
 0x5a6   :  { %5716 = vmatprep.subr.bf16.mxu0 %v7009_v0 }
 0x5a9   :  { %5717 = vmatpush3.bf16.msra.mxu0 %v6298_v24 }
 0x5aa   :  { %5718 = vmatprep.subr.bf16.mxu0 %v7009_v0 }
 0x5ad   :  { %5719 = vmatpush3.bf16.msra.mxu0 %v6299_v25 }
 0x5ae   :  { %5720 = vmatprep.subr.bf16.mxu0 %v7009_v0 }
 0x5b1   :  { %5721 = vmatpush3.bf16.msra.mxu0 %v6300_v26 }
 0x5b2   :  { %5722 = vmatprep.subr.bf16.mxu0 %v7009_v0 }
 0x5b5   :  { %5723 = vmatpush3.bf16.msra.mxu0 %v6301_v27 }
 0x5b6   :  { %5724 = vmatprep.subr.bf16.mxu0 %v7009_v0 }
 0x5b9   :  { %5725 = vmatpush3.bf16.msra.mxu0 %v6302_v28  ;;  %v1684_v28 = vsel %vm776_vm1, %v7611_v15, 0 }
 0x5ba   :  { %5726 = vmatprep.subr.bf16.mxu0 %v7009_v0 }
 0x5bd   :  { %5727 = vmatpush3.bf16.msra.mxu0 %v6303_v29  ;;  %v5053_v29 = vld [vmem:[#allocation16 + $0x1] ss:$0 sm:$0xff] }
 0x5be   :  { %5728 = vmatprep.subr.bf16.mxu0 %v7009_v0 }
 0x5c1   :  { %5729 = vmatpush3.bf16.msra.mxu0 %v6304_v30 }
 0x5c2   :  { %5754 = vmatprep.subr.bf16.mxu0 %v7009_v0 }
 0x5c4   :  { %5731 = vmatmul.mubr.bf16.vlgmr.msra.gmra.mrb[20].mxu0 %v7423_v34 }
 0x5c5   :  { %5770 = vmatprep.mubr.msk.bf16.mxu0 %vm7010_vm0, %v7009_v0  ;;  %5755 = vmatpush3.bf16.msra.mxu0 %v6305_v47 }
 0x5c6   :  { %5756 = vmatprep.subr.bf16.mxu0 %v7009_v0  ;;  %v1629_v52 = vpop.f32.mrb[32].mxu1 }
 0x5c7   :  { %v1630_v53 = vadd.f32 %v5053_v29, %v1629_v52 }
 0x5c9   :  { %5757 = vmatpush3.bf16.msra.mxu0 %v6306_v49 }
 0x5ca   :  { %5758 = vmatprep.subr.bf16.mxu0 %v7009_v0 }
 0x5cd   :  { %5759 = vmatpush3.bf16.msra.mxu0 %v6307_v54  ;;  %v5792_v54 = vpop.f32.mrb[33].mxu1 }
 0x5ce   :  { %5760 = vmatprep.subr.bf16.mxu0 %v7009_v0  ;;  %v1632_v55 = vpop.f32.mrb[34].mxu1 }
 0x5cf   :  { %v1633_v56 = vadd.f32 %v5053_v29, %v1632_v55  ;;  %v5793_v57 = vpop.f32.mrb[35].mxu1  ;;  %v2004_v55 = vrot.slane %v7611_v15, 4 }
 0x5d1   :  { %5761 = vmatpush3.bf16.msra.mxu0 %v6308_v60  ;;  %v1636_v58 = vpack.c.bf16 %v1633_v56, %v1630_v53 }
 0x5d2   :  { %5762 = vmatprep.subr.bf16.mxu0 %v7009_v0 }
 0x5d3   :  { %v1752_v60 = vsel %vm892_vm3, %v1636_v58, 0 }
 0x5d5   :  { %5763 = vmatpush3.bf16.msra.mxu0 %v6309_v1 }
 0x5d6   :  { %5764 = vmatprep.subr.bf16.mxu0 %v7009_v0 }
 0x5d9   :  { %5765 = vmatpush3.bf16.msra.mxu0 %v6310_v2 }
 0x5da   :  { %5766 = vmatprep.subr.bf16.mxu0 %v7009_v0 }
 0x5dd   :  { %5767 = vmatpush3.bf16.msra.mxu0 %v6311_v3 }
 0x5de   :  { %5768 = vmatprep.subr.bf16.mxu0 %v7009_v0 }
 0x5e1   :  { %5769 = vmatpush3.bf16.msra.mxu0 %v6312_v6 }
 0x5e2   :  { %5794 = vmatprep.subr.bf16.mxu0 %v7009_v0 }
 0x5e4   :  { %5771 = vmatmul.mubr.bf16.vlgmr.msra.gmra.mrb[24].mxu0 %v7423_v34 }
 0x5e5   :  { %5796 = vmatprep.mubr.msk.bf16.mxu0 %vm7010_vm0, %v7009_v0 }
 0x677   :  { %v7613_v63 = vpop.f32.mrb[16].mxu0 }
 0x678   :  { %v5692_v4 = vpop.f32.mrb[17].mxu0 }
 0x679   :  { %v1195_v16 = vpop.f32.mrb[18].mxu0 }
 0x67a   :  { %v5693_v17 = vpop.f32.mrb[19].mxu0 }
 0x67b   :  { %v880_v17 = vsel %vm866_vm2, %v7518_v62, 0.0  ;;  %v2071_v62 = vrot.slane %v1636_v58, 4 }
 0x697   :  { %v1447_v18 = vpop.f32.mrb[20].mxu0 }
 0x698   :  { %v5732_v19 = vpop.f32.mrb[21].mxu0  ;;  %v1448_v23 = vadd.f32 %v5044_v8, %v1447_v18  ;;  %v883_v18 = vsel %vm866_vm2, %v7508_v59, 0.0  ;;  %v1954_v59 = vrot.slane %v7591_v61, 4 }
 0x699   :  { %v1450_v21 = vpop.f32.mrb[22].mxu0 }
 0x69a   :  { %v1451_v24 = vadd.f32 %v5044_v8, %v1450_v21  ;;  %v5733_v25 = vpop.f32.mrb[23].mxu0 }
 0x69b   :  { %v6313_v25 = vld [vmem:[#allocation17 + $0x10] sm:$0xff]  }
 0x69c   :  { %v7615_v26 = vpack.c.bf16 %v1451_v24, %v1448_v23  ;;  %v2076_v24 = vsel %vm892_vm3, %v2071_v62, 0  ;;  %5819 = vmatpush3.bf16.msra.mxu1 %v6313_v25 }
 0x69d   :  { %5820 = vmatprep.subr.bf16.mxu1 %v7009_v0 }
 0x69e   :  { %v1641_v27 = vsel %vm776_vm1, %v7615_v26, 0  ;;  %v1956_v19 = vrot.slane %v7615_v26, 4  ;;  %v6314_v26 = vld [vmem:[#allocation17 + $0x18] sm:$0xff]  }
 0x69f   :  { %5795 = vmatpush3.bf16.xpose.msra.mxu0 %v1641_v27 }
 0x6a0   :  { %5800 = vmatprep.subr.bf16.mxu0 %v7009_v0  ;;  %v1961_v23 = vsel %vm776_vm1, %v1956_v19, 0  ;;  %5821 = vmatpush3.bf16.msra.mxu1 %v6314_v26 }
 0x6a1   :  { %5826 = vmatprep.subr.bf16.mxu1 %v7009_v0 }
 0x6a6   :  { %5797 = vmatmul.mubr.msk.bf16.vlgmr.msra.gmra.mrb[28].mxu0 %vm776_vm1, %v7591_v61 }
 0x6a7   :  { %5801 = vmatpush3.bf16.xpose.msra.mxu0 %v1684_v28  ;;  %5802 = vmatprep.mubr.msk.bf16.mxu0 %vm7010_vm0, %v7009_v0 }
 0x6a8   :  { %5806 = vmatprep.subr.bf16.mxu0 %v7009_v0 }
 0x6ae   :  { %5803 = vmatmul.mubr.msk.bf16.vlgmr.msra.gmra.mrb[32].mxu0 %vm776_vm1, %v7591_v61 }
 0x6af   :  { %5808 = vmatprep.mubr.msk.bf16.mxu0 %vm7010_vm0, %v7009_v0  ;;  %5807 = vmatpush3.bf16.msra.mxu0 %v1752_v60 }
 0x6b0   :  { %5812 = vmatprep.subr.bf16.mxu0 %v7009_v0 }
 0x6b7   :  { %v1587_v30 = vpop.f32.mrb[24].mxu0 }
 0x6b8   :  { %v1588_v31 = vadd.f32 %v5053_v29, %v1587_v30  ;;  %v5772_v35 = vpop.f32.mrb[25].mxu0 }
 0x6b9   :  { %v1590_v36 = vpop.f32.mrb[26].mxu0 }
 0x6ba   :  { %v1591_v38 = vadd.f32 %v5053_v29, %v1590_v36  ;;  %v5773_v39 = vpop.f32.mrb[27].mxu0 }
 0x6bc   :  { %v7631_v40 = vpack.c.bf16 %v1591_v38, %v1588_v31 }
 0x6be   :  { %v1798_v16 = vsel %vm892_vm3, %v7631_v40, 0 }
 0x779   :  { %v1677_v41 = vpop.f32.mrb[28].mxu0 }
 0x77a   :  { %v5798_v42 = vpop.f32.mrb[29].mxu0  ;;  %v1726_v44 = vsel %vm866_vm2, %v1677_v41, -inf }
 0x77b   :  { %1727 = vmax.xlane.f32.xlu0 %v1726_v44  ;;  %v1680_v46 = vpop.f32.mrb[30].mxu0  ;;  %v7663_v42 = vld [vmem:[#allocation17] sm:$0xff]  }
 0x77c   :  { %v5799_v22 = vpop.f32.mrb[31].mxu0 }
 0x781   :  { %v1720_v47 = vpop.f32.mrb[32].mxu0 }
 0x782   :  { %v5804_v48 = vpop.f32.mrb[33].mxu0  ;;  %v1729_v49 = vsel %vm866_vm2, %v1720_v47, -inf }
 0x783   :  { %1730 = vmax.xlane.f32.xlu1 %v1729_v49  ;;  %v1723_v50 = vpop.f32.mrb[34].mxu0 }
 0x784   :  { %v5805_v51 = vpop.f32.mrb[35].mxu0 }
 0x808   :  { %v1728_v1 = vpop.xlane.xlu0 %1727 }
 0x810   :  { %v1731_v2 = vpop.xlane.xlu1 %1730 }
 0x811   :  { %v1732_v3 = vmax.f32 %v1728_v1, %v1731_v2 }
 0x813   :  { %v1733_v6 = vsub.f32 %v1677_v41, %v1732_v3  ;;  %v1736_v7 = vsub.f32 %v1720_v47, %v1732_v3  ;;  %v7667_v47 = vld [vmem:[#allocation17 + $0x8] sm:$0xff]  }
 0x815   :  { %v1734_v8 = vmul.f32 1.442695, %v1733_v6  ;;  %v1737_v9 = vmul.f32 1.442695, %v1736_v7 }
 0x817   :  { %6457 = vpow2.f32 %v1734_v8 }
 0x818   :  { %6459 = vpow2.f32 %v1737_v9 }
 0x821   :  { %v6458_v10 = vpop.eup %6457 }
 0x822   :  { %v6460_v12 = vpop.eup %6459  ;;  %v1739_v13 = vsel %vm866_vm2, %v6458_v10, 0.0  ;;  %v1746_v21 = vpack.c.bf16 %v6458_v10, %v6458_v10 }
 0x823   :  { %v1742_v14 = vsel %vm866_vm2, %v6460_v12, 0.0  ;;  %1740 = vadd.xlane.f32.xlu0 %v1739_v13  ;;  %v1747_v4 = vpack.c.bf16 %v6460_v12, %v6460_v12 }
 0x824   :  { %1743 = vadd.xlane.f32.xlu1 %v1742_v14 }
 0x825   :  { %5809 = vmatmul.mubr.msk.bf16.vlgmr.msra.gmra.mrb[36].mxu0 %vm866_vm2, %v1747_v4 }
 0x826   :  { %5813 = vmatpush3.bf16.msra.mxu0 %v1798_v16  ;;  %5814 = vmatprep.mubr.msk.bf16.mxu0 %vm7010_vm0, %v7009_v0 }
 0x827   :  { %881 = vadd.xlane.f32.xlu0 %v880_v17  ;;  %5834 = vmatprep.subr.bf16.mxu0 %v7009_v0 }
 0x828   :  { %884 = vadd.xlane.f32.xlu1 %v883_v18 }
 0x831   :  { %5815 = vmatmul.mubr.msk.bf16.vlgmr.msra.gmra.mrb[36].mxu0 %vm866_vm2, %v1746_v21 }
 0x832   :  { %5835 = vmatpush3.bf16.xpose.msra.mxu0 %v1961_v23  ;;  %5836 = vmatprep.mubr.msk.bf16.mxu0 %vm7010_vm0, %v7009_v0  ;;  %v2119_v23 = vrot.slane %v7631_v40, 4  ;;  %v1096_v40 = vsel %vm866_vm2, %v7560_v43, 0.0  ;;  %v6320_v43 = vld [vmem:[#allocation8 + $0x98] sm:$0xff]  }
 0x833   :  { %5846 = vmatprep.subr.bf16.mxu0 %v7009_v0 }
 0x839   :  { %5837 = vmatmul.mubr.msk.bf16.vlgmr.msra.gmra.mrb[40].mxu0 %vm776_vm1, %v1954_v59 }
 0x83a   :  { %5847 = vmatpush3.bf16.msra.mxu0 %v2076_v24  ;;  %5848 = vmatprep.mubr.msk.bf16.mxu0 %vm7010_vm0, %v7009_v0 }
 0x83b   :  { %5852 = vmatprep.subr.bf16.mxu0 %v7009_v0 }
 0x8b0   :  { %v1741_v61 = vpop.xlane.xlu0 %1740 }
 0x8b1   :  { %v1744_v27 = vpop.xlane.xlu1 %1743 }
 0x8b2   :  { %v1745_v28 = vadd.f32 %v1744_v27, %v1741_v61  ;;  %v1093_v27 = vsel %vm866_vm2, %v7569_v37, 0.0  ;;  %v6319_v37 = vld [vmem:[#allocation8 + $0x90] sm:$0xff]  }
 0x8b4   :  { %v882_v30 = vpop.xlane.xlu0 %881  ;;  %6461 = vrcp.f32 %v1745_v28  ;;  %v6317_v28 = vld [vmem:[#allocation8 + $0x80] sm:$0xff]  }
 0x8b5   :  { %v885_v29 = vpop.xlane.xlu1 %884 }
 0x8b6   :  { %v886_v31 = vadd.f32 %v885_v29, %v882_v30  ;;  %v6318_v29 = vld [vmem:[#allocation8 + $0x88] sm:$0xff]   ;;  %v6321_v30 = vld [vmem:[#allocation8 + $0xa0] sm:$0xff]  }
 0x8b8   :  { %6463 = vrcp.f32 %v886_v31  ;;  %v6322_v31 = vld [vmem:[#allocation8 + $0xa8] sm:$0xff]  }
 0x8be   :  { %v6462_v35 = vpop.eup %6461 }
 0x8c2   :  { %v6464_v22 = vpop.eup %6463 }
 0x8c3   :  { %v983_v48 = vmul.f32 %v6464_v22, %v7533_v5  ;;  %v2006_v5 = vsel %vm776_vm1, %v2004_v55, 0  ;;  %v6330_v22 = vld [vmem:[#allocation10 + $0xa8] sm:$0xff]  }
 0x8c5   :  { %v984_v54 = vpack.c.bf16 %v983_v48, %v983_v48  ;;  %v6331_v48 = vld [vmem:[#allocation10 + $0xb0] sm:$0xff]  }
 0x904   :  { %v1834_v36 = vpop.f32.mrb[36].mxu0 }
 0x905   :  { %v1841_v38 = vmul.f32 %v6462_v35, %v1834_v36  ;;  %v5816_v39 = vpop.f32.mrb[37].mxu0  ;;  %v6323_v35 = vld [vmem:[#allocation8 + $0xb0] sm:$0xff]   ;;  %v6325_v36 = vld [vmem:[#allocation8 + $0xb8] sm:$0xff]  }
 0x906   :  { %v1837_v41 = vpop.f32.mrb[38].mxu0  ;;  %v6326_v39 = vld [vmem:[#allocation10 + $0x88] sm:$0xff]  }
 0x907   :  { %v1842_v44 = vpack.c.bf16 %v1841_v38, %v1841_v38  ;;  %v5817_v46 = vpop.f32.mrb[39].mxu0  ;;  %v6324_v38 = vld [vmem:[#allocation10 + $0x80] sm:$0xff]   ;;  %v6327_v41 = vld [vmem:[#allocation10 + $0x90] sm:$0xff]  }
 0x908   :  { %v6329_v46 = vld [vmem:[#allocation10 + $0xa0] sm:$0xff]  }
 0x909   :  { %5823 = vmatmul.mubr.msk.bf16.vlgmr.msra.gmra.mrb[36].mxu1 %vm776_vm1, %v1842_v44  ;;  %v6328_v44 = vld [vmem:[#allocation10 + $0x98] sm:$0xff]  }
 0x90a   :  { %5827 = vmatpush3.bf16.msra.mxu1 %v7663_v42  ;;  %5830 = vmatprep.mubr.msk.bf16.mxu1 %vm7010_vm0, %v7009_v0 }
 0x90b   :  { %5828 = vmatprep.subr.bf16.mxu1 %v7009_v0 }
 0x90c   :  { %v1997_v49 = vpop.f32.mrb[40].mxu0 }
 0x90d   :  { %v5838_v50 = vpop.f32.mrb[41].mxu0  ;;  %v2048_v51 = vsel %vm866_vm2, %v1997_v49, -inf }
 0x90e   :  { %5829 = vmatpush3.bf16.msra.mxu1 %v7667_v47  ;;  %2049 = vmax.xlane.f32.xlu0 %v2048_v51  ;;  %v2000_v52 = vpop.f32.mrb[42].mxu0 }
 0x90f   :  { %v5839_v53 = vpop.f32.mrb[43].mxu0  ;;  %5840 = vmatprep.subr.bf16.mxu1 %v7009_v0 }
 0x911   :  { %5831 = vmatmul.mubr.msk.bf16.vlgmr.msra.gmra.mrb[40].mxu1 %vm776_vm1, %v984_v54 }
 0x912   :  { %5842 = vmatprep.mubr.msk.bf16.mxu1 %vm7010_vm0, %v7009_v0 }
 0x917   :  { %5841 = vmatpush3.bf16.xpose.msra.mxu1 %v2006_v5 }
 0x918   :  { %5858 = vmatprep.subr.bf16.mxu1 %v7009_v0 }
 0x91e   :  { %5843 = vmatmul.mubr.msk.bf16.vlgmr.msra.gmra.mrb[44].mxu1 %vm776_vm1, %v1954_v59 }
 0x91f   :  { %5859 = vmatpush3.bf16.msra.mxu1 %v6313_v25  ;;  %5862 = vmatprep.mubr.msk.bf16.mxu1 %vm7010_vm0, %v7009_v0 }
 0x920   :  { %5860 = vmatprep.subr.bf16.mxu1 %v7009_v0 }
 0x923   :  { %5861 = vmatpush3.bf16.msra.mxu1 %v6314_v26  ;;  %v2124_v26 = vsel %vm892_vm3, %v2119_v23, 0  ;;  %v6338_v23 = vld [vmem:[#allocation11 + $0xa8] sm:$0xff]  }
 0x924   :  { %5866 = vmatprep.subr.bf16.mxu1 %v7009_v0 }
 0x99b   :  { %v2050_v13 = vpop.xlane.xlu0 %2049 }
 0x9dc   :  { %v1892_v15 = vpop.f32.mrb[36].mxu1 }
 0x9dd   :  { %v5824_v56 = vpop.f32.mrb[37].mxu1 }
 0x9de   :  { %v1895_v57 = vpop.f32.mrb[38].mxu1 }
 0x9df   :  { %v5825_v58 = vpop.f32.mrb[39].mxu1 }
 0x9e4   :  { %v1947_v60 = vpop.f32.mrb[40].mxu1 }
 0x9e5   :  { %v7687_v1 = vadd.f32 %v1947_v60, %v1892_v15  ;;  %v5832_v2 = vpop.f32.mrb[41].mxu1 }
 0x9e6   :  { %v1950_v3 = vpop.f32.mrb[42].mxu1 }
 0x9e7   :  { %v5833_v6 = vpop.f32.mrb[43].mxu1 }
 0x9f1   :  { %v2042_v7 = vpop.f32.mrb[44].mxu1 }
 0x9f2   :  { %v5844_v8 = vpop.f32.mrb[45].mxu1  ;;  %v2051_v9 = vsel %vm866_vm2, %v2042_v7, -inf }
 0x9f3   :  { %2052 = vmax.xlane.f32.xlu1 %v2051_v9  ;;  %v2045_v10 = vpop.f32.mrb[46].mxu1 }
 0x9f4   :  { %v5845_v12 = vpop.f32.mrb[47].mxu1 }
 0xa80   :  { %v2053_v14 = vpop.xlane.xlu1 %2052 }
 0xa81   :  { %v2054_v4 = vmax.f32 %v2050_v13, %v2053_v14  ;;  %v6335_v13 = vld [vmem:[#allocation11 + $0x90] sm:$0xff]  }
 0xa83   :  { %v2055_v16 = vsub.f32 %v1997_v49, %v2054_v4  ;;  %v2058_v17 = vsub.f32 %v2042_v7, %v2054_v4  ;;  %v6332_v49 = vld [vmem:[#allocation10 + $0xb8] sm:$0xff]  }
 0xa85   :  { %v2056_v18 = vmul.f32 1.442695, %v2055_v16  ;;  %v2059_v19 = vmul.f32 1.442695, %v2058_v17 }
 0xa87   :  { %6465 = vpow2.f32 %v2056_v18  ;;  %v6336_v18 = vld [vmem:[#allocation11 + $0x98] sm:$0xff]  }
 0xa88   :  { %6467 = vpow2.f32 %v2059_v19 }
 0xa91   :  { %v6466_v21 = vpop.eup %6465 }
 0xa92   :  { %v6468_v62 = vpop.eup %6467  ;;  %v2061_v59 = vsel %vm866_vm2, %v6466_v21, 0.0  ;;  %v2068_v61 = vpack.c.bf16 %v6466_v21, %v6466_v21  ;;  %v6337_v21 = vld [vmem:[#allocation11 + $0xa0] sm:$0xff]  }
 0xa93   :  { %v2064_v24 = vsel %vm866_vm2, %v6468_v62, 0.0  ;;  %2062 = vadd.xlane.f32.xlu0 %v2061_v59  ;;  %v2069_v25 = vpack.c.bf16 %v6468_v62, %v6468_v62  ;;  %v6339_v62 = vld [vmem:[#allocation11 + $0xb0] sm:$0xff]   ;;  %v6340_v59 = vld [vmem:[#allocation11 + $0xb8] sm:$0xff]  }
 0xa94   :  { %2065 = vadd.xlane.f32.xlu1 %v2064_v24 }
 0xa95   :  { %5849 = vmatmul.mubr.msk.bf16.vlgmr.msra.gmra.mrb[44].mxu0 %vm866_vm2, %v2069_v25  ;;  %v5087_v25 = vld [vmem:[#allocation14 + $0x2] ss:$0 sm:$0xff] }
 0xa96   :  { %5853 = vmatpush3.bf16.msra.mxu0 %v2124_v26  ;;  %5854 = vmatprep.mubr.msk.bf16.mxu0 %vm7010_vm0, %v7009_v0 }
 0xa97   :  { %1094 = vadd.xlane.f32.xlu0 %v1093_v27  ;;  %5874 = vmatprep.subr.bf16.mxu0 %v7009_v0 }
 0xa98   :  { %1097 = vadd.xlane.f32.xlu1 %v1096_v40 }
 0xaa1   :  { %5855 = vmatmul.mubr.msk.bf16.vlgmr.msra.gmra.mrb[44].mxu0 %vm866_vm2, %v2068_v61 }
 0xaa2   :  { %5890 = vmatprep.mubr.msk.bf16.mxu0 %vm7010_vm0, %v7009_v0  ;;  %5875 = vmatpush3.bf16.msra.mxu0 %v6317_v28 }
 0xaa3   :  { %5876 = vmatprep.subr.bf16.mxu0 %v7009_v0 }
 0xaa6   :  { %5877 = vmatpush3.bf16.msra.mxu0 %v6318_v29 }
 0xaa7   :  { %5878 = vmatprep.subr.bf16.mxu0 %v7009_v0 }
 0xaaa   :  { %5879 = vmatpush3.bf16.msra.mxu0 %v6319_v37 }
 0xaab   :  { %5880 = vmatprep.subr.bf16.mxu0 %v7009_v0 }
 0xaae   :  { %5881 = vmatpush3.bf16.msra.mxu0 %v6320_v43 }
 0xaaf   :  { %5882 = vmatprep.subr.bf16.mxu0 %v7009_v0 }
 0xab2   :  { %5883 = vmatpush3.bf16.msra.mxu0 %v6321_v30 }
 0xab3   :  { %5884 = vmatprep.subr.bf16.mxu0 %v7009_v0 }
 0xab6   :  { %5885 = vmatpush3.bf16.msra.mxu0 %v6322_v31 }
 0xab7   :  { %5886 = vmatprep.subr.bf16.mxu0 %v7009_v0 }
 0xaba   :  { %5887 = vmatpush3.bf16.msra.mxu0 %v6323_v35 }
 0xabb   :  { %5888 = vmatprep.subr.bf16.mxu0 %v7009_v0 }
 0xabe   :  { %5889 = vmatpush3.bf16.msra.mxu0 %v6325_v36 }
 0xabf   :  { %5914 = vmatprep.subr.bf16.mxu0 %v7009_v0 }
 0xac1   :  { %5891 = vmatmul.mubr.bf16.vlgmr.msra.gmra.mrb[48].mxu0 %v7423_v34 }
 0xac2   :  { %5915 = vmatpush3.bf16.msra.mxu0 %v6324_v38  ;;  %5930 = vmatprep.mubr.msk.bf16.mxu0 %vm7010_vm0, %v7009_v0 }
 0xac3   :  { %5916 = vmatprep.subr.bf16.mxu0 %v7009_v0 }
 0xac6   :  { %5917 = vmatpush3.bf16.msra.mxu0 %v6326_v39 }
 0xac7   :  { %5918 = vmatprep.subr.bf16.mxu0 %v7009_v0 }
 0xaca   :  { %5919 = vmatpush3.bf16.msra.mxu0 %v6327_v41 }
 0xacb   :  { %5920 = vmatprep.subr.bf16.mxu0 %v7009_v0 }
 0xace   :  { %5921 = vmatpush3.bf16.msra.mxu0 %v6328_v44 }
 0xacf   :  { %5922 = vmatprep.subr.bf16.mxu0 %v7009_v0 }
 0xad2   :  { %5923 = vmatpush3.bf16.msra.mxu0 %v6329_v46 }
 0xad3   :  { %5924 = vmatprep.subr.bf16.mxu0 %v7009_v0 }
 0xad6   :  { %5925 = vmatpush3.bf16.msra.mxu0 %v6330_v22 }
 0xad7   :  { %5926 = vmatprep.subr.bf16.mxu0 %v7009_v0 }
 0xada   :  { %5927 = vmatpush3.bf16.msra.mxu0 %v6331_v48 }
 0xadb   :  { %5928 = vmatprep.subr.bf16.mxu0 %v7009_v0 }
 0xade   :  { %5929 = vmatpush3.bf16.msra.mxu0 %v6332_v49 }
 0xadf   :  { %5954 = vmatprep.subr.bf16.mxu0 %v7009_v0 }
 0xae1   :  { %5931 = vmatmul.mubr.bf16.vlgmr.msra.gmra.mrb[52].mxu0 %v7449_v45 }
 0xae2   :  { %5970 = vmatprep.mubr.msk.bf16.mxu0 %vm7010_vm0, %v7009_v0 }
 0xb20   :  { %v2063_v51 = vpop.xlane.xlu0 %2062 }
 0xb21   :  { %v2066_v50 = vpop.xlane.xlu1 %2065 }
 0xb22   :  { %v2067_v52 = vadd.f32 %v2066_v50, %v2063_v51 }
 0xb24   :  { %v1095_v54 = vpop.xlane.xlu0 %1094  ;;  %6469 = vrcp.f32 %v2067_v52 }
 0xb25   :  { %v1098_v53 = vpop.xlane.xlu1 %1097 }
 0xb26   :  { %v1099_v55 = vadd.f32 %v1098_v53, %v1095_v54  ;;  %v5096_v54 = vld [vmem:[#allocation16 + $0x2] ss:$0 sm:$0xff] }
 0xb28   :  { %6471 = vrcp.f32 %v1099_v55 }
 0xb2e   :  { %v6470_v5 = vpop.eup %6469 }
 0xb32   :  { %v6472_v3 = vpop.eup %6471 }
 0xb33   :  { %v1199_v6 = vmul.f32 %v6472_v3, %v7613_v63  ;;  %v6333_v63 = vld [vmem:[#allocation11 + $0x80] sm:$0xff]  }
 0xb34   :  { %5955 = vmatpush3.bf16.msra.mxu0 %v6333_v63 }
 0xb35   :  { %v1200_v7 = vpack.c.bf16 %v1199_v6, %v1199_v6  ;;  %5956 = vmatprep.subr.bf16.mxu0 %v7009_v0 }
 0xb74   :  { %v2160_v15 = vpop.f32.mrb[44].mxu0 }
 0xb75   :  { %v2167_v56 = vmul.f32 %v6470_v5, %v2160_v15  ;;  %v5856_v57 = vpop.f32.mrb[45].mxu0 }
 0xb76   :  { %v2163_v58 = vpop.f32.mrb[46].mxu0 }
 0xb77   :  { %v2168_v60 = vpack.c.bf16 %v2167_v56, %v2167_v56  ;;  %v5857_v2 = vpop.f32.mrb[47].mxu0 }
 0xb79   :  { %5863 = vmatmul.mubr.msk.bf16.vlgmr.msra.gmra.mrb[48].mxu1 %vm776_vm1, %v2168_v60 }
 0xb7a   :  { %5867 = vmatpush3.bf16.msra.mxu1 %v7663_v42  ;;  %5870 = vmatprep.mubr.msk.bf16.mxu1 %vm7010_vm0, %v7009_v0  ;;  %v5078_v42 = vld [vmem:[#allocation13 + $0x2] ss:$0 sm:$0xff] }
 0xb7b   :  { %5868 = vmatprep.subr.bf16.mxu1 %v7009_v0 }
 0xb7e   :  { %5869 = vmatpush3.bf16.msra.mxu1 %v7667_v47  ;;  %v6334_v47 = vld [vmem:[#allocation11 + $0x88] sm:$0xff]  }
 0xb7f   :  { %5894 = vmatprep.subr.bf16.mxu1 %v7009_v0  ;;  %5957 = vmatpush3.bf16.msra.mxu0 %v6334_v47 }
 0xb80   :  { %5958 = vmatprep.subr.bf16.mxu0 %v7009_v0 }
 0xb81   :  { %5871 = vmatmul.mubr.msk.bf16.vlgmr.msra.gmra.mrb[52].mxu1 %vm776_vm1, %v1200_v7 }
 0xb82   :  { %5895 = vmatpush3.bf16.msra.mxu1 %v6324_v38  ;;  %5910 = vmatprep.mubr.msk.bf16.mxu1 %vm7010_vm0, %v7009_v0 }
 0xb83   :  { %5896 = vmatprep.subr.bf16.mxu1 %v7009_v0  ;;  %5959 = vmatpush3.bf16.msra.mxu0 %v6335_v13 }
 0xb84   :  { %5960 = vmatprep.subr.bf16.mxu0 %v7009_v0 }
 0xb86   :  { %5897 = vmatpush3.bf16.msra.mxu1 %v6326_v39 }
 0xb87   :  { %5898 = vmatprep.subr.bf16.mxu1 %v7009_v0  ;;  %5961 = vmatpush3.bf16.msra.mxu0 %v6336_v18 }
 0xb88   :  { %5962 = vmatprep.subr.bf16.mxu0 %v7009_v0 }
 0xb8a   :  { %5899 = vmatpush3.bf16.msra.mxu1 %v6327_v41 }
 0xb8b   :  { %5900 = vmatprep.subr.bf16.mxu1 %v7009_v0  ;;  %5963 = vmatpush3.bf16.msra.mxu0 %v6337_v21 }
 0xb8c   :  { %5964 = vmatprep.subr.bf16.mxu0 %v7009_v0 }
 0xb8e   :  { %5901 = vmatpush3.bf16.msra.mxu1 %v6328_v44 }
 0xb8f   :  { %5902 = vmatprep.subr.bf16.mxu1 %v7009_v0  ;;  %5965 = vmatpush3.bf16.msra.mxu0 %v6338_v23 }
 0xb90   :  { %5966 = vmatprep.subr.bf16.mxu0 %v7009_v0 }
 0xb92   :  { %5903 = vmatpush3.bf16.msra.mxu1 %v6329_v46 }
 0xb93   :  { %5904 = vmatprep.subr.bf16.mxu1 %v7009_v0  ;;  %5967 = vmatpush3.bf16.msra.mxu0 %v6339_v62 }
 0xb94   :  { %v2401_v8 = vpop.f32.mrb[48].mxu0  ;;  %5968 = vmatprep.subr.bf16.mxu0 %v7009_v0 }
 0xb95   :  { %v2402_v9 = vadd.f32 %v5078_v42, %v2401_v8  ;;  %v5892_v10 = vpop.f32.mrb[49].mxu0 }
 0xb96   :  { %5905 = vmatpush3.bf16.msra.mxu1 %v6330_v22  ;;  %v2404_v12 = vpop.f32.mrb[50].mxu0 }
 0xb97   :  { %5906 = vmatprep.subr.bf16.mxu1 %v7009_v0  ;;  %v2408_v14 = vmul.f32 0.17677669, %v2402_v9  ;;  %v2405_v4 = vadd.f32 %v5078_v42, %v2404_v12  ;;  %v5893_v16 = vpop.f32.mrb[51].mxu0  ;;  %5969 = vmatpush3.bf16.msra.mxu0 %v6340_v59 }
 0xb98   :  { %5998 = vmatprep.subr.bf16.mxu0 %v7009_v0 }
 0xb99   :  { %v2409_v17 = vmul.f32 0.17677669, %v2405_v4 }
 0xb9a   :  { %5907 = vmatpush3.bf16.msra.mxu1 %v6331_v48  ;;  %5971 = vmatmul.mubr.bf16.vlgmr.msra.gmra.mrb[56].mxu0 %v7449_v45 }
 0xb9b   :  { %5908 = vmatprep.subr.bf16.mxu1 %v7009_v0  ;;  %v7753_v19 = vpack.c.bf16 %v2409_v17, %v2408_v14  ;;  %6002 = vmatprep.mubr.msk.bf16.mxu0 %vm7010_vm0, %v7009_v0 }
 0xb9e   :  { %5909 = vmatpush3.bf16.msra.mxu1 %v6332_v49 }
 0xb9f   :  { %5934 = vmatprep.subr.bf16.mxu1 %v7009_v0 }
 0xba1   :  { %5911 = vmatmul.mubr.bf16.vlgmr.msra.gmra.mrb[56].mxu1 %v7423_v34 }
 0xba2   :  { %5950 = vmatprep.mubr.msk.bf16.mxu1 %vm7010_vm0, %v7009_v0  ;;  %5935 = vmatpush3.bf16.msra.mxu1 %v6333_v63 }
 0xba3   :  { %5936 = vmatprep.subr.bf16.mxu1 %v7009_v0 }
 0xba6   :  { %5937 = vmatpush3.bf16.msra.mxu1 %v6334_v47 }
 0xba7   :  { %5938 = vmatprep.subr.bf16.mxu1 %v7009_v0 }
 0xbaa   :  { %5939 = vmatpush3.bf16.msra.mxu1 %v6335_v13 }
 0xbab   :  { %5940 = vmatprep.subr.bf16.mxu1 %v7009_v0 }
 0xbae   :  { %5941 = vmatpush3.bf16.msra.mxu1 %v6336_v18 }
 0xbaf   :  { %5942 = vmatprep.subr.bf16.mxu1 %v7009_v0 }
 0xbb2   :  { %5943 = vmatpush3.bf16.msra.mxu1 %v6337_v21 }
 0xbb3   :  { %5944 = vmatprep.subr.bf16.mxu1 %v7009_v0 }
 0xbb4   :  { %v2543_v24 = vpop.f32.mrb[52].mxu0 }
 0xbb5   :  { %v5932_v26 = vpop.f32.mrb[53].mxu0  ;;  %v2544_v27 = vadd.f32 %v5087_v25, %v2543_v24 }
 0xbb6   :  { %5945 = vmatpush3.bf16.msra.mxu1 %v6338_v23  ;;  %v2546_v40 = vpop.f32.mrb[54].mxu0 }
 0xbb7   :  { %5946 = vmatprep.subr.bf16.mxu1 %v7009_v0  ;;  %v2547_v61 = vadd.f32 %v5087_v25, %v2546_v40  ;;  %v5933_v28 = vpop.f32.mrb[55].mxu0 }
 0xbb9   :  { %v7773_v29 = vpack.c.bf16 %v2547_v61, %v2544_v27 }
 0xbba   :  { %5947 = vmatpush3.bf16.msra.mxu1 %v6339_v62 }
 0xbbb   :  { %5948 = vmatprep.subr.bf16.mxu1 %v7009_v0  ;;  %v2738_v53 = vsel %vm776_vm1, %v7773_v29, 0 }
 0xbbe   :  { %5949 = vmatpush3.bf16.msra.mxu1 %v6340_v59 }
 0xbbf   :  { %5974 = vmatprep.subr.bf16.mxu1 %v7009_v0 }
 0xbc1   :  { %5951 = vmatmul.mubr.bf16.vlgmr.msra.gmra.mrb[60].mxu1 %v7423_v34 }
 0xbc2   :  { %5976 = vmatprep.mubr.msk.bf16.mxu1 %vm7010_vm0, %v7009_v0 }
 0xc4c   :  { %v2206_v37 = vpop.f32.mrb[48].mxu1 }
 0xc4d   :  { %v5864_v43 = vpop.f32.mrb[49].mxu1 }
 0xc4e   :  { %v2209_v30 = vpop.f32.mrb[50].mxu1 }
 0xc4f   :  { %v5865_v31 = vpop.f32.mrb[51].mxu1 }
 0xc54   :  { %v2249_v35 = vpop.f32.mrb[52].mxu1 }
 0xc55   :  { %v7775_v36 = vadd.f32 %v2249_v35, %v2206_v37  ;;  %v5872_v38 = vpop.f32.mrb[53].mxu1 }
 0xc56   :  { %v2252_v39 = vpop.f32.mrb[54].mxu1 }
 0xc57   :  { %v5873_v41 = vpop.f32.mrb[55].mxu1  ;;  %v6341_v39 = vld [vmem:[#allocation17 + $0x20] sm:$0xff]  }
 0xc58   :  { %5999 = vmatpush3.bf16.msra.mxu0 %v6341_v39 }
 0xc59   :  { %6000 = vmatprep.subr.bf16.mxu0 %v7009_v0 }
 0xc6d   :  { %v2683_v12 = vpop.f32.mrb[56].mxu0 }
 0xc6e   :  { %v2684_v13 = vadd.f32 %v5096_v54, %v2683_v12  ;;  %v5972_v14 = vpop.f32.mrb[57].mxu0 }
 0xc6f   :  { %v2686_v4 = vpop.f32.mrb[58].mxu0 }
 0xc70   :  { %v2687_v16 = vadd.f32 %v5096_v54, %v2686_v4  ;;  %v5973_v17 = vpop.f32.mrb[59].mxu0 }
 0xc72   :  { %v2690_v18 = vpack.c.bf16 %v2687_v16, %v2684_v13 }
 0xc74   :  { %v2501_v44 = vpop.f32.mrb[56].mxu1  ;;  %v2806_v21 = vsel %vm892_vm3, %v2690_v18, 0  ;;  %v3071_v41 = vrot.slane %v2690_v18, 4 }
 0xc75   :  { %v5912_v46 = vpop.f32.mrb[57].mxu1  ;;  %v2502_v48 = vadd.f32 %v5087_v25, %v2501_v44  ;;  %v6342_v44 = vld [vmem:[#allocation17 + $0x28] sm:$0xff]  }
 0xc76   :  { %v2504_v22 = vpop.f32.mrb[58].mxu1  ;;  %v2954_v46 = vrot.slane %v7753_v19, 4  ;;  %6001 = vmatpush3.bf16.msra.mxu0 %v6342_v44 }
 0xc77   :  { %v2505_v49 = vadd.f32 %v5087_v25, %v2504_v22  ;;  %v5913_v50 = vpop.f32.mrb[59].mxu1  ;;  %v3076_v22 = vsel %vm892_vm3, %v3071_v41, 0  ;;  %6012 = vmatprep.subr.bf16.mxu0 %v7009_v0 }
 0xc79   :  { %v7777_v51 = vpack.c.bf16 %v2505_v49, %v2502_v48 }
 0xc7b   :  { %v2695_v52 = vsel %vm776_vm1, %v7777_v51, 0  ;;  %v2956_v31 = vrot.slane %v7777_v51, 4 }
 0xc7c   :  { %5975 = vmatpush3.bf16.xpose.msra.mxu1 %v2695_v52  ;;  %v3004_v52 = vrot.slane %v7773_v29, 4 }
 0xc7d   :  { %5980 = vmatprep.subr.bf16.mxu1 %v7009_v0  ;;  %v2961_v38 = vsel %vm776_vm1, %v2956_v31, 0  ;;  %v6354_v31 = vld [vmem:[#allocation10 + $0xf0] sm:$0xff]  }
 0xc83   :  { %5977 = vmatmul.mubr.msk.bf16.vlgmr.msra.gmra.mrb[64].mxu1 %vm776_vm1, %v7753_v19 }
 0xc84   :  { %5981 = vmatpush3.bf16.xpose.msra.mxu1 %v2738_v53  ;;  %5982 = vmatprep.mubr.msk.bf16.mxu1 %vm7010_vm0, %v7009_v0 }
 0xc85   :  { %5986 = vmatprep.subr.bf16.mxu1 %v7009_v0 }
 0xc8b   :  { %5983 = vmatmul.mubr.msk.bf16.vlgmr.msra.gmra.mrb[68].mxu1 %vm776_vm1, %v7753_v19 }
 0xc8c   :  { %5988 = vmatprep.mubr.msk.bf16.mxu1 %vm7010_vm0, %v7009_v0  ;;  %5987 = vmatpush3.bf16.msra.mxu1 %v2806_v21 }
 0xc8d   :  { %5992 = vmatprep.subr.bf16.mxu1 %v7009_v0 }
 0xc94   :  { %v2641_v55 = vpop.f32.mrb[60].mxu1 }
 0xc95   :  { %v2642_v5 = vadd.f32 %v5096_v54, %v2641_v55  ;;  %v5952_v15 = vpop.f32.mrb[61].mxu1 }
 0xc96   :  { %v2644_v56 = vpop.f32.mrb[62].mxu1 }
 0xc97   :  { %v2645_v57 = vadd.f32 %v5096_v54, %v2644_v56  ;;  %v5953_v58 = vpop.f32.mrb[63].mxu1  ;;  %v3006_v56 = vsel %vm776_vm1, %v3004_v52, 0 }
 0xc99   :  { %v7793_v60 = vpack.c.bf16 %v2645_v57, %v2642_v5 }
 0xc9b   :  { %v2852_v30 = vsel %vm892_vm3, %v7793_v60, 0 }
 0xd56   :  { %v2731_v2 = vpop.f32.mrb[64].mxu1 }
 0xd57   :  { %v5978_v3 = vpop.f32.mrb[65].mxu1  ;;  %v2780_v6 = vsel %vm866_vm2, %v2731_v2, -inf }
 0xd58   :  { %2781 = vmax.xlane.f32.xlu0 %v2780_v6  ;;  %v2734_v7 = vpop.f32.mrb[66].mxu1 }
 0xd59   :  { %v5979_v63 = vpop.f32.mrb[67].mxu1 }
 0xd5e   :  { %v2774_v42 = vpop.f32.mrb[68].mxu1 }
 0xd5f   :  { %v5984_v47 = vpop.f32.mrb[69].mxu1  ;;  %v2783_v8 = vsel %vm866_vm2, %v2774_v42, -inf }
 0xd60   :  { %2784 = vmax.xlane.f32.xlu1 %v2783_v8  ;;  %v2777_v9 = vpop.f32.mrb[70].mxu1 }
 0xd61   :  { %v5985_v10 = vpop.f32.mrb[71].mxu1 }
 0xde5   :  { %v2782_v23 = vpop.xlane.xlu0 %2781 }
 0xded   :  { %v2785_v62 = vpop.xlane.xlu1 %2784 }
 0xdee   :  { %v2786_v59 = vmax.f32 %v2782_v23, %v2785_v62  ;;  %v3119_v62 = vrot.slane %v7793_v60, 4  ;;  %v7848_v60 = vld [vmem:[#allocation10 + $0xc0] sm:$0xff]  }
 0xdf0   :  { %v2787_v24 = vsub.f32 %v2731_v2, %v2786_v59  ;;  %v2790_v25 = vsub.f32 %v2774_v42, %v2786_v59 }
 0xdf2   :  { %v2788_v26 = vmul.f32 1.442695, %v2787_v24  ;;  %v2791_v27 = vmul.f32 1.442695, %v2790_v25 }
 0xdf4   :  { %6473 = vpow2.f32 %v2788_v26 }
 0xdf5   :  { %6475 = vpow2.f32 %v2791_v27  ;;  %v3124_v27 = vsel %vm892_vm3, %v3119_v62, 0 }
 0xdfe   :  { %v6474_v40 = vpop.eup %6473 }
 0xdff   :  { %v6476_v61 = vpop.eup %6475  ;;  %v2793_v28 = vsel %vm866_vm2, %v6474_v40, 0.0  ;;  %v2800_v35 = vpack.c.bf16 %v6474_v40, %v6474_v40 }
 0xe00   :  { %v2796_v37 = vsel %vm866_vm2, %v6476_v61, 0.0  ;;  %2794 = vadd.xlane.f32.xlu0 %v2793_v28  ;;  %v2801_v43 = vpack.c.bf16 %v6476_v61, %v6476_v61  ;;  %v7852_v61 = vld [vmem:[#allocation10 + $0xc8] sm:$0xff]   ;;  %v7856_v28 = vld [vmem:[#allocation10 + $0xd0] sm:$0xff]  }
 0xe01   :  { %2797 = vadd.xlane.f32.xlu1 %v2796_v37  ;;  %v7860_v37 = vld [vmem:[#allocation10 + $0xd8] sm:$0xff]  }
 0xe02   :  { %5989 = vmatmul.mubr.msk.bf16.vlgmr.msra.gmra.mrb[72].mxu1 %vm866_vm2, %v2801_v43  ;;  %v7864_v43 = vld [vmem:[#allocation10 + $0xe0] sm:$0xff]  }
 0xe03   :  { %5993 = vmatpush3.bf16.msra.mxu1 %v2852_v30  ;;  %5994 = vmatprep.mubr.msk.bf16.mxu1 %vm7010_vm0, %v7009_v0  ;;  %v6352_v30 = vld [vmem:[#allocation10 + $0xe8] sm:$0xff]  }
 0xe04   :  { %6006 = vmatprep.subr.bf16.mxu1 %v7009_v0 }
 0xe0e   :  { %5995 = vmatmul.mubr.msk.bf16.vlgmr.msra.gmra.mrb[72].mxu1 %vm866_vm2, %v2800_v35  ;;  %v6356_v35 = vld [vmem:[#allocation10 + $0xf8] sm:$0xff]  }
 0xe0f   :  { %6007 = vmatpush3.bf16.xpose.msra.mxu1 %v2961_v38  ;;  %6008 = vmatprep.mubr.msk.bf16.mxu1 %vm7010_vm0, %v7009_v0  ;;  %v6359_v38 = vld [vmem:[#allocation11 + $0xc0] sm:$0xff]  }
 0xe10   :  { %6018 = vmatprep.subr.bf16.mxu1 %v7009_v0 }
 0xe16   :  { %6009 = vmatmul.mubr.msk.bf16.vlgmr.msra.gmra.mrb[76].mxu1 %vm776_vm1, %v2954_v46 }
 0xe17   :  { %6019 = vmatpush3.bf16.msra.mxu1 %v3076_v22  ;;  %6020 = vmatprep.mubr.msk.bf16.mxu1 %vm7010_vm0, %v7009_v0 }
 0xe18   :  { %6024 = vmatprep.subr.bf16.mxu1 %v7009_v0 }
 0xe8d   :  { %v2795_v49 = vpop.xlane.xlu0 %2794 }
 0xe8e   :  { %v2798_v48 = vpop.xlane.xlu1 %2797 }
 0xe8f   :  { %v2799_v50 = vadd.f32 %v2798_v48, %v2795_v49 }
 0xe91   :  { %6477 = vrcp.f32 %v2799_v50 }
 0xe9b   :  { %v6478_v19 = vpop.eup %6477 }
 0xee1   :  { %v2888_v51 = vpop.f32.mrb[72].mxu1 }
 0xee2   :  { %v2895_v53 = vmul.f32 %v6478_v19, %v2888_v51  ;;  %v5996_v54 = vpop.f32.mrb[73].mxu1  ;;  %v6345_v19 = vld [vmem:[#allocation8 + $0xc0] sm:$0xff]  }
 0xee3   :  { %v2891_v55 = vpop.f32.mrb[74].mxu1  ;;  %v6349_v54 = vld [vmem:[#allocation8 + $0xd0] sm:$0xff]  }
 0xee4   :  { %v2896_v5 = vpack.c.bf16 %v2895_v53, %v2895_v53  ;;  %v5997_v15 = vpop.f32.mrb[75].mxu1  ;;  %v6347_v53 = vld [vmem:[#allocation8 + $0xc8] sm:$0xff]   ;;  %v6351_v55 = vld [vmem:[#allocation8 + $0xd8] sm:$0xff]  }
 0xee5   :  { %v6355_v15 = vld [vmem:[#allocation8 + $0xe8] sm:$0xff]  }
 0xee6   :  { %6003 = vmatmul.mubr.msk.bf16.vlgmr.msra.gmra.mrb[60].mxu0 %vm776_vm1, %v2896_v5  ;;  %v6353_v5 = vld [vmem:[#allocation8 + $0xe0] sm:$0xff]  }
 0xee7   :  { %6013 = vmatpush3.bf16.xpose.msra.mxu0 %v3006_v56  ;;  %6014 = vmatprep.mubr.msk.bf16.mxu0 %vm7010_vm0, %v7009_v0  ;;  %v6357_v56 = vld [vmem:[#allocation8 + $0xf0] sm:$0xff]  }
 0xee8   :  { %6030 = vmatprep.subr.bf16.mxu0 %v7009_v0 }
 0xee9   :  { %v2997_v57 = vpop.f32.mrb[76].mxu1 }
 0xeea   :  { %v6010_v58 = vpop.f32.mrb[77].mxu1  ;;  %v3048_v2 = vsel %vm866_vm2, %v2997_v57, -inf }
 0xeeb   :  { %3049 = vmax.xlane.f32.xlu0 %v3048_v2  ;;  %v3000_v29 = vpop.f32.mrb[78].mxu1  ;;  %v6360_v58 = vld [vmem:[#allocation11 + $0xc8] sm:$0xff]   ;;  %v6361_v2 = vld [vmem:[#allocation11 + $0xd0] sm:$0xff]  }
 0xeec   :  { %v6011_v3 = vpop.f32.mrb[79].mxu1  ;;  %v6362_v29 = vld [vmem:[#allocation11 + $0xd8] sm:$0xff]  }
 0xeed   :  { %v6363_v3 = vld [vmem:[#allocation11 + $0xe0] sm:$0xff]  }
 0xeee   :  { %6015 = vmatmul.mubr.msk.bf16.vlgmr.msra.gmra.mrb[64].mxu0 %vm776_vm1, %v2954_v46 }
 0xeef   :  { %6031 = vmatpush3.bf16.msra.mxu0 %v6341_v39  ;;  %6034 = vmatprep.mubr.msk.bf16.mxu0 %vm7010_vm0, %v7009_v0 }
 0xef0   :  { %6032 = vmatprep.subr.bf16.mxu0 %v7009_v0 }
 0xef3   :  { %6033 = vmatpush3.bf16.msra.mxu0 %v6342_v44 }
 0xef4   :  { %6038 = vmatprep.subr.bf16.mxu0 %v7009_v0 }
 0xf78   :  { %v3050_v14 = vpop.xlane.xlu0 %3049 }
 0xfb9   :  { %v2946_v6 = vpop.f32.mrb[60].mxu0 }
 0xfba   :  { %v7834_v7 = vadd.f32 %v2946_v6, %v7687_v1  ;;  %v6004_v63 = vpop.f32.mrb[61].mxu0  ;;  %v6364_v6 = vld [vmem:[#allocation11 + $0xe8] sm:$0xff]  }
 0xfbb   :  { %v2949_v42 = vpop.f32.mrb[62].mxu0  ;;  %v6365_v63 = vld [vmem:[#allocation11 + $0xf0] sm:$0xff]  }
 0xfbc   :  { %v6005_v47 = vpop.f32.mrb[63].mxu0  ;;  %v6366_v42 = vld [vmem:[#allocation11 + $0xf8] sm:$0xff]  }
 0xfbd   :  { %v5126_v47 = vld [vmem:[#allocation14 + $0x3] ss:$0 sm:$0xff] }
 0xfc1   :  { %v3042_v8 = vpop.f32.mrb[64].mxu0 }
 0xfc2   :  { %v6016_v9 = vpop.f32.mrb[65].mxu0  ;;  %v3051_v10 = vsel %vm866_vm2, %v3042_v8, -inf }
 0xfc3   :  { %3052 = vmax.xlane.f32.xlu1 %v3051_v10  ;;  %v3045_v12 = vpop.f32.mrb[66].mxu0 }
 0xfc4   :  { %v6017_v13 = vpop.f32.mrb[67].mxu0 }
0x1050   :  { %v3053_v4 = vpop.xlane.xlu1 %3052 }
0x1051   :  { %v3054_v16 = vmax.f32 %v3050_v14, %v3053_v4 }
0x1053   :  { %v3055_v17 = vsub.f32 %v2997_v57, %v3054_v16  ;;  %v3058_v18 = vsub.f32 %v3042_v8, %v3054_v16  ;;  %v6358_v57 = vld [vmem:[#allocation8 + $0xf8] sm:$0xff]  }
0x1055   :  { %v3056_v21 = vmul.f32 1.442695, %v3055_v17  ;;  %v3059_v23 = vmul.f32 1.442695, %v3058_v18 }
0x1057   :  { %6479 = vpow2.f32 %v3056_v21 }
0x1058   :  { %6481 = vpow2.f32 %v3059_v23  ;;  %v5117_v23 = vld [vmem:[#allocation13 + $0x3] ss:$0 sm:$0xff] }
0x1061   :  { %v6480_v1 = vpop.eup %6479 }
0x1062   :  { %v6482_v59 = vpop.eup %6481  ;;  %v3061_v24 = vsel %vm866_vm2, %v6480_v1, 0.0  ;;  %v3068_v40 = vpack.c.bf16 %v6480_v1, %v6480_v1 }
0x1063   :  { %v3064_v25 = vsel %vm866_vm2, %v6482_v59, 0.0  ;;  %3062 = vadd.xlane.f32.xlu0 %v3061_v24  ;;  %v3069_v26 = vpack.c.bf16 %v6482_v59, %v6482_v59 }
0x1064   :  { %3065 = vadd.xlane.f32.xlu1 %v3064_v25 }
0x1065   :  { %6021 = vmatmul.mubr.msk.bf16.vlgmr.msra.gmra.mrb[80].mxu1 %vm866_vm2, %v3069_v26 }
0x1066   :  { %6025 = vmatpush3.bf16.msra.mxu1 %v3124_v27  ;;  %6026 = vmatprep.mubr.msk.bf16.mxu1 %vm7010_vm0, %v7009_v0 }
0x1067   :  { %6058 = vmatprep.subr.bf16.mxu1 %v7009_v0 }
0x1071   :  { %6027 = vmatmul.mubr.msk.bf16.vlgmr.msra.gmra.mrb[80].mxu1 %vm866_vm2, %v3068_v40 }
0x1072   :  { %6074 = vmatprep.mubr.msk.bf16.mxu1 %vm7010_vm0, %v7009_v0  ;;  %6059 = vmatpush3.bf16.msra.mxu1 %v7848_v60 }
0x1073   :  { %6060 = vmatprep.subr.bf16.mxu1 %v7009_v0 }
0x1076   :  { %6061 = vmatpush3.bf16.msra.mxu1 %v7852_v61 }
0x1077   :  { %6062 = vmatprep.subr.bf16.mxu1 %v7009_v0 }
0x107a   :  { %6063 = vmatpush3.bf16.msra.mxu1 %v7856_v28 }
0x107b   :  { %6064 = vmatprep.subr.bf16.mxu1 %v7009_v0 }
0x107e   :  { %6065 = vmatpush3.bf16.msra.mxu1 %v7860_v37 }
0x107f   :  { %6066 = vmatprep.subr.bf16.mxu1 %v7009_v0 }
0x1082   :  { %6067 = vmatpush3.bf16.msra.mxu1 %v7864_v43 }
0x1083   :  { %6068 = vmatprep.subr.bf16.mxu1 %v7009_v0 }
0x1086   :  { %6069 = vmatpush3.bf16.msra.mxu1 %v6352_v30 }
0x1087   :  { %6070 = vmatprep.subr.bf16.mxu1 %v7009_v0 }
0x108a   :  { %6071 = vmatpush3.bf16.msra.mxu1 %v6354_v31 }
0x108b   :  { %6072 = vmatprep.subr.bf16.mxu1 %v7009_v0 }
0x108e   :  { %6073 = vmatpush3.bf16.msra.mxu1 %v6356_v35 }
0x108f   :  { %6098 = vmatprep.subr.bf16.mxu1 %v7009_v0 }
0x1091   :  { %6075 = vmatmul.mubr.bf16.vlgmr.msra.gmra.mrb[84].mxu1 %v7423_v34 }
0x1092   :  { %6114 = vmatprep.mubr.msk.bf16.mxu1 %vm7010_vm0, %v7009_v0  ;;  %6099 = vmatpush3.bf16.msra.mxu1 %v6359_v38 }
0x1093   :  { %6100 = vmatprep.subr.bf16.mxu1 %v7009_v0 }
0x1096   :  { %6101 = vmatpush3.bf16.msra.mxu1 %v6360_v58 }
0x1097   :  { %6102 = vmatprep.subr.bf16.mxu1 %v7009_v0 }
0x109a   :  { %6103 = vmatpush3.bf16.msra.mxu1 %v6361_v2 }
0x109b   :  { %6104 = vmatprep.subr.bf16.mxu1 %v7009_v0 }
0x109e   :  { %6105 = vmatpush3.bf16.msra.mxu1 %v6362_v29 }
0x109f   :  { %6106 = vmatprep.subr.bf16.mxu1 %v7009_v0 }
0x10a2   :  { %6107 = vmatpush3.bf16.msra.mxu1 %v6363_v3 }
0x10a3   :  { %6108 = vmatprep.subr.bf16.mxu1 %v7009_v0 }
0x10a6   :  { %6109 = vmatpush3.bf16.msra.mxu1 %v6364_v6 }
0x10a7   :  { %6110 = vmatprep.subr.bf16.mxu1 %v7009_v0 }
0x10aa   :  { %6111 = vmatpush3.bf16.msra.mxu1 %v6365_v63 }
0x10ab   :  { %6112 = vmatprep.subr.bf16.mxu1 %v7009_v0 }
0x10ae   :  { %6113 = vmatpush3.bf16.msra.mxu1 %v6366_v42 }
0x10af   :  { %6138 = vmatprep.subr.bf16.mxu1 %v7009_v0 }
0x10b1   :  { %6115 = vmatmul.mubr.bf16.vlgmr.msra.gmra.mrb[88].mxu1 %v7423_v34 }
0x10b2   :  { %6140 = vmatprep.mubr.msk.bf16.mxu1 %vm7010_vm0, %v7009_v0 }
0x10f0   :  { %v3063_v41 = vpop.xlane.xlu0 %3062 }
0x10f1   :  { %v3066_v39 = vpop.xlane.xlu1 %3065 }
0x10f2   :  { %v3067_v44 = vadd.f32 %v3066_v39, %v3063_v41 }
0x10f4   :  { %6483 = vrcp.f32 %v3067_v44 }
0x10fe   :  { %v6484_v46 = vpop.eup %6483 }
0x1144   :  { %v3160_v22 = vpop.f32.mrb[80].mxu1 }
0x1145   :  { %v3167_v48 = vmul.f32 %v6484_v46, %v3160_v22  ;;  %v6028_v49 = vpop.f32.mrb[81].mxu1 }
0x1146   :  { %v3163_v50 = vpop.f32.mrb[82].mxu1 }
0x1147   :  { %v3168_v51 = vpack.c.bf16 %v3167_v48, %v3167_v48  ;;  %v6029_v52 = vpop.f32.mrb[83].mxu1 }
0x1149   :  { %6035 = vmatmul.mubr.msk.bf16.vlgmr.msra.gmra.mrb[68].mxu0 %vm776_vm1, %v3168_v51 }
0x114a   :  { %6039 = vmatpush3.bf16.msra.mxu0 %v6345_v19  ;;  %6054 = vmatprep.mubr.msk.bf16.mxu0 %vm7010_vm0, %v7009_v0 }
0x114b   :  { %6040 = vmatprep.subr.bf16.mxu0 %v7009_v0 }
0x114e   :  { %6041 = vmatpush3.bf16.msra.mxu0 %v6347_v53 }
0x114f   :  { %6042 = vmatprep.subr.bf16.mxu0 %v7009_v0 }
0x1152   :  { %6043 = vmatpush3.bf16.msra.mxu0 %v6349_v54 }
0x1153   :  { %6044 = vmatprep.subr.bf16.mxu0 %v7009_v0 }
0x1156   :  { %6045 = vmatpush3.bf16.msra.mxu0 %v6351_v55 }
0x1157   :  { %6046 = vmatprep.subr.bf16.mxu0 %v7009_v0 }
0x115a   :  { %6047 = vmatpush3.bf16.msra.mxu0 %v6353_v5 }
0x115b   :  { %6048 = vmatprep.subr.bf16.mxu0 %v7009_v0 }
0x115e   :  { %6049 = vmatpush3.bf16.msra.mxu0 %v6355_v15 }
0x115f   :  { %6050 = vmatprep.subr.bf16.mxu0 %v7009_v0 }
0x1162   :  { %6051 = vmatpush3.bf16.msra.mxu0 %v6357_v56 }
0x1163   :  { %6052 = vmatprep.subr.bf16.mxu0 %v7009_v0 }
0x1164   :  { %v3459_v8 = vpop.f32.mrb[84].mxu1 }
0x1165   :  { %v3460_v9 = vadd.f32 %v5126_v47, %v3459_v8  ;;  %v6076_v10 = vpop.f32.mrb[85].mxu1 }
0x1166   :  { %6053 = vmatpush3.bf16.msra.mxu0 %v6358_v57  ;;  %v3462_v12 = vpop.f32.mrb[86].mxu1 }
0x1167   :  { %6078 = vmatprep.subr.bf16.mxu0 %v7009_v0  ;;  %v3463_v13 = vadd.f32 %v5126_v47, %v3462_v12  ;;  %v6077_v14 = vpop.f32.mrb[87].mxu1 }
0x1169   :  { %6055 = vmatmul.mubr.bf16.vlgmr.msra.gmra.mrb[72].mxu0 %v7423_v34  ;;  %v7926_v4 = vpack.c.bf16 %v3463_v13, %v3460_v9 }
0x116a   :  { %6079 = vmatpush3.bf16.msra.mxu0 %v7848_v60  ;;  %6094 = vmatprep.mubr.msk.bf16.mxu0 %vm7010_vm0, %v7009_v0 }
0x116b   :  { %6080 = vmatprep.subr.bf16.mxu0 %v7009_v0  ;;  %v3653_v16 = vsel %vm776_vm1, %v7926_v4, 0 }
0x116c   :  { %6139 = vmatpush3.bf16.xpose.msra.mxu1 %v3653_v16 }
0x116d   :  { %6144 = vmatprep.subr.bf16.mxu1 %v7009_v0 }
0x116e   :  { %6081 = vmatpush3.bf16.msra.mxu0 %v7852_v61 }
0x116f   :  { %6082 = vmatprep.subr.bf16.mxu0 %v7009_v0 }
0x1172   :  { %6083 = vmatpush3.bf16.msra.mxu0 %v7856_v28 }
0x1173   :  { %6084 = vmatprep.subr.bf16.mxu0 %v7009_v0 }
0x1176   :  { %6085 = vmatpush3.bf16.msra.mxu0 %v7860_v37 }
0x1177   :  { %6086 = vmatprep.subr.bf16.mxu0 %v7009_v0 }
0x117a   :  { %6087 = vmatpush3.bf16.msra.mxu0 %v7864_v43 }
0x117b   :  { %6088 = vmatprep.subr.bf16.mxu0 %v7009_v0 }
0x117e   :  { %6089 = vmatpush3.bf16.msra.mxu0 %v6352_v30 }
0x117f   :  { %6090 = vmatprep.subr.bf16.mxu0 %v7009_v0 }
0x1182   :  { %6091 = vmatpush3.bf16.msra.mxu0 %v6354_v31 }
0x1183   :  { %6092 = vmatprep.subr.bf16.mxu0 %v7009_v0 }
0x1184   :  { %v3599_v39 = vpop.f32.mrb[88].mxu1 }
0x1185   :  { %v6116_v44 = vpop.f32.mrb[89].mxu1 }
0x1186   :  { %6093 = vmatpush3.bf16.msra.mxu0 %v6356_v35  ;;  %v3602_v46 = vpop.f32.mrb[90].mxu1 }
0x1187   :  { %6118 = vmatprep.subr.bf16.mxu0 %v7009_v0  ;;  %v6117_v48 = vpop.f32.mrb[91].mxu1 }
0x1189   :  { %6095 = vmatmul.mubr.bf16.vlgmr.msra.gmra.mrb[76].mxu0 %v7449_v45 }
0x118a   :  { %6119 = vmatpush3.bf16.msra.mxu0 %v6359_v38  ;;  %6134 = vmatprep.mubr.msk.bf16.mxu0 %vm7010_vm0, %v7009_v0  ;;  %v5135_v38 = vld [vmem:[#allocation16 + $0x3] ss:$0 sm:$0xff] }
0x118b   :  { %6120 = vmatprep.subr.bf16.mxu0 %v7009_v0  ;;  %v3600_v41 = vadd.f32 %v5135_v38, %v3599_v39  ;;  %v3603_v22 = vadd.f32 %v5135_v38, %v3602_v46 }
0x118d   :  { %v7949_v49 = vpack.c.bf16 %v3603_v22, %v3600_v41 }
0x118e   :  { %6121 = vmatpush3.bf16.msra.mxu0 %v6360_v58 }
0x118f   :  { %6122 = vmatprep.subr.bf16.mxu0 %v7009_v0 }
0x1192   :  { %6123 = vmatpush3.bf16.msra.mxu0 %v6361_v2 }
0x1193   :  { %6124 = vmatprep.subr.bf16.mxu0 %v7009_v0 }
0x1196   :  { %6125 = vmatpush3.bf16.msra.mxu0 %v6362_v29 }
0x1197   :  { %6126 = vmatprep.subr.bf16.mxu0 %v7009_v0 }
0x119a   :  { %6127 = vmatpush3.bf16.msra.mxu0 %v6363_v3 }
0x119b   :  { %6128 = vmatprep.subr.bf16.mxu0 %v7009_v0 }
0x119e   :  { %6129 = vmatpush3.bf16.msra.mxu0 %v6364_v6 }
0x119f   :  { %6130 = vmatprep.subr.bf16.mxu0 %v7009_v0 }
0x11a2   :  { %6131 = vmatpush3.bf16.msra.mxu0 %v6365_v63 }
0x11a3   :  { %6132 = vmatprep.subr.bf16.mxu0 %v7009_v0 }
0x11a6   :  { %6133 = vmatpush3.bf16.msra.mxu0 %v6366_v42 }
0x11a7   :  { %6162 = vmatprep.subr.bf16.mxu0 %v7009_v0 }
0x11a9   :  { %6135 = vmatmul.mubr.bf16.vlgmr.msra.gmra.mrb[80].mxu0 %v7449_v45 }
0x11aa   :  { %6166 = vmatprep.mubr.msk.bf16.mxu0 %vm7010_vm0, %v7009_v0 }
0x121c   :  { %v3206_v17 = vpop.f32.mrb[68].mxu0 }
0x121d   :  { %v7932_v34 = vadd.f32 %v3206_v17, %v7775_v36  ;;  %v6036_v45 = vpop.f32.mrb[69].mxu0 }
0x121e   :  { %v3209_v18 = vpop.f32.mrb[70].mxu0 }
0x121f   :  { %v6037_v21 = vpop.f32.mrb[71].mxu0 }
0x123c   :  { %v3359_v1 = vpop.f32.mrb[72].mxu0 }
0x123d   :  { %v3360_v62 = vadd.f32 %v5117_v23, %v3359_v1  ;;  %v6056_v59 = vpop.f32.mrb[73].mxu0  ;;  %v3914_v1 = vrot.slane %v7926_v4, 4 }
0x123e   :  { %v3362_v24 = vpop.f32.mrb[74].mxu0 }
0x123f   :  { %v3366_v25 = vmul.f32 0.17677669, %v3360_v62  ;;  %v3363_v26 = vadd.f32 %v5117_v23, %v3362_v24  ;;  %v6057_v27 = vpop.f32.mrb[75].mxu0  ;;  %v3810_v23 = vsel %vm892_vm3, %v7949_v49, 0  ;;  %v3919_v59 = vsel %vm776_vm1, %v3914_v1, 0  ;;  %v6367_v24 = vld [vmem:[#allocation17 + $0x30] sm:$0xff]  }
0x1240   :  { %6163 = vmatpush3.bf16.msra.mxu0 %v6367_v24 }
0x1241   :  { %v3367_v40 = vmul.f32 0.17677669, %v3363_v26  ;;  %v6368_v26 = vld [vmem:[#allocation17 + $0x38] sm:$0xff]   ;;  %6164 = vmatprep.subr.bf16.mxu0 %v7009_v0 }
0x1243   :  { %v7934_v60 = vpack.c.bf16 %v3367_v40, %v3366_v25 }
0x1244   :  { %6165 = vmatpush3.bf16.msra.mxu0 %v6368_v26 }
0x1245   :  { %6141 = vmatmul.mubr.msk.bf16.vlgmr.msra.gmra.mrb[92].mxu1 %vm776_vm1, %v7934_v60  ;;  %v3912_v27 = vrot.slane %v7934_v60, 4  ;;  %6176 = vmatprep.subr.bf16.mxu0 %v7009_v0 }
0x1246   :  { %6146 = vmatprep.mubr.msk.bf16.mxu1 %vm7010_vm0, %v7009_v0 }
0x125c   :  { %v3501_v36 = vpop.f32.mrb[76].mxu0 }
0x125d   :  { %v6096_v61 = vpop.f32.mrb[77].mxu0  ;;  %v3502_v37 = vadd.f32 %v5126_v47, %v3501_v36 }
0x125e   :  { %v3504_v28 = vpop.f32.mrb[78].mxu0 }
0x125f   :  { %v3505_v43 = vadd.f32 %v5126_v47, %v3504_v28  ;;  %v6097_v30 = vpop.f32.mrb[79].mxu0 }
0x1261   :  { %v7940_v31 = vpack.c.bf16 %v3505_v43, %v3502_v37 }
0x1263   :  { %v3696_v35 = vsel %vm776_vm1, %v7940_v31, 0  ;;  %v3962_v37 = vrot.slane %v7940_v31, 4 }
0x1264   :  { %6145 = vmatpush3.bf16.xpose.msra.mxu1 %v3696_v35 }
0x1265   :  { %6150 = vmatprep.subr.bf16.mxu1 %v7009_v0  ;;  %v3964_v41 = vsel %vm776_vm1, %v3962_v37, 0 }
0x126b   :  { %6147 = vmatmul.mubr.msk.bf16.vlgmr.msra.gmra.mrb[96].mxu1 %vm776_vm1, %v7934_v60 }
0x126c   :  { %6152 = vmatprep.mubr.msk.bf16.mxu1 %vm7010_vm0, %v7009_v0 }
0x127c   :  { %v3641_v57 = vpop.f32.mrb[80].mxu0 }
0x127d   :  { %v3642_v58 = vadd.f32 %v5135_v38, %v3641_v57  ;;  %v6136_v2 = vpop.f32.mrb[81].mxu0 }
0x127e   :  { %v3644_v29 = vpop.f32.mrb[82].mxu0 }
0x127f   :  { %v3645_v3 = vadd.f32 %v5135_v38, %v3644_v29  ;;  %v6137_v6 = vpop.f32.mrb[83].mxu0 }
0x1281   :  { %v3648_v63 = vpack.c.bf16 %v3645_v3, %v3642_v58 }
0x1283   :  { %v3764_v42 = vsel %vm892_vm3, %v3648_v63, 0  ;;  %v4029_v25 = vrot.slane %v3648_v63, 4 }
0x1284   :  { %6151 = vmatpush3.bf16.msra.mxu1 %v3764_v42 }
0x1285   :  { %6156 = vmatprep.subr.bf16.mxu1 %v7009_v0  ;;  %v4034_v4 = vsel %vm892_vm3, %v4029_v25, 0 }
0x1318   :  { %v3689_v50 = vpop.f32.mrb[92].mxu1 }
0x1319   :  { %v6142_v19 = vpop.f32.mrb[93].mxu1  ;;  %v3738_v51 = vsel %vm866_vm2, %v3689_v50, -inf }
0x131a   :  { %3739 = vmax.xlane.f32.xlu0 %v3738_v51  ;;  %v3692_v52 = vpop.f32.mrb[94].mxu1 }
0x131b   :  { %v6143_v53 = vpop.f32.mrb[95].mxu1 }
0x133e   :  { %v3732_v54 = vpop.f32.mrb[96].mxu1 }
0x133f   :  { %v6148_v55 = vpop.f32.mrb[97].mxu1  ;;  %v3741_v5 = vsel %vm866_vm2, %v3732_v54, -inf }
0x1340   :  { %3742 = vmax.xlane.f32.xlu1 %v3741_v5  ;;  %v3735_v15 = vpop.f32.mrb[98].mxu1 }
0x1341   :  { %v6149_v56 = vpop.f32.mrb[99].mxu1 }
0x13a7   :  { %v3740_v47 = vpop.xlane.xlu0 %3739 }
0x13cd   :  { %v3743_v8 = vpop.xlane.xlu1 %3742 }
0x13ce   :  { %v3744_v9 = vmax.f32 %v3740_v47, %v3743_v8  ;;  %v4077_v47 = vrot.slane %v7949_v49, 4 }
0x13d0   :  { %v3745_v10 = vsub.f32 %v3689_v50, %v3744_v9  ;;  %v3748_v12 = vsub.f32 %v3732_v54, %v3744_v9 }
0x13d2   :  { %v3746_v13 = vmul.f32 1.442695, %v3745_v10  ;;  %v3749_v14 = vmul.f32 1.442695, %v3748_v12 }
0x13d4   :  { %6485 = vpow2.f32 %v3746_v13 }
0x13d5   :  { %6487 = vpow2.f32 %v3749_v14  ;;  %v4082_v14 = vsel %vm892_vm3, %v4077_v47, 0  ;;  %v6413_v47 = vld [vmem:[#allocation20 + $0xe4] ss:$16 sps:$4 sm:$0xff]  }
0x13de   :  { %v6486_v16 = vpop.eup %6485 }
0x13df   :  { %v6488_v17 = vpop.eup %6487  ;;  %v3751_v45 = vsel %vm866_vm2, %v6486_v16, 0.0  ;;  %v3758_v62 = vpack.c.bf16 %v6486_v16, %v6486_v16 }
0x13e0   :  { %v3754_v18 = vsel %vm866_vm2, %v6488_v17, 0.0  ;;  %3752 = vadd.xlane.f32.xlu0 %v3751_v45  ;;  %v3759_v21 = vpack.c.bf16 %v6488_v17, %v6488_v17 }
0x13e1   :  { %3755 = vadd.xlane.f32.xlu1 %v3754_v18 }
0x13e2   :  { %6153 = vmatmul.mubr.msk.bf16.vlgmr.msra.gmra.mrb[100].mxu1 %vm866_vm2, %v3759_v21 }
0x13e3   :  { %6157 = vmatpush3.bf16.msra.mxu1 %v3810_v23  ;;  %6158 = vmatprep.mubr.msk.bf16.mxu1 %vm7010_vm0, %v7009_v0 }
0x13e4   :  { %6170 = vmatprep.subr.bf16.mxu1 %v7009_v0 }
0x13ee   :  { %6159 = vmatmul.mubr.msk.bf16.vlgmr.msra.gmra.mrb[100].mxu1 %vm866_vm2, %v3758_v62 }
0x13ef   :  { %6171 = vmatpush3.bf16.xpose.msra.mxu1 %v3919_v59  ;;  %6172 = vmatprep.mubr.msk.bf16.mxu1 %vm7010_vm0, %v7009_v0 }
0x13f0   :  { %6182 = vmatprep.subr.bf16.mxu1 %v7009_v0 }
0x13f6   :  { %6173 = vmatmul.mubr.msk.bf16.vlgmr.msra.gmra.mrb[104].mxu1 %vm776_vm1, %v3912_v27 }
0x13f7   :  { %6183 = vmatpush3.bf16.msra.mxu1 %v4034_v4  ;;  %6184 = vmatprep.mubr.msk.bf16.mxu1 %vm7010_vm0, %v7009_v0 }
0x13f8   :  { %6188 = vmatprep.subr.bf16.mxu1 %v7009_v0 }
0x146d   :  { %v3753_v36 = vpop.xlane.xlu0 %3752 }
0x146e   :  { %v3756_v40 = vpop.xlane.xlu1 %3755 }
0x146f   :  { %v3757_v61 = vadd.f32 %v3756_v40, %v3753_v36 }
0x1471   :  { %6489 = vrcp.f32 %v3757_v61 }
0x147b   :  { %v6490_v60 = vpop.eup %6489 }
0x14c1   :  { %v3846_v28 = vpop.f32.mrb[100].mxu1 }
0x14c2   :  { %v3853_v43 = vmul.f32 %v6490_v60, %v3846_v28  ;;  %v6160_v30 = vpop.f32.mrb[101].mxu1 }
0x14c3   :  { %v3849_v35 = vpop.f32.mrb[102].mxu1  ;;  %v6371_v30 = vld [vmem:[#allocation20 + $0x4] ss:$16 sps:$4 sm:$0xff]  }
0x14c4   :  { %v3854_v38 = vpack.c.bf16 %v3853_v43, %v3853_v43  ;;  %v6161_v39 = vpop.f32.mrb[103].mxu1  ;;  %v6369_v43 = vld [vmem:[#allocation20] ss:$16 sps:$4 sm:$0xff]   ;;  %v6372_v35 = vld [vmem:[#allocation20 + $0x8] ss:$16 sps:$4 sm:$0xff]  }
0x14c5   :  { %v6377_v39 = vld [vmem:[#allocation20 + $0x24] ss:$16 sps:$4 sm:$0xff]  }
0x14c6   :  { %6167 = vmatmul.mubr.msk.bf16.vlgmr.msra.gmra.mrb[84].mxu0 %vm776_vm1, %v3854_v38  ;;  %v6374_v38 = vld [vmem:[#allocation20 + $0xc] ss:$16 sps:$4 sm:$0xff]  }
0x14c7   :  { %6177 = vmatpush3.bf16.xpose.msra.mxu0 %v3964_v41  ;;  %6178 = vmatprep.mubr.msk.bf16.mxu0 %vm7010_vm0, %v7009_v0  ;;  %v6380_v41 = vld [vmem:[#allocation20 + $0x2c] ss:$16 sps:$4 sm:$0xff]  }
0x14c8   :  { %6194 = vmatprep.subr.bf16.mxu0 %v7009_v0 }
0x14c9   :  { %v3955_v44 = vpop.f32.mrb[104].mxu1 }
0x14ca   :  { %v6174_v46 = vpop.f32.mrb[105].mxu1  ;;  %v4006_v22 = vsel %vm866_vm2, %v3955_v44, -inf }
0x14cb   :  { %4007 = vmax.xlane.f32.xlu0 %v4006_v22  ;;  %v3958_v31 = vpop.f32.mrb[106].mxu1  ;;  %v6383_v46 = vld [vmem:[#allocation20 + $0x44] ss:$16 sps:$4 sm:$0xff]   ;;  %v6386_v22 = vld [vmem:[#allocation20 + $0x4c] ss:$16 sps:$4 sm:$0xff]  }
0x14cc   :  { %v6175_v48 = vpop.f32.mrb[107].mxu1  ;;  %v6381_v31 = vld [vmem:[#allocation20 + $0x40] ss:$16 sps:$4 sm:$0xff]  }
0x14ce   :  { %6179 = vmatmul.mubr.msk.bf16.vlgmr.msra.gmra.mrb[88].mxu0 %vm776_vm1, %v3912_v27 }
0x14cf   :  { %6195 = vmatpush3.bf16.msra.mxu0 %v6367_v24  ;;  %6198 = vmatprep.mubr.msk.bf16.mxu0 %vm7010_vm0, %v7009_v0 }
0x14d0   :  { %6196 = vmatprep.subr.bf16.mxu0 %v7009_v0 }
0x14d3   :  { %6197 = vmatpush3.bf16.msra.mxu0 %v6368_v26 }
0x14d4   :  { %4438 = vmatprep.subr.bf16.mxu0 %v6371_v30  ;;  %v6426_v30 = vld [vmem:[#allocation23 + $0xd0] sm:$0xff]  }
0x1558   :  { %v4008_v57 = vpop.xlane.xlu0 %4007 }
0x1599   :  { %v3904_v50 = vpop.f32.mrb[84].mxu0 }
0x159a   :  { %v3910_v19 = vadd.f32 %v3904_v50, %v7834_v7  ;;  %v6168_v51 = vpop.f32.mrb[85].mxu0  ;;  %v5156_v7 = vld [vmem:[#allocation19] ss:$0 sm:$0xff] }
0x159b   :  { %v3907_v52 = vpop.f32.mrb[86].mxu0 }
0x159c   :  { %v6169_v53 = vpop.f32.mrb[87].mxu0  ;;  %v4178_v8 = vadd.f32 %v5156_v7, %v3910_v19  ;;  %v6389_v52 = vld [vmem:[#allocation20 + $0x64] ss:$16 sps:$4 sm:$0xff]  }
0x159d   :  { %v6392_v53 = vld [vmem:[#allocation20 + $0x6c] ss:$16 sps:$4 sm:$0xff]  }
0x159e   :  { %v4180_v16 = vadd.f32 %v4178_v8, %v7415_v32  ;;  %v6416_v8 = vld [vmem:[#allocation20 + $0xec] ss:$16 sps:$4 sm:$0xff]  }
0x15a1   :  { %v4000_v54 = vpop.f32.mrb[88].mxu0 }
0x15a2   :  { %v6180_v55 = vpop.f32.mrb[89].mxu0  ;;  %v4009_v5 = vsel %vm866_vm2, %v4000_v54, -inf }
0x15a3   :  { %4010 = vmax.xlane.f32.xlu1 %v4009_v5  ;;  %v4003_v15 = vpop.f32.mrb[90].mxu0  ;;  %v6390_v55 = vld [vmem:[#allocation20 + $0x68] ss:$16 sps:$4 sm:$0xff]   ;;  %v6395_v5 = vld [vmem:[#allocation20 + $0x84] ss:$16 sps:$4 sm:$0xff]  }
0x15a4   :  { %v6181_v56 = vpop.f32.mrb[91].mxu0  ;;  %v6398_v15 = vld [vmem:[#allocation20 + $0x8c] ss:$16 sps:$4 sm:$0xff]  }
0x15a5   :  { %v6393_v56 = vld [vmem:[#allocation20 + $0x80] ss:$16 sps:$4 sm:$0xff]  }
0x1630   :  { %v4011_v58 = vpop.xlane.xlu1 %4010 }
0x1631   :  { %v4012_v2 = vmax.f32 %v4008_v57, %v4011_v58  ;;  %v6396_v57 = vld [vmem:[#allocation20 + $0x88] ss:$16 sps:$4 sm:$0xff]   ;;  %v6401_v58 = vld [vmem:[#allocation20 + $0xa4] ss:$16 sps:$4 sm:$0xff]  }
0x1633   :  { %v4013_v29 = vsub.f32 %v3955_v44, %v4012_v2  ;;  %v4016_v3 = vsub.f32 %v4000_v54, %v4012_v2  ;;  %v6375_v44 = vld [vmem:[#allocation20 + $0x20] ss:$16 sps:$4 sm:$0xff]   ;;  %v6404_v2 = vld [vmem:[#allocation20 + $0xac] ss:$16 sps:$4 sm:$0xff]  }
0x1634   :  { %v6387_v54 = vld [vmem:[#allocation20 + $0x60] ss:$16 sps:$4 sm:$0xff]  }
0x1635   :  { %v4014_v6 = vmul.f32 1.442695, %v4013_v29  ;;  %v4017_v63 = vmul.f32 1.442695, %v4016_v3  ;;  %v6399_v29 = vld [vmem:[#allocation20 + $0xa0] ss:$16 sps:$4 sm:$0xff]  }
0x1636   :  { %v6402_v3 = vld [vmem:[#allocation20 + $0xa8] ss:$16 sps:$4 sm:$0xff]  }
0x1637   :  { %6491 = vpow2.f32 %v4014_v6  ;;  %v6407_v6 = vld [vmem:[#allocation20 + $0xc4] ss:$16 sps:$4 sm:$0xff]  }
0x1638   :  { %6493 = vpow2.f32 %v4017_v63  ;;  %v6410_v63 = vld [vmem:[#allocation20 + $0xcc] ss:$16 sps:$4 sm:$0xff]  }
0x1641   :  { %v6492_v42 = vpop.eup %6491 }
0x1642   :  { %v6494_v9 = vpop.eup %6493  ;;  %v4019_v10 = vsel %vm866_vm2, %v6492_v42, 0.0  ;;  %v4026_v49 = vpack.c.bf16 %v6492_v42, %v6492_v42  ;;  %v6408_v42 = vld [vmem:[#allocation20 + $0xc8] ss:$16 sps:$4 sm:$0xff]  }
0x1643   :  { %v4022_v12 = vsel %vm866_vm2, %v6494_v9, 0.0  ;;  %4020 = vadd.xlane.f32.xlu0 %v4019_v10  ;;  %v4027_v13 = vpack.c.bf16 %v6494_v9, %v6494_v9  ;;  %v6411_v9 = vld [vmem:[#allocation20 + $0xe0] ss:$16 sps:$4 sm:$0xff]   ;;  %v6414_v10 = vld [vmem:[#allocation20 + $0xe8] ss:$16 sps:$4 sm:$0xff]  }
0x1644   :  { %4023 = vadd.xlane.f32.xlu1 %v4022_v12  ;;  %v7012_v12 = vmov 0  }
0x1645   :  { %6185 = vmatmul.mubr.msk.bf16.vlgmr.msra.gmra.mrb[108].mxu1 %vm866_vm2, %v4027_v13  ;;  %v6417_v13 = vld [vmem:[#allocation23 + $0x40] sm:$0xff]  }
0x1646   :  { %6189 = vmatpush3.bf16.msra.mxu1 %v4082_v14  ;;  %6190 = vmatprep.mubr.msk.bf16.mxu1 %vm7010_vm0, %v7009_v0  ;;  %v6418_v14 = vld [vmem:[#allocation23 + $0xc0] sm:$0xff]  }
0x1647   :  { %4184 = vadd.xlane.f32.xlu0 %v4180_v16  ;;  %4481 = vmatprep.subr.bf16.mxu1 %v6374_v38  ;;  %v6428_v38 = vld [vmem:[#allocation23 + $0x90] sm:$0xff]  }
0x1651   :  { %6191 = vmatmul.mubr.msk.bf16.vlgmr.msra.gmra.mrb[108].mxu1 %vm866_vm2, %v4026_v49 }
0x1652   :  { %4482 = vmatpush1.bf16.msra.mxu1 %v6372_v35  ;;  %4513 = vmatprep.mubr.bf16.mxu1 %v7012_v12  ;;  %v6427_v35 = vld [vmem:[#allocation23 + $0x10] sm:$0xff]  }
0x1653   :  { %4483 = vmatprep.subr.bf16.mxu1 %v6380_v41  ;;  %v6430_v41 = vld [vmem:[#allocation23 + $0xd8] sm:$0xff]  }
0x16d0   :  { %v4021_v17 = vpop.xlane.xlu0 %4020 }
0x16d1   :  { %v4024_v1 = vpop.xlane.xlu1 %4023 }
0x16d2   :  { %v4025_v62 = vadd.f32 %v4024_v1, %v4021_v17 }
0x16d4   :  { %v4185_v45 = vpop.xlane.xlu0 %4184  ;;  %6495 = vrcp.f32 %v4025_v62 }
0x16d5   :  { %v4189_v18 = vmul.f32 0.0078125, %v4185_v45 }
0x16d7   :  { %v7999_v21 = vsub.f32 %v4180_v16, %v4189_v18 }
0x16d9   :  { %v4193_v23 = vmul.f32 %v7999_v21, %v7999_v21 }
0x16db   :  { %4195 = vadd.xlane.f32.xlu0 %v4193_v23 }
0x16de   :  { %v6496_v32 = vpop.eup %6495 }
0x1724   :  { %v4118_v59 = vpop.f32.mrb[108].mxu1 }
0x1725   :  { %v4125_v24 = vmul.f32 %v6496_v32, %v4118_v59  ;;  %v6192_v0 = vpop.f32.mrb[109].mxu1  ;;  %v5157_v32 = vld [vmem:[#allocation26] ss:$0 sm:$0xff] }
0x1726   :  { %v4121_v25 = vpop.f32.mrb[110].mxu1 }
0x1727   :  { %v4126_v26 = vpack.c.bf16 %v4125_v24, %v4125_v24  ;;  %v6193_v27 = vpop.f32.mrb[111].mxu1  ;;  %v5158_v25 = vld [vmem:[#allocation28] ss:$0 sm:$0xff] }
0x1729   :  { %6199 = vmatmul.mubr.msk.bf16.vlgmr.msra.gmra.mrb[92].mxu0 %vm776_vm1, %v4126_v26 }
0x172a   :  { %4439 = vmatpush1.bf16.msra.mxu0 %v6369_v43  ;;  %4470 = vmatprep.mubr.bf16.mxu0 %v7012_v12  ;;  %v6425_v43 = vld [vmem:[#allocation23 + $0x50] sm:$0xff]  }
0x172b   :  { %4440 = vmatprep.subr.bf16.mxu0 %v6377_v39  ;;  %v6429_v39 = vld [vmem:[#allocation23 + $0x58] sm:$0xff]  }
0x172e   :  { %4441 = vmatpush1.bf16.msra.mxu0 %v6375_v44  ;;  %v6431_v44 = vld [vmem:[#allocation23 + $0x18] sm:$0xff]  }
0x172f   :  { %4442 = vmatprep.subr.bf16.mxu0 %v6383_v46  ;;  %v6433_v46 = vld [vmem:[#allocation23 + $0x60] sm:$0xff]  }
0x1732   :  { %4443 = vmatpush1.bf16.msra.mxu0 %v6381_v31  ;;  %v6435_v31 = vld [vmem:[#allocation23 + $0x20] sm:$0xff]  }
0x1733   :  { %4444 = vmatprep.subr.bf16.mxu0 %v6389_v52  ;;  %v6441_v52 = vld [vmem:[#allocation23 + $0x70] sm:$0xff]  }
0x1736   :  { %4445 = vmatpush1.bf16.msra.mxu0 %v6387_v54  ;;  %v6443_v54 = vld [vmem:[#allocation23 + $0x30] sm:$0xff]  }
0x1737   :  { %4446 = vmatprep.subr.bf16.mxu0 %v6395_v5  ;;  %v6445_v5 = vld [vmem:[#allocation23 + $0x78] sm:$0xff]  }
0x173a   :  { %4447 = vmatpush1.bf16.msra.mxu0 %v6393_v56  ;;  %v6447_v56 = vld [vmem:[#allocation23 + $0x38] sm:$0xff]  }
0x173b   :  { %4448 = vmatprep.subr.bf16.mxu0 %v6401_v58  ;;  %v4268_v58 = vsub.s32 2, %v7398_v11 }
0x173e   :  { %4449 = vmatpush1.bf16.msra.mxu0 %v6399_v29  ;;  %v4264_v29 = vsub.s32 1, %v7398_v11 }
0x173f   :  { %4450 = vmatprep.subr.bf16.mxu0 %v6407_v6 }
0x1768   :  { %v4196_v16 = vpop.xlane.xlu0 %4195 }
0x1769   :  { %v4199_v49 = vmul.f32 0.0078125, %v4196_v16 }
0x176b   :  { %v4201_v17 = vadd.f32 1e-05, %v4199_v49 }
0x176d   :  { %6497 = vrsqrt.f32 %v4201_v17 }
0x1777   :  { %v6498_v1 = vpop.eup %6497 }
0x1778   :  { %v4205_v62 = vmul.f32 %v6498_v1, %v7999_v21  ;;  %v6421_v21 = vld [vmem:[#allocation23 + $0x48] sm:$0xff]  }
0x177a   :  { %v4213_v0 = vmul.f32 %v5157_v32, %v4205_v62 }
0x177c   :  { %v8007_v27 = vadd.f32 %v5158_v25, %v4213_v0 }
0x17fc   :  { %v4164_v4 = vpop.f32.mrb[92].mxu0 }
0x17fd   :  { %v4170_v40 = vadd.f32 %v4164_v4, %v7932_v34  ;;  %v6200_v36 = vpop.f32.mrb[93].mxu0  ;;  %v6378_v34 = vld [vmem:[#allocation20 + $0x28] ss:$16 sps:$4 sm:$0xff]  }
0x17fe   :  { %v4167_v61 = vpop.f32.mrb[94].mxu0  ;;  %4484 = vmatpush1.bf16.msra.mxu1 %v6378_v34  ;;  %v6420_v36 = vld [vmem:[#allocation23 + $0x80] sm:$0xff]   ;;  %v6432_v34 = vld [vmem:[#allocation23 + $0x98] sm:$0xff]  }
0x17ff   :  { %v4179_v60 = vadd.f32 %v5156_v7, %v4170_v40  ;;  %v6201_v28 = vpop.f32.mrb[95].mxu0  ;;  %4485 = vmatprep.subr.bf16.mxu1 %v6386_v22  ;;  %v6405_v7 = vld [vmem:[#allocation20 + $0xc0] ss:$16 sps:$4 sm:$0xff]   ;;  %v6419_v40 = vld [vmem:[#allocation23] sm:$0xff]  }
0x1800   :  { %4451 = vmatpush1.bf16.msra.mxu0 %v6405_v7  ;;  %v6423_v28 = vld [vmem:[#allocation23 + $0x8] sm:$0xff]   ;;  %v6434_v22 = vld [vmem:[#allocation23 + $0xe0] sm:$0xff]  }
0x1801   :  { %v4181_v37 = vadd.f32 %v4179_v60, %v7417_v33  ;;  %v6384_v33 = vld [vmem:[#allocation20 + $0x48] ss:$16 sps:$4 sm:$0xff]   ;;  %4452 = vmatprep.subr.bf16.mxu0 %v6413_v47  ;;  %v6422_v60 = vld [vmem:[#allocation23 + $0xc8] sm:$0xff]  }
0x1802   :  { %4486 = vmatpush1.bf16.msra.mxu1 %v6384_v33  ;;  %v6436_v33 = vld [vmem:[#allocation23 + $0xa0] sm:$0xff]  }
0x1803   :  { %4186 = vadd.xlane.f32.xlu1 %v4181_v37  ;;  %4487 = vmatprep.subr.bf16.mxu1 %v6392_v53  ;;  %v6442_v53 = vld [vmem:[#allocation23 + $0xf0] sm:$0xff]  }
0x1804   :  { %4453 = vmatpush1.bf16.msra.mxu0 %v6411_v9 }
0x1805   :  { %5502 = vmatprep.subr.bf16.mxu0 %v6417_v13 }
0x1806   :  { %4488 = vmatpush1.bf16.msra.mxu1 %v6390_v55  ;;  %v6444_v55 = vld [vmem:[#allocation23 + $0xb0] sm:$0xff]  }
0x1807   :  { %4489 = vmatprep.subr.bf16.mxu1 %v6398_v15  ;;  %v6446_v15 = vld [vmem:[#allocation23 + $0xf8] sm:$0xff]  }
0x180a   :  { %4490 = vmatpush1.bf16.msra.mxu1 %v6396_v57  ;;  %v6448_v57 = vld [vmem:[#allocation23 + $0xb8] sm:$0xff]  }
0x180b   :  { %4491 = vmatprep.subr.bf16.mxu1 %v6404_v2  ;;  %v4256_v2 = vld [vmem:[#allocation22] sm:$0xf] }
0x180c   :  { %v4261_v6 = vrot.slane %v4256_v2, %v7407_v20  ;;  %v4265_v7 = vrot.slane %v4256_v2, %v4264_v29 }
0x180e   :  { %4492 = vmatpush1.bf16.msra.mxu1 %v6402_v3  ;;  %v4272_v3 = vsub.s32 3, %v7398_v11 }
0x180f   :  { %4493 = vmatprep.subr.bf16.mxu1 %v6410_v63  ;;  %v4269_v63 = vrot.slane %v4256_v2, %v4268_v58 }
0x1812   :  { %4494 = vmatpush1.bf16.msra.mxu1 %v6408_v42  ;;  %v4273_v42 = vrot.slane %v4256_v2, %v4272_v3 }
0x1813   :  { %4495 = vmatprep.subr.bf16.mxu1 %v6416_v8 }
0x1816   :  { %4496 = vmatpush1.bf16.msra.mxu1 %v6414_v10 }
0x1817   :  { %5524 = vmatprep.subr.bf16.mxu1 %v6418_v14 }
0x1890   :  { %v4187_v48 = vpop.xlane.xlu1 %4186 }
0x1891   :  { %v4190_v50 = vmul.f32 0.0078125, %v4187_v48  ;;  %v6437_v48 = vld [vmem:[#allocation23 + $0x68] sm:$0xff]  }
0x1893   :  { %v4192_v19 = vsub.f32 %v4181_v37, %v4190_v50  ;;  %v6424_v37 = vld [vmem:[#allocation23 + $0x88] sm:$0xff]  }
0x1894   :  { %v6438_v50 = vld [vmem:[#allocation23 + $0xe8] sm:$0xff]  }
0x1895   :  { %v4194_v51 = vmul.f32 %v4192_v19, %v4192_v19 }
0x1897   :  { %4197 = vadd.xlane.f32.xlu1 %v4194_v51  ;;  %v6440_v51 = vld [vmem:[#allocation23 + $0xa8] sm:$0xff]  }
0x1924   :  { %v4198_v45 = vpop.xlane.xlu1 %4197 }
0x1925   :  { %v4200_v18 = vmul.f32 0.0078125, %v4198_v45 }
0x1927   :  { %v4202_v23 = vadd.f32 1e-05, %v4200_v18 }
0x1929   :  { %6499 = vrsqrt.f32 %v4202_v23 }
0x1933   :  { %v6500_v59 = vpop.eup %6499 }
0x1934   :  { %v4206_v24 = vmul.f32 %v6500_v59, %v4192_v19  ;;  %v6439_v19 = vld [vmem:[#allocation23 + $0x28] sm:$0xff]  }
0x1936   :  { %v4214_v26 = vmul.f32 %v5157_v32, %v4206_v24 }
0x1938   :  { %v8009_v4 = vadd.f32 %v5158_v25, %v4214_v26 }
0x193a   :  { %v4223_v61 = vpack.c.bf16 %v8009_v4, %v8007_v27 }
0x193c   :  { %4471 = vmatmul.mubr.bf16.vlgmr.msra.gmra.mrb[96].mxu0 %v4223_v61  ;;  %4514 = vmatmul.mubr.bf16.vlgmr.msra.gmra.mrb[112].mxu1 %v4223_v61 }
0x193d   :  { %5503 = vmatpush3.bf16.msra.mxu0 %v6419_v40  ;;  %5525 = vmatpush3.bf16.msra.mxu1 %v6420_v36 }
0x193e   :  { %5504 = vmatprep.subr.bf16.mxu0 %v6421_v21  ;;  %5526 = vmatprep.subr.bf16.mxu1 %v6422_v60 }
0x1941   :  { %5505 = vmatpush3.bf16.msra.mxu0 %v6423_v28  ;;  %5527 = vmatpush3.bf16.msra.mxu1 %v6424_v37 }
0x1942   :  { %5506 = vmatprep.subr.bf16.mxu0 %v6425_v43  ;;  %5528 = vmatprep.subr.bf16.mxu1 %v6426_v30 }
0x1945   :  { %5507 = vmatpush3.bf16.msra.mxu0 %v6427_v35  ;;  %5529 = vmatpush3.bf16.msra.mxu1 %v6428_v38 }
0x1946   :  { %5508 = vmatprep.subr.bf16.mxu0 %v6429_v39  ;;  %5530 = vmatprep.subr.bf16.mxu1 %v6430_v41 }
0x1949   :  { %5509 = vmatpush3.bf16.msra.mxu0 %v6431_v44  ;;  %5531 = vmatpush3.bf16.msra.mxu1 %v6432_v34 }
0x194a   :  { %5510 = vmatprep.subr.bf16.mxu0 %v6433_v46  ;;  %5532 = vmatprep.subr.bf16.mxu1 %v6434_v22 }
0x194d   :  { %5511 = vmatpush3.bf16.msra.mxu0 %v6435_v31  ;;  %5533 = vmatpush3.bf16.msra.mxu1 %v6436_v33 }
0x194e   :  { %5512 = vmatprep.subr.bf16.mxu0 %v6437_v48  ;;  %5534 = vmatprep.subr.bf16.mxu1 %v6438_v50 }
0x1951   :  { %5513 = vmatpush3.bf16.msra.mxu0 %v6439_v19  ;;  %5535 = vmatpush3.bf16.msra.mxu1 %v6440_v51 }
0x1952   :  { %5514 = vmatprep.subr.bf16.mxu0 %v6441_v52  ;;  %5536 = vmatprep.subr.bf16.mxu1 %v6442_v53 }
0x1955   :  { %5515 = vmatpush3.bf16.msra.mxu0 %v6443_v54  ;;  %5537 = vmatpush3.bf16.msra.mxu1 %v6444_v55 }
0x1956   :  { %5516 = vmatprep.subr.bf16.mxu0 %v6445_v5  ;;  %5538 = vmatprep.subr.bf16.mxu1 %v6446_v15 }
0x1959   :  { %5517 = vmatpush3.bf16.msra.mxu0 %v6447_v56  ;;  %5539 = vmatpush3.bf16.msra.mxu1 %v6448_v57 }
0x1a0f   :  { %v4472_v47 = vpop.f32.mrb[96].mxu0  ;;  %v4515_v8 = vpop.f32.mrb[112].mxu1 }
0x1a10   :  { %v4473_v9 = vadd.f32 %v4472_v47, %v4261_v6  ;;  %v4516_v10 = vadd.f32 %v4515_v8, %v4269_v63  ;;  %v4474_v12 = vpop.f32.mrb[97].mxu0  ;;  %v4517_v13 = vpop.f32.mrb[113].mxu1 }
0x1a11   :  { %v4475_v14 = vadd.f32 %v4474_v12, %v4265_v7  ;;  %v4518_v16 = vadd.f32 %v4517_v13, %v4273_v42  ;;  %v4476_v49 = vpop.f32.mrb[98].mxu0  ;;  %v4519_v17 = vpop.f32.mrb[114].mxu1 }
0x1a12   :  { %v4532_v45 = vmul.f32 1.442695, %v4473_v9  ;;  %v4536_v18 = vmul.f32 1.442695, %v4516_v10  ;;  %v4477_v11 = vadd.f32 %v4476_v49, %v4261_v6  ;;  %v4520_v20 = vadd.f32 %v4519_v17, %v4269_v63  ;;  %v4478_v62 = vpop.f32.mrb[99].mxu0  ;;  %v4521_v32 = vpop.f32.mrb[115].mxu1 }
0x1a13   :  { %v4534_v23 = vmul.f32 1.442695, %v4475_v14  ;;  %v4538_v1 = vmul.f32 1.442695, %v4518_v16  ;;  %v4479_v59 = vadd.f32 %v4478_v62, %v4265_v7  ;;  %v4522_v24 = vadd.f32 %v4521_v32, %v4273_v42  ;;  %v5199_v49 = vld [vmem:[#allocation25] ss:$0 sm:$0xff] }
0x1a14   :  { %6501 = vpow2.f32 %v4532_v45  ;;  %v4540_v0 = vmul.f32 1.442695, %v4477_v11  ;;  %v4544_v25 = vmul.f32 1.442695, %v4520_v20  ;;  %vm4524_vm4 = vcmp.gt.f32.partialorder %v4473_v9, 0.0 }
0x1a15   :  { %6503 = vpow2.f32 %v4536_v18  ;;  %v4542_v26 = vmul.f32 1.442695, %v4479_v59  ;;  %v4546_v40 = vmul.f32 1.442695, %v4522_v24  ;;  %vm4526_vm5 = vcmp.gt.f32.partialorder %v4516_v10, 0.0 }
0x1a16   :  { %6505 = vpow2.f32 %v4534_v23  ;;  %vm4525_vm6 = vcmp.gt.f32.partialorder %v4475_v14, 0.0  ;;  %vm4527_vm7 = vcmp.gt.f32.partialorder %v4518_v16, 0.0  ;;  %vm4528_vm8 = vcmp.gt.f32.partialorder %v4477_v11, 0.0 }
0x1a17   :  { %6507 = vpow2.f32 %v4538_v1  ;;  %vm4530_vm9 = vcmp.gt.f32.partialorder %v4520_v20, 0.0  ;;  %vm4529_vm10 = vcmp.gt.f32.partialorder %v4479_v59, 0.0  ;;  %vm4531_vm11 = vcmp.gt.f32.partialorder %v4522_v24, 0.0 }
0x1a18   :  { %6509 = vpow2.f32 %v4540_v0 }
0x1a19   :  { %6511 = vpow2.f32 %v4544_v25 }
0x1a1a   :  { %6513 = vpow2.f32 %v4542_v26 }
0x1a1b   :  { %6515 = vpow2.f32 %v4546_v40 }
0x1a1e   :  { %v6502_v36 = vpop.eup %6501 }
0x1a1f   :  { %v6504_v61 = vpop.eup %6503  ;;  %v5191_v21 = vadd.f32 -1.0, %v6502_v36 }
0x1a20   :  { %v6506_v60 = vpop.eup %6505  ;;  %v5193_v28 = vadd.f32 -1.0, %v6504_v61 }
0x1a21   :  { %v6508_v37 = vpop.eup %6507  ;;  %v4556_v43 = vmul.f32 1.6732632, %v5191_v21  ;;  %v5192_v30 = vadd.f32 -1.0, %v6506_v60 }
0x1a22   :  { %v6510_v35 = vpop.eup %6509  ;;  %v4558_v38 = vmul.f32 1.6732632, %v5193_v28  ;;  %v5194_v39 = vadd.f32 -1.0, %v6508_v37 }
0x1a23   :  { %v6512_v41 = vpop.eup %6511  ;;  %v4557_v44 = vmul.f32 1.6732632, %v5192_v30  ;;  %v5195_v34 = vadd.f32 -1.0, %v6510_v35  ;;  %v4564_v22 = vsel %vm4524_vm4, %v4473_v9, %v4556_v43 }
0x1a24   :  { %v6514_v46 = vpop.eup %6513  ;;  %v4559_v31 = vmul.f32 1.6732632, %v5194_v39  ;;  %v5197_v33 = vadd.f32 -1.0, %v6512_v41  ;;  %v4566_v51 = vsel %vm4526_vm5, %v4516_v10, %v4558_v38  ;;  %v4572_v54 = vmul.f32 1.050701, %v4564_v22 }
0x1a25   :  { %v6516_v48 = vpop.eup %6515  ;;  %v4560_v50 = vmul.f32 1.6732632, %v5195_v34  ;;  %v5196_v19 = vadd.f32 -1.0, %v6514_v46  ;;  %v4565_v55 = vsel %vm4525_vm6, %v4475_v14, %v4557_v44  ;;  %v4574_v29 = vmul.f32 1.050701, %v4566_v51 }
0x1a26   :  { %v4562_v52 = vmul.f32 1.6732632, %v5197_v33  ;;  %v5198_v53 = vadd.f32 -1.0, %v6516_v48  ;;  %v4567_v56 = vsel %vm4527_vm7, %v4518_v16, %v4559_v31  ;;  %v4573_v63 = vmul.f32 1.050701, %v4565_v55 }
0x1a27   :  { %v4568_v5 = vsel %vm4528_vm8, %v4477_v11, %v4560_v50  ;;  %v4561_v15 = vmul.f32 1.6732632, %v5196_v19  ;;  %v4575_v8 = vmul.f32 1.050701, %v4567_v56  ;;  %v5232_v46 = vld [vmem:[#allocation29] ss:$0 sm:$0xff] }
0x1a28   :  { %v4576_v57 = vmul.f32 1.050701, %v4568_v5  ;;  %v4570_v58 = vsel %vm4530_vm9, %v4520_v20, %v4562_v52  ;;  %v4563_v2 = vmul.f32 1.6732632, %v5198_v53  ;;  %v5233_v33 = vld [vmem:[#allocation31] ss:$0 sm:$0xff] }
0x1a29   :  { %v4578_v3 = vmul.f32 1.050701, %v4570_v58  ;;  %v4569_v6 = vsel %vm4529_vm10, %v4479_v59, %v4561_v15 }
0x1a2a   :  { %v4580_v7 = vpack.c.bf16 %v4576_v57, %v4572_v54  ;;  %v4577_v42 = vmul.f32 1.050701, %v4569_v6  ;;  %v4571_v47 = vsel %vm4531_vm11, %v4522_v24, %v4563_v2 }
0x1a2b   :  { %v4582_v9 = vpack.c.bf16 %v4578_v3, %v4574_v29  ;;  %v4579_v10 = vmul.f32 1.050701, %v4571_v47 }
0x1a2c   :  { %v4581_v12 = vpack.c.bf16 %v4577_v42, %v4573_v63 }
0x1a2d   :  { %v4583_v13 = vpack.c.bf16 %v4579_v10, %v4575_v8 }
0x1a2e   :  { %4879 = vmatprep.mubr.bf16.mxu0 %v4581_v12 }
0x1a2f   :  { %4920 = vmatprep.mubr.bf16.mxu1 %v4583_v13  ;;  %4880 = vmatmul.mubr.bf16.vlgmr.msra.gmra.mrb[100].mxu0 %v4580_v7 }
0x1a30   :  { %4921 = vmatmul.mubr.bf16.vlgmr.msra.gmra.mrb[116].mxu1 %v4582_v9 }
0x1b02   :  { %v5518_v14 = vpop.f32.mrb[100].mxu0 }
0x1b03   :  { %v5540_v16 = vpop.f32.mrb[116].mxu1  ;;  %v5519_v17 = vpop.f32.mrb[101].mxu0 }
0x1b04   :  { %v5520_v45 = vadd.f32 %v5519_v17, %v5518_v14  ;;  %v5541_v18 = vpop.f32.mrb[117].mxu1  ;;  %v5521_v23 = vpop.f32.mrb[102].mxu0 }
0x1b05   :  { %v5542_v1 = vadd.f32 %v5541_v18, %v5540_v16  ;;  %v5543_v11 = vpop.f32.mrb[118].mxu1  ;;  %v5522_v20 = vpop.f32.mrb[103].mxu0 }
0x1b06   :  { %v4882_v62 = vadd.f32 %v5520_v45, %v5199_v49  ;;  %v5523_v32 = vadd.f32 %v5522_v20, %v5521_v23  ;;  %v5544_v59 = vpop.f32.mrb[119].mxu1 }
0x1b07   :  { %v5545_v24 = vadd.f32 %v5544_v59, %v5543_v11 }
0x1b08   :  { %v4923_v0 = vadd.f32 %v5542_v1, %v4882_v62  ;;  %v4885_v25 = vadd.f32 %v5523_v32, %v5199_v49 }
0x1b0a   :  { %v4926_v26 = vadd.f32 %v5545_v24, %v4885_v25  ;;  %v4929_v40 = vadd.f32 %v4923_v0, %v8007_v27 }
0x1b0c   :  { %4933 = vadd.xlane.f32.xlu0 %v4929_v40  ;;  %v4930_v36 = vadd.f32 %v4926_v26, %v8009_v4 }
0x1b0e   :  { %4935 = vadd.xlane.f32.xlu1 %v4930_v36 }
0x1b99   :  { %v4934_v61 = vpop.xlane.xlu0 %4933 }
0x1b9a   :  { %v4937_v21 = vmul.f32 0.0078125, %v4934_v61 }
0x1b9b   :  { %v4936_v60 = vpop.xlane.xlu1 %4935 }
0x1b9c   :  { %v4939_v28 = vsub.f32 %v4929_v40, %v4937_v21  ;;  %v4938_v37 = vmul.f32 0.0078125, %v4936_v60 }
0x1b9e   :  { %v4940_v43 = vsub.f32 %v4930_v36, %v4938_v37  ;;  %v4941_v30 = vmul.f32 %v4939_v28, %v4939_v28 }
0x1ba0   :  { %4943 = vadd.xlane.f32.xlu0 %v4941_v30  ;;  %v4942_v35 = vmul.f32 %v4940_v43, %v4940_v43 }
0x1ba2   :  { %4945 = vadd.xlane.f32.xlu1 %v4942_v35 }
0x1c2d   :  { %v4944_v38 = vpop.xlane.xlu0 %4943 }
0x1c2e   :  { %v4947_v39 = vmul.f32 0.0078125, %v4944_v38 }
0x1c2f   :  { %v4946_v41 = vpop.xlane.xlu1 %4945 }
0x1c30   :  { %v4949_v44 = vadd.f32 1e-05, %v4947_v39  ;;  %v4948_v34 = vmul.f32 0.0078125, %v4946_v41 }
0x1c32   :  { %6517 = vrsqrt.f32 %v4949_v44  ;;  %v4950_v27 = vadd.f32 1e-05, %v4948_v34 }
0x1c34   :  { %6519 = vrsqrt.f32 %v4950_v27 }
0x1c3c   :  { %v6518_v4 = vpop.eup %6517 }
0x1c3d   :  { %v4953_v22 = vmul.f32 %v6518_v4, %v4939_v28 }
0x1c3e   :  { %v6520_v31 = vpop.eup %6519 }
0x1c3f   :  { %v4954_v48 = vmul.f32 %v6520_v31, %v4940_v43  ;;  %v4961_v50 = vmul.f32 %v5232_v46, %v4953_v22 }
0x1c41   :  { %v4962_v19 = vmul.f32 %v5232_v46, %v4954_v48  ;;  %v4969_v51 = vadd.f32 %v5233_v33, %v4961_v50 }
0x1c43   :  { %v4970_v52 = vadd.f32 %v5233_v33, %v4962_v19  ;;  %4971 = vst [vmem:[#allocation32] sm:$0xff] %v4969_v51 }
0x1c45   :  { %4972 = vst [vmem:[#allocation32 + $0x8] sm:$0xff] %v4970_v52 }
0x1c46   :  { %6950 = shalt.err (!%p6947_p2)
}
0x1c47   :  { %s8070_s1 = sld [smem:[#allocation48_spill]] }
0x1c4d   :  { %s6951_s19 = scalar_lea.hbm %s8070_s1, 256 }
0x1c4e   :  { %p6952_p3 = scmp.ne.s32.totalorder %s8070_s1, %s6951_s19  ;;  %p6955_p4 = scmp.lt.u32.totalorder %s6951_s19, %s8070_s1 }
0x1c50   :  { %p6957_p5 = pnand %p6955_p4, %p6952_p3 }
0x1c52   :  { %6960 = shalt.err (!%p6957_p5)
}
0x1c53   :  { %4984 = dma.vmem_to_hbm [thread:$0]  %s4979_s12, 256, %s8070_s1, [#allocation4], %s6998_s17, %s6998_s17, %s6999_s3  }
0x1c54   :  { %6981 = dma.done.wait [#allocation4], 256  }
0x1c55   :  { %6982 = vsyncadd [#allocation4], 4294967040 }
0x1c56   :  { %4988 = vsyncpa [#allocation3], 1 }
0x1c57   :  { %4989 = vsyncpa [#allocation6], 1 }
0x1c58   :  { %4990 = vsyncpa [#allocation9], 1 }
0x1c59   :  { %4991 = vsyncpa [#allocation12], 1 }
0x1c5a   :  { %4992 = vsyncpa [#allocation15], 1 }
0x1c5b   :  { %4993 = vsyncpa [#allocation18], 1 }
0x1c5c   :  { %4994 = vsyncpa [#allocation21], 1 }
0x1c5d   :  { %4995 = vsyncpa [#allocation24], 1 }
0x1c5e   :  { %4996 = vsyncpa [#allocation27], 1 }
0x1c5f   :  { %4997 = vsyncpa [#allocation30], 1 }
0x1c60   :  { %4998 = vsyncpa [#allocation4], 1 }

</bundles_post_ra>
